<compile_context>
chip_gen: v5e
topology: v5e:2x2
jax: 0.10.0
libtpu: 0.0.40
codegen_flags: <defaults>
</compile_context>

<pallas_src>
import functools

import numpy as np
import jax
import jax.numpy as jnp
from jax.experimental import pallas as pl
from jax.experimental.pallas import tpu as pltpu

EPS = 1e-5
SLOPE = 0.2


# ---------------------------------------------------------------------------
# Fused kernel: entire forward pass in one grid step, everything VMEM resident.
# ---------------------------------------------------------------------------
def _fused_kernel(x_ref, lp_ref, misc_ref, taps_hbm, o_ref, tapbuf, sem,
                  *, N, H, W, C, LANES, eps, slope):
    NH = N * H
    n_stages = 9                            # 8 dilated convs + final 1x1
    inv_cnt = 1.0 / float(N * H * W)        # BatchNorm count over (N, H, W)

    # ---- per-stage tap streaming: manual HBM->VMEM double buffer ----------
    copies = {}

    def start_taps(s):
        cp = pltpu.make_async_copy(taps_hbm.at[s], tapbuf.at[s & 1], sem.at[s & 1])
        cp.start()
        copies[s] = cp

    def get_taps(s):
        copies[s].wait()
        if s + 1 < n_stages:
            start_taps(s + 1)               # prefetch next stage's taps
        return s & 1

    start_taps(0)                           # overlaps with the input BN below

    # ---- constants, hoisted once -------------------------------------------
    rows = jax.lax.broadcasted_iota(jnp.int32, (NH, 1), 0) % H   # row-in-image
    lane = jax.lax.broadcasted_iota(jnp.int32, (1, LANES), 1)
    in_mask = lane < W                      # Cin == 1: only first W lanes real
    misc = misc_ref[...]                    # (3, LANES): bn0 gamma/beta, final bias
    g0, b0, bfin = misc[0:1], misc[1:2], misc[2:3]

    def lrelu(v):
        return jnp.where(v >= 0, v, slope * v)

    def conv(act2d, k):
        """Dilated 3x3 conv (dilation = k+1) as 3 bf16 row-tap matmuls."""
        d = k + 1
        slot = get_taps(k)
        acc = jnp.dot(act2d.astype(jnp.bfloat16), tapbuf[slot, 1],
                      preferred_element_type=jnp.float32)
        for ki in (0, 2):                   # static unroll of the +/-d tap rows
            off = (ki - 1) * d
            shifted = pltpu.roll(act2d, (-off) % NH, axis=0)   # XLU sublane roll
            hin = rows + off
            valid = jnp.logical_and(hin >= 0, hin < H)         # vertical zero pad
            patch = jnp.where(valid, shifted, 0.0).astype(jnp.bfloat16)
            acc = acc + jnp.dot(patch, tapbuf[slot, ki],
                                preferred_element_type=jnp.float32)
        return acc

    def adabn(y2d, k):
        """a*y + b*BatchNorm2d(y), folded to one affine (conv bias pre-folded)."""
        lp = lp_ref[k]                      # (3, LANES): a, b*gamma, b*beta(+a*bias)
        a_l, bg_l, bb_l = lp[0:1], lp[1:2], lp[2:3]
        # one-pass stats: sublane reduce, then roll-tree across the W lane groups.
        s0 = jnp.sum(y2d, axis=0, keepdims=True)               # (1, LANES)
        s1 = jnp.sum(y2d * y2d, axis=0, keepdims=True)
        sh = C
        while sh < LANES:                   # log2(W) XLU shift-add steps
            s0 = s0 + pltpu.roll(s0, sh, axis=1)
            s1 = s1 + pltpu.roll(s1, sh, axis=1)
            sh *= 2
        mean_l = s0 * inv_cnt
        var_l = jnp.maximum(s1 * inv_cnt - mean_l * mean_l, 0.0)  # clamp round-off
        rstd = jax.lax.rsqrt(var_l + eps)
        scale = a_l + bg_l * rstd
        shift = bb_l - bg_l * rstd * mean_l
        return y2d * scale + shift

    def cba(v, k):                          # Conv(dilation=k+1) -> AdaBN
        return adabn(conv(v, k), k)

    # ---- input BatchNorm2d(1): stats over all N*H*W elements of channel 0 --
    xin = x_ref[...]                        # (NH, LANES), lanes >= W are zero
    mean0 = jnp.sum(xin) * inv_cnt
    var0 = jnp.maximum(jnp.sum(xin * xin) * inv_cnt - mean0 * mean0, 0.0)
    rstd0 = jax.lax.rsqrt(var0 + eps)
    h = jnp.where(in_mask, xin * (g0 * rstd0) + (b0 - g0 * (rstd0 * mean0)), 0.0)

    # ---- residual CAN body (matches the PyTorch forward wiring) ------------
    h1 = lrelu(cba(h, 0))                               # d=1 (bias), AdaBN, LReLU
    h2 = lrelu(h1 + cba(lrelu(cba(h1, 1)), 2))          # d=2, d=3, skip
    h3 = lrelu(h2 + cba(lrelu(cba(h2, 3)), 4))          # d=4, d=5, skip
    h4 = lrelu(h3 + cba(lrelu(cba(h3, 5)), 6))          # d=6, d=7, skip
    h5 = lrelu(cba(h4, 7))                              # d=8

    slot = get_taps(8)                                  # final 1x1 conv taps
    out = jnp.dot(h5.astype(jnp.bfloat16), tapbuf[slot, 0],
                  preferred_element_type=jnp.float32) + bfin
    o_ref[...] = out                                    # lane-dense slab; [:, :W] real


# ---------------------------------------------------------------------------
# Host-side parameter packing: fold taps / horizontal padding / channel mixing
# into lane-dense matrices so the kernel only does (NH,128)x(128,128) matmuls.
# ---------------------------------------------------------------------------
def _conv_to_row_mats(w, d, W, LANES):
    """w: (Cout, Cin, K, K) -> (K, LANES, LANES) per-row tap matrices."""
    w = np.asarray(w, np.float32)
    Cout, Cin, K, _ = w.shape
    ctr = (K - 1) // 2
    mats = np.zeros((K, LANES, LANES), np.float32)
    for ki in range(K):
        for kj in range(K):
            blk = w[:, :, ki, kj].T                    # (Cin, Cout)
            oj = (kj - ctr) * d
            for j in range(W):                         # output column
                jin = j + oj
                if 0 <= jin < W:                       # horizontal zero padding
                    mats[ki, jin * Cin:jin * Cin + Cin,
                         j * Cout:j * Cout + Cout] += blk
    return mats


def pack_params(p, *, H, W, C):
    LANES = W * C
    n_stages = 9
    taps = np.zeros((n_stages, 3, LANES, LANES), np.float32)
    lane_params = []
    for k, layer in enumerate(p["convs"]):
        taps[k] = _conv_to_row_mats(layer["w"], layer["d"], W, LANES)
        a = float(layer["a"])
        b = float(layer["b"])
        a_l = np.full((LANES,), a, np.float32)
        bg_l = np.tile(np.asarray(b * np.asarray(layer["gamma"], np.float32),
                                  np.float32), W)
        bb = b * np.asarray(layer["beta"], np.float32)
        if layer["bias"] is not None:
            # BN is invariant to a per-channel bias, so AdaBN(y + bias) =
            # y*scale + (b*beta + a*bias - b*gamma*rstd*mean(y)); fold a*bias here.
            bb = bb + a * np.asarray(layer["bias"], np.float32)
        bb_l = np.tile(bb.astype(np.float32), W)
        lane_params.append(np.stack([a_l, bg_l, bb_l]))
    taps[n_stages - 1, 0] = _conv_to_row_mats(p["wf"], 1, W, LANES)[0]  # final 1x1
    lane_params = np.stack(lane_params)                # (8, 3, LANES)

    misc = np.stack([np.full((LANES,), float(p["bn0_gamma"]), np.float32),
                     np.full((LANES,), float(p["bn0_beta"]), np.float32),
                     np.full((LANES,), float(p["bf"]), np.float32)])

    return (jnp.asarray(taps, dtype=jnp.bfloat16),     # bf16 taps: 1 MXU pass, half DMA
            jnp.asarray(lane_params), jnp.asarray(misc))


def dfl_rescan2d_forward(x_nchw, packed, *, C, eps=EPS, slope=SLOPE):
    N, cin, H, W = x_nchw.shape
    assert cin == 1
    LANES = W * C
    # TODO(synk): generalize lane packing / roll-tree for W*C != 128 or non-pow2 W
    # (module default num_channels=45 is unsupported by this specialization).
    assert LANES == 128, "this kernel specialization requires W * num_channels == 128"
    assert W & (W - 1) == 0, "lane roll-tree reduction requires power-of-two W"
    taps, lane_params, misc = packed

    # lane layout: lane = w*Cin + ci; Cin=1 -> first W lanes hold the input row.
    x_lanes = jnp.pad(x_nchw[:, 0].astype(jnp.float32),
                      ((0, 0), (0, 0), (0, LANES - W))).reshape(N * H, LANES)

    kern = functools.partial(_fused_kernel, N=N, H=H, W=W, C=C, LANES=LANES,
                             eps=eps, slope=slope)
    out = pl.pallas_call(
        kern,
        out_shape=jax.ShapeDtypeStruct((N * H, LANES), jnp.float32),
        grid=(1,),
        in_specs=[
            pl.BlockSpec((N * H, LANES), lambda i: (0, 0)),
            pl.BlockSpec(lane_params.shape, lambda i: (0, 0, 0)),
            pl.BlockSpec(misc.shape, lambda i: (0, 0)),
            pl.BlockSpec(memory_space=pl.ANY),      # taps stay in HBM; streamed
        ],
        out_specs=pl.BlockSpec((N * H, LANES), lambda i: (0, 0)),
        scratch_shapes=[pltpu.VMEM((2, 3, LANES, LANES), jnp.bfloat16),
                        pltpu.SemaphoreType.DMA((2,))],
        compiler_params=pltpu.CompilerParams(dimension_semantics=("arbitrary",)),
    )(x_lanes, lane_params, misc, taps)
    return out[:, :W].reshape(N, 1, H, W)


# ---------------------------------------------------------------------------
# Deterministic synthetic parameters (PyTorch layout) + pure-JAX reference.
# ---------------------------------------------------------------------------
def init_params(key, *, C):
    keys = iter(jax.random.split(key, 64))

    def nrm(shape, scale):
        return scale * jax.random.normal(next(keys), shape, jnp.float32)

    p = {"bn0_gamma": 1.0 + nrm((), 0.1), "bn0_beta": nrm((), 0.1)}
    convs, cin = [], 1
    for k in range(8):
        fan_in = 3 * 3 * cin
        convs.append(dict(
            w=nrm((C, cin, 3, 3), 1.0 / float(fan_in) ** 0.5),
            bias=nrm((C,), 0.1) if k == 0 else None,      # only first conv has bias
            d=k + 1,
            a=0.1 + nrm((), 0.02), b=0.9 + nrm((), 0.02),
            gamma=1.0 + nrm((C,), 0.1), beta=nrm((C,), 0.1)))
        cin = C
    p["convs"] = convs
    p["wf"] = nrm((1, C, 1, 1), 1.0 / float(C) ** 0.5)    # final 1x1 conv
    p["bf"] = nrm((), 0.1)
    return p


def _bn2d_train(x, gamma, beta, eps):
    mean = jnp.mean(x, axis=(0, 2, 3), keepdims=True)
    var = jnp.mean((x - mean) ** 2, axis=(0, 2, 3), keepdims=True)
    return (jnp.reshape(gamma, (1, -1, 1, 1)) * (x - mean) / jnp.sqrt(var + eps)
            + jnp.reshape(beta, (1, -1, 1, 1)))


def _conv_ref(x, w, bias, d):
    K = w.shape[2]
    pad = d * (K - 1) // 2
    y = jax.lax.conv_general_dilated(
        x, w, window_strides=(1, 1), padding=((pad, pad), (pad, pad)),
        rhs_dilation=(d, d), dimension_numbers=("NCHW", "OIHW", "NCHW"),
        precision=jax.lax.Precision.HIGHEST)
    if bias is not None:
        y = y + jnp.reshape(bias, (1, -1, 1, 1))
    return y


def reference_forward(x, p, *, eps=EPS, slope=SLOPE):
    def lrelu(v):
        return jnp.where(v >= 0, v, slope * v)

    def cba(v, k):
        L = p["convs"][k]
        y = _conv_ref(v, L["w"], L["bias"], L["d"])
        return L["a"] * y + L["b"] * _bn2d_train(y, L["gamma"], L["beta"], eps)

    h = _bn2d_train(x, p["bn0_gamma"], p["bn0_beta"], eps)
    h1 = lrelu(cba(h, 0))
    h2 = lrelu(h1 + cba(lrelu(cba(h1, 1)), 2))
    h3 = lrelu(h2 + cba(lrelu(cba(h2, 3)), 4))
    h4 = lrelu(h3 + cba(lrelu(cba(h3, 5)), 6))
    h5 = lrelu(cba(h4, 7))
    return _conv_ref(h5, p["wf"], p["bf"], 1)


if __name__ == "__main__":
    key = jax.random.PRNGKey(0)
    kx, kp = jax.random.split(key)

    # Small shapes consistent with the module: 1 input channel, 16x16 patch,
    # num_channels=8 so that W * C == 128 (lane-dense layout).
    N, H, W, C = 2, 16, 16, 8
    x = jax.random.normal(kx, (N, 1, H, W), jnp.float32)

    raw = init_params(kp, C=C)
    packed = pack_params(raw, H=H, W=W, C=C)

    y = dfl_rescan2d_forward(x, packed, C=C)
    y = jax.block_until_ready(y)
    assert y.shape == (N, 1, H, W), y.shape
    assert bool(jnp.all(jnp.isfinite(y)))

    # Sanity check against a pure-JAX/XLA (f32, HIGHEST precision) reference.
    # Tolerance is slightly looser than before because the kernel now runs the
    # tap matmuls in bf16 (single MXU pass) per the performance review.
    y_ref = reference_forward(x, raw)
    err = float(jnp.max(jnp.abs(y - y_ref)))
    scale = max(float(jnp.max(jnp.abs(y_ref))), 1.0)
    assert err <= 5e-2 * scale, f"kernel vs reference mismatch: {err} (scale {scale})"

    print("KERNEL_OK")
</pallas_src>

<mosaic_0001>
module attributes {stable_mosaic.version = 11 : i64} {
  func.func @_fused_kernel(%arg0: i32, %arg1: memref<32x128xf32, #tpu.memory_space<vmem>>, %arg2: memref<8x3x128xf32, #tpu.memory_space<vmem>>, %arg3: memref<3x128xf32, #tpu.memory_space<vmem>>, %arg4: memref<9x3x128x128xbf16, #tpu.memory_space<any>>, %arg5: memref<32x128xf32, #tpu.memory_space<vmem>>, %arg6: memref<2x3x128x128xbf16, #tpu.memory_space<vmem>>, %arg7: memref<2x!tpu.dma_semaphore, #tpu.memory_space<semaphore_mem>>) attributes {dimension_semantics = [#tpu.dimension_semantics<arbitrary>], iteration_bounds = array<i64: 1>, scalar_prefetch = 0 : i64, scratch_operands = 2 : i64, tpu.core_type = #tpu.core_type<tc>, window_params = [{pipeline_mode = #tpu.pipeline_mode<synchronous>, transform_indices = @transform_0, window_bounds = array<i64: 32, 128>}, {pipeline_mode = #tpu.pipeline_mode<synchronous>, transform_indices = @transform_1, window_bounds = array<i64: 8, 3, 128>}, {pipeline_mode = #tpu.pipeline_mode<synchronous>, transform_indices = @transform_2, window_bounds = array<i64: 3, 128>}, {}, {pipeline_mode = #tpu.pipeline_mode<synchronous>, transform_indices = @transform_4, window_bounds = array<i64: 32, 128>}]} {
    %c0_i32 = arith.constant 0 : i32
    %c0_i32_0 = arith.constant 0 : i32
    %c0_i32_1 = arith.constant 0 : i32
    %c0_i32_2 = arith.constant 0 : i32
    %c0_i32_3 = arith.constant 0 : i32
    %c0_i32_4 = arith.constant 0 : i32
    %0 = tpu.memref_slice %arg4[%c0_i32, %c0_i32_2, %c0_i32_3, %c0_i32_4] : memref<9x3x128x128xbf16, #tpu.memory_space<any>> -> memref<1x3x128x128xbf16, #tpu.memory_space<any>>
    %1 = tpu.memref_squeeze %0 : memref<1x3x128x128xbf16, #tpu.memory_space<any>> -> memref<3x128x128xbf16, #tpu.memory_space<any>>
    %c0_i32_5 = arith.constant 0 : i32
    %c0_i32_6 = arith.constant 0 : i32
    %c0_i32_7 = arith.constant 0 : i32
    %2 = tpu.memref_slice %arg6[%c0_i32_0, %c0_i32_5, %c0_i32_6, %c0_i32_7] : memref<2x3x128x128xbf16, #tpu.memory_space<vmem>> -> memref<1x3x128x128xbf16, #tpu.memory_space<vmem>>
    %3 = tpu.memref_squeeze %2 : memref<1x3x128x128xbf16, #tpu.memory_space<vmem>> -> memref<3x128x128xbf16, #tpu.memory_space<vmem>>
    %4 = tpu.memref_slice %arg7[%c0_i32_1] : memref<2x!tpu.dma_semaphore, #tpu.memory_space<semaphore_mem>> -> memref<1x!tpu.dma_semaphore, #tpu.memory_space<semaphore_mem>>
    %5 = tpu.memref_squeeze %4 : memref<1x!tpu.dma_semaphore, #tpu.memory_space<semaphore_mem>> -> memref<!tpu.dma_semaphore, #tpu.memory_space<semaphore_mem>>
    tpu.enqueue_dma source(%1 : memref<3x128x128xbf16, #tpu.memory_space<any>>) target(%3 : memref<3x128x128xbf16, #tpu.memory_space<vmem>>) target_semaphore(%5 : memref<!tpu.dma_semaphore, #tpu.memory_space<semaphore_mem>>)
    %6 = tpu.iota {dimensions = array<i32: 0>} : vector<32x1xi32>
    %c16_i32 = arith.constant 16 : i32
    %c0_i32_8 = arith.constant 0 : i32
    %7 = arith.cmpi eq, %c16_i32, %c0_i32_8 : i32
    %c1_i32 = arith.constant 1 : i32
    %8 = arith.select %7, %c1_i32, %c16_i32 : i32
    %9 = vector.broadcast %8 : i32 to vector<32x1xi32>
    %10 = arith.remsi %6, %9 : vector<32x1xi32>
    %c0_i32_9 = arith.constant 0 : i32
    %11 = vector.broadcast %c0_i32_9 : i32 to vector<32x1xi32>
    %12 = arith.cmpi ne, %10, %11 : vector<32x1xi32>
    %c0_i32_10 = arith.constant 0 : i32
    %13 = vector.broadcast %c0_i32_10 : i32 to vector<32x1xi32>
    %14 = arith.cmpi slt, %10, %13 : vector<32x1xi32>
    %c0_i32_11 = arith.constant 0 : i32
    %15 = arith.cmpi slt, %8, %c0_i32_11 : i32
    %16 = vector.broadcast %15 : i1 to vector<32x1xi1>
    %17 = vector.broadcast %16 : vector<32x1xi1> to vector<32x1xi1>
    %18 = arith.xori %14, %17 : vector<32x1xi1>
    %19 = arith.andi %18, %12 : vector<32x1xi1>
    %20 = vector.broadcast %8 : i32 to vector<32x1xi32>
    %21 = arith.addi %10, %20 : vector<32x1xi32>
    %22 = arith.select %19, %21, %10 : vector<32x1xi1>, vector<32x1xi32>
    %23 = tpu.iota {dimensions = array<i32: 1>} : vector<1x128xi32>
    %c16_i32_12 = arith.constant 16 : i32
    %24 = vector.broadcast %c16_i32_12 : i32 to vector<1x128xi32>
    %25 = arith.cmpi slt, %23, %24 : vector<1x128xi32>
    %c0 = arith.constant 0 : index
    %c0_13 = arith.constant 0 : index
    %26 = vector.load %arg3[%c0, %c0_13] : memref<3x128xf32, #tpu.memory_space<vmem>>, vector<3x128xf32>
    %27 = vector.extract_strided_slice %26 {offsets = [0, 0], sizes = [1, 128], strides = [1, 1]} : vector<3x128xf32> to vector<1x128xf32>
    %28 = vector.extract_strided_slice %26 {offsets = [1, 0], sizes = [1, 128], strides = [1, 1]} : vector<3x128xf32> to vector<1x128xf32>
    %29 = vector.extract_strided_slice %26 {offsets = [2, 0], sizes = [1, 128], strides = [1, 1]} : vector<3x128xf32> to vector<1x128xf32>
    %c0_14 = arith.constant 0 : index
    %c0_15 = arith.constant 0 : index
    %30 = vector.load %arg1[%c0_14, %c0_15] : memref<32x128xf32, #tpu.memory_space<vmem>>, vector<32x128xf32>
    %31 = vector.shape_cast %30 : vector<32x128xf32> to vector<1x32x128xf32>
    %cst = arith.constant dense<0.000000e+00> : vector<1xf32>
    %32 = vector.multi_reduction <add>, %31, %cst [1, 2] : vector<1x32x128xf32> to vector<1xf32>
    %33 = vector.shape_cast %32 : vector<1xf32> to vector<1x1x1xf32>
    %34 = vector.extract %33[0, 0, 0] : f32 from vector<1x1x1xf32>
    %cst_16 = arith.constant 0.001953125 : f32
    %35 = arith.mulf %34, %cst_16 : f32
    %36 = arith.mulf %30, %30 : vector<32x128xf32>
    %37 = vector.shape_cast %36 : vector<32x128xf32> to vector<1x32x128xf32>
    %cst_17 = arith.constant dense<0.000000e+00> : vector<1xf32>
    %38 = vector.multi_reduction <add>, %37, %cst_17 [1, 2] : vector<1x32x128xf32> to vector<1xf32>
    %39 = vector.shape_cast %38 : vector<1xf32> to vector<1x1x1xf32>
    %40 = vector.extract %39[0, 0, 0] : f32 from vector<1x1x1xf32>
    %cst_18 = arith.constant 0.001953125 : f32
    %41 = arith.mulf %40, %cst_18 : f32
    %42 = arith.mulf %35, %35 : f32
    %43 = arith.subf %41, %42 : f32
    %cst_19 = arith.constant 0.000000e+00 : f32
    %44 = arith.maximumf %43, %cst_19 : f32
    %cst_20 = arith.constant 9.99999974E-6 : f32
    %45 = arith.addf %44, %cst_20 : f32
    %46 = math.rsqrt %45 : f32
    %47 = vector.broadcast %46 : f32 to vector<1x128xf32>
    %48 = arith.mulf %27, %47 : vector<1x128xf32>
    %49 = vector.broadcast %48 : vector<1x128xf32> to vector<32x128xf32>
    %50 = arith.mulf %30, %49 : vector<32x128xf32>
    %51 = arith.mulf %46, %35 : f32
    %52 = vector.broadcast %51 : f32 to vector<1x128xf32>
    %53 = arith.mulf %27, %52 : vector<1x128xf32>
    %54 = arith.subf %28, %53 : vector<1x128xf32>
    %55 = vector.broadcast %54 : vector<1x128xf32> to vector<32x128xf32>
    %56 = arith.addf %50, %55 : vector<32x128xf32>
    %cst_21 = arith.constant 0.000000e+00 : f32
    %57 = vector.shape_cast %25 : vector<1x128xi1> to vector<1x128xi1>
    %58 = vector.broadcast %57 : vector<1x128xi1> to vector<32x128xi1>
    %59 = vector.broadcast %cst_21 : f32 to vector<32x128xf32>
    %60 = arith.select %58, %56, %59 : vector<32x128xi1>, vector<32x128xf32>
    %c0_i32_22 = arith.constant 0 : i32
    %c0_i32_23 = arith.constant 0 : i32
    %c0_i32_24 = arith.constant 0 : i32
    %c0_i32_25 = arith.constant 0 : i32
    %c0_i32_26 = arith.constant 0 : i32
    %c0_i32_27 = arith.constant 0 : i32
    %61 = tpu.memref_slice %arg4[%c0_i32_22, %c0_i32_25, %c0_i32_26, %c0_i32_27] : memref<9x3x128x128xbf16, #tpu.memory_space<any>> -> memref<1x3x128x128xbf16, #tpu.memory_space<any>>
    %62 = tpu.memref_squeeze %61 : memref<1x3x128x128xbf16, #tpu.memory_space<any>> -> memref<3x128x128xbf16, #tpu.memory_space<any>>
    %c0_i32_28 = arith.constant 0 : i32
    %c0_i32_29 = arith.constant 0 : i32
    %c0_i32_30 = arith.constant 0 : i32
    %63 = tpu.memref_slice %arg6[%c0_i32_23, %c0_i32_28, %c0_i32_29, %c0_i32_30] : memref<2x3x128x128xbf16, #tpu.memory_space<vmem>> -> memref<1x3x128x128xbf16, #tpu.memory_space<vmem>>
    %64 = tpu.memref_squeeze %63 : memref<1x3x128x128xbf16, #tpu.memory_space<vmem>> -> memref<3x128x128xbf16, #tpu.memory_space<vmem>>
    %65 = tpu.memref_slice %arg7[%c0_i32_24] : memref<2x!tpu.dma_semaphore, #tpu.memory_space<semaphore_mem>> -> memref<1x!tpu.dma_semaphore, #tpu.memory_space<semaphore_mem>>
    %66 = tpu.memref_squeeze %65 : memref<1x!tpu.dma_semaphore, #tpu.memory_space<semaphore_mem>> -> memref<!tpu.dma_semaphore, #tpu.memory_space<semaphore_mem>>
    tpu.wait_dma2 semaphore(%66 : memref<!tpu.dma_semaphore, #tpu.memory_space<semaphore_mem>>) src(%62 : memref<3x128x128xbf16, #tpu.memory_space<any>>) dst(%64 : memref<3x128x128xbf16, #tpu.memory_space<vmem>>)
    %c1_i32_31 = arith.constant 1 : i32
    %c1_i32_32 = arith.constant 1 : i32
    %c1_i32_33 = arith.constant 1 : i32
    %c0_i32_34 = arith.constant 0 : i32
    %c0_i32_35 = arith.constant 0 : i32
    %c0_i32_36 = arith.constant 0 : i32
    %67 = tpu.memref_slice %arg4[%c1_i32_31, %c0_i32_34, %c0_i32_35, %c0_i32_36] : memref<9x3x128x128xbf16, #tpu.memory_space<any>> -> memref<1x3x128x128xbf16, #tpu.memory_space<any>>
    %68 = tpu.memref_squeeze %67 : memref<1x3x128x128xbf16, #tpu.memory_space<any>> -> memref<3x128x128xbf16, #tpu.memory_space<any>>
    %c0_i32_37 = arith.constant 0 : i32
    %c0_i32_38 = arith.constant 0 : i32
    %c0_i32_39 = arith.constant 0 : i32
    %69 = tpu.memref_slice %arg6[%c1_i32_32, %c0_i32_37, %c0_i32_38, %c0_i32_39] : memref<2x3x128x128xbf16, #tpu.memory_space<vmem>> -> memref<1x3x128x128xbf16, #tpu.memory_space<vmem>>
    %70 = tpu.memref_squeeze %69 : memref<1x3x128x128xbf16, #tpu.memory_space<vmem>> -> memref<3x128x128xbf16, #tpu.memory_space<vmem>>
    %71 = tpu.memref_slice %arg7[%c1_i32_33] : memref<2x!tpu.dma_semaphore, #tpu.memory_space<semaphore_mem>> -> memref<1x!tpu.dma_semaphore, #tpu.memory_space<semaphore_mem>>
    %72 = tpu.memref_squeeze %71 : memref<1x!tpu.dma_semaphore, #tpu.memory_space<semaphore_mem>> -> memref<!tpu.dma_semaphore, #tpu.memory_space<semaphore_mem>>
    tpu.enqueue_dma source(%68 : memref<3x128x128xbf16, #tpu.memory_space<any>>) target(%70 : memref<3x128x128xbf16, #tpu.memory_space<vmem>>) target_semaphore(%72 : memref<!tpu.dma_semaphore, #tpu.memory_space<semaphore_mem>>)
    %73 = arith.truncf %60 : vector<32x128xf32> to vector<32x128xbf16>
    %c0_40 = arith.constant 0 : index
    %c1 = arith.constant 1 : index
    %c0_41 = arith.constant 0 : index
    %c0_42 = arith.constant 0 : index
    %74 = vector.load %arg6[%c0_40, %c1, %c0_41, %c0_42] : memref<2x3x128x128xbf16, #tpu.memory_space<vmem>>, vector<1x1x128x128xbf16>
    %75 = vector.shape_cast %74 : vector<1x1x128x128xbf16> to vector<128x128xbf16>
    %cst_43 = arith.constant dense<0.000000e+00> : vector<32x128xf32>
    %76 = tpu.matmul %73, %75, %cst_43 {dimension_numbers = #tpu.dot_dimension_numbers<[1], [0], [0], [1], [0, 0, 1, 1], [], []>} : vector<32x128xbf16>, vector<128x128xbf16>, vector<32x128xf32> -> vector<32x128xf32>
    %c1_i32_44 = arith.constant 1 : i32
    %77 = tpu.dynamic_rotate %60 by %c1_i32_44 dim 0 : vector<32x128xf32>, i32 -> vector<32x128xf32>
    %c-1_i32 = arith.constant -1 : i32
    %78 = vector.broadcast %c-1_i32 : i32 to vector<32x1xi32>
    %79 = arith.addi %22, %78 : vector<32x1xi32>
    %c0_i32_45 = arith.constant 0 : i32
    %80 = vector.broadcast %c0_i32_45 : i32 to vector<32x1xi32>
    %81 = arith.cmpi sge, %79, %80 : vector<32x1xi32>
    %c16_i32_46 = arith.constant 16 : i32
    %82 = vector.broadcast %c16_i32_46 : i32 to vector<32x1xi32>
    %83 = arith.cmpi slt, %79, %82 : vector<32x1xi32>
    %84 = arith.andi %81, %83 : vector<32x1xi1>
    %cst_47 = arith.constant 0.000000e+00 : f32
    %85 = vector.shape_cast %84 : vector<32x1xi1> to vector<32x1xi1>
    %86 = vector.broadcast %85 : vector<32x1xi1> to vector<32x128xi1>
    %87 = vector.broadcast %cst_47 : f32 to vector<32x128xf32>
    %88 = arith.select %86, %77, %87 : vector<32x128xi1>, vector<32x128xf32>
    %89 = arith.truncf %88 : vector<32x128xf32> to vector<32x128xbf16>
    %c0_48 = arith.constant 0 : index
    %c0_49 = arith.constant 0 : index
    %c0_50 = arith.constant 0 : index
    %c0_51 = arith.constant 0 : index
    %90 = vector.load %arg6[%c0_48, %c0_49, %c0_50, %c0_51] : memref<2x3x128x128xbf16, #tpu.memory_space<vmem>>, vector<1x1x128x128xbf16>
    %91 = vector.shape_cast %90 : vector<1x1x128x128xbf16> to vector<128x128xbf16>
    %cst_52 = arith.constant dense<0.000000e+00> : vector<32x128xf32>
    %92 = tpu.matmul %89, %91, %cst_52 {dimension_numbers = #tpu.dot_dimension_numbers<[1], [0], [0], [1], [0, 0, 1, 1], [], []>} : vector<32x128xbf16>, vector<128x128xbf16>, vector<32x128xf32> -> vector<32x128xf32>
    %93 = arith.addf %76, %92 : vector<32x128xf32>
    %c31_i32 = arith.constant 31 : i32
    %94 = tpu.dynamic_rotate %60 by %c31_i32 dim 0 : vector<32x128xf32>, i32 -> vector<32x128xf32>
    %c1_i32_53 = arith.constant 1 : i32
    %95 = vector.broadcast %c1_i32_53 : i32 to vector<32x1xi32>
    %96 = arith.addi %22, %95 : vector<32x1xi32>
    %c0_i32_54 = arith.constant 0 : i32
    %97 = vector.broadcast %c0_i32_54 : i32 to vector<32x1xi32>
    %98 = arith.cmpi sge, %96, %97 : vector<32x1xi32>
    %c16_i32_55 = arith.constant 16 : i32
    %99 = vector.broadcast %c16_i32_55 : i32 to vector<32x1xi32>
    %100 = arith.cmpi slt, %96, %99 : vector<32x1xi32>
    %101 = arith.andi %98, %100 : vector<32x1xi1>
    %cst_56 = arith.constant 0.000000e+00 : f32
    %102 = vector.shape_cast %101 : vector<32x1xi1> to vector<32x1xi1>
    %103 = vector.broadcast %102 : vector<32x1xi1> to vector<32x128xi1>
    %104 = vector.broadcast %cst_56 : f32 to vector<32x128xf32>
    %105 = arith.select %103, %94, %104 : vector<32x128xi1>, vector<32x128xf32>
    %106 = arith.truncf %105 : vector<32x128xf32> to vector<32x128xbf16>
    %c0_57 = arith.constant 0 : index
    %c2 = arith.constant 2 : index
    %c0_58 = arith.constant 0 : index
    %c0_59 = arith.constant 0 : index
    %107 = vector.load %arg6[%c0_57, %c2, %c0_58, %c0_59] : memref<2x3x128x128xbf16, #tpu.memory_space<vmem>>, vector<1x1x128x128xbf16>
    %108 = vector.shape_cast %107 : vector<1x1x128x128xbf16> to vector<128x128xbf16>
    %cst_60 = arith.constant dense<0.000000e+00> : vector<32x128xf32>
    %109 = tpu.matmul %106, %108, %cst_60 {dimension_numbers = #tpu.dot_dimension_numbers<[1], [0], [0], [1], [0, 0, 1, 1], [], []>} : vector<32x128xbf16>, vector<128x128xbf16>, vector<32x128xf32> -> vector<32x128xf32>
    %110 = arith.addf %93, %109 : vector<32x128xf32>
    %c0_61 = arith.constant 0 : index
    %c0_62 = arith.constant 0 : index
    %c0_63 = arith.constant 0 : index
    %111 = vector.load %arg2[%c0_61, %c0_62, %c0_63] : memref<8x3x128xf32, #tpu.memory_space<vmem>>, vector<1x3x128xf32>
    %112 = vector.shape_cast %111 : vector<1x3x128xf32> to vector<3x128xf32>
    %113 = vector.extract_strided_slice %112 {offsets = [0, 0], sizes = [1, 128], strides = [1, 1]} : vector<3x128xf32> to vector<1x128xf32>
    %114 = vector.extract_strided_slice %112 {offsets = [1, 0], sizes = [1, 128], strides = [1, 1]} : vector<3x128xf32> to vector<1x128xf32>
    %115 = vector.extract_strided_slice %112 {offsets = [2, 0], sizes = [1, 128], strides = [1, 1]} : vector<3x128xf32> to vector<1x128xf32>
    %cst_64 = arith.constant dense<0.000000e+00> : vector<128xf32>
    %116 = vector.multi_reduction <add>, %110, %cst_64 [0] : vector<32x128xf32> to vector<128xf32>
    %117 = vector.shape_cast %116 : vector<128xf32> to vector<1x128xf32>
    %118 = arith.mulf %110, %110 : vector<32x128xf32>
    %cst_65 = arith.constant dense<0.000000e+00> : vector<128xf32>
    %119 = vector.multi_reduction <add>, %118, %cst_65 [0] : vector<32x128xf32> to vector<128xf32>
    %120 = vector.shape_cast %119 : vector<128xf32> to vector<1x128xf32>
    %c8_i32 = arith.constant 8 : i32
    %121 = tpu.dynamic_rotate %117 by %c8_i32 dim 1 : vector<1x128xf32>, i32 -> vector<1x128xf32>
    %122 = arith.addf %117, %121 : vector<1x128xf32>
    %c8_i32_66 = arith.constant 8 : i32
    %123 = tpu.dynamic_rotate %120 by %c8_i32_66 dim 1 : vector<1x128xf32>, i32 -> vector<1x128xf32>
    %124 = arith.addf %120, %123 : vector<1x128xf32>
    %c16_i32_67 = arith.constant 16 : i32
    %125 = tpu.dynamic_rotate %122 by %c16_i32_67 dim 1 : vector<1x128xf32>, i32 -> vector<1x128xf32>
    %126 = arith.addf %122, %125 : vector<1x128xf32>
    %c16_i32_68 = arith.constant 16 : i32
    %127 = tpu.dynamic_rotate %124 by %c16_i32_68 dim 1 : vector<1x128xf32>, i32 -> vector<1x128xf32>
    %128 = arith.addf %124, %127 : vector<1x128xf32>
    %c32_i32 = arith.constant 32 : i32
    %129 = tpu.dynamic_rotate %126 by %c32_i32 dim 1 : vector<1x128xf32>, i32 -> vector<1x128xf32>
    %130 = arith.addf %126, %129 : vector<1x128xf32>
    %c32_i32_69 = arith.constant 32 : i32
    %131 = tpu.dynamic_rotate %128 by %c32_i32_69 dim 1 : vector<1x128xf32>, i32 -> vector<1x128xf32>
    %132 = arith.addf %128, %131 : vector<1x128xf32>
    %c64_i32 = arith.constant 64 : i32
    %133 = tpu.dynamic_rotate %130 by %c64_i32 dim 1 : vector<1x128xf32>, i32 -> vector<1x128xf32>
    %134 = arith.addf %130, %133 : vector<1x128xf32>
    %c64_i32_70 = arith.constant 64 : i32
    %135 = tpu.dynamic_rotate %132 by %c64_i32_70 dim 1 : vector<1x128xf32>, i32 -> vector<1x128xf32>
    %136 = arith.addf %132, %135 : vector<1x128xf32>
    %cst_71 = arith.constant 0.001953125 : f32
    %137 = vector.broadcast %cst_71 : f32 to vector<1x128xf32>
    %138 = arith.mulf %134, %137 : vector<1x128xf32>
    %cst_72 = arith.constant 0.001953125 : f32
    %139 = vector.broadcast %cst_72 : f32 to vector<1x128xf32>
    %140 = arith.mulf %136, %139 : vector<1x128xf32>
    %141 = arith.mulf %138, %138 : vector<1x128xf32>
    %142 = arith.subf %140, %141 : vector<1x128xf32>
    %cst_73 = arith.constant 0.000000e+00 : f32
    %143 = vector.broadcast %cst_73 : f32 to vector<1x128xf32>
    %144 = arith.maximumf %142, %143 : vector<1x128xf32>
    %cst_74 = arith.constant 9.99999974E-6 : f32
    %145 = vector.broadcast %cst_74 : f32 to vector<1x128xf32>
    %146 = arith.addf %144, %145 : vector<1x128xf32>
    %147 = math.rsqrt %146 : vector<1x128xf32>
    %148 = arith.mulf %114, %147 : vector<1x128xf32>
    %149 = arith.addf %113, %148 : vector<1x128xf32>
    %150 = arith.mulf %114, %147 : vector<1x128xf32>
    %151 = arith.mulf %150, %138 : vector<1x128xf32>
    %152 = arith.subf %115, %151 : vector<1x128xf32>
    %153 = vector.broadcast %149 : vector<1x128xf32> to vector<32x128xf32>
    %154 = arith.mulf %110, %153 : vector<32x128xf32>
    %155 = vector.broadcast %152 : vector<1x128xf32> to vector<32x128xf32>
    %156 = arith.addf %154, %155 : vector<32x128xf32>
    %cst_75 = arith.constant 0.000000e+00 : f32
    %157 = vector.broadcast %cst_75 : f32 to vector<32x128xf32>
    %158 = arith.cmpf oge, %156, %157 : vector<32x128xf32>
    %cst_76 = arith.constant 2.000000e-01 : f32
    %159 = vector.broadcast %cst_76 : f32 to vector<32x128xf32>
    %160 = arith.mulf %159, %156 : vector<32x128xf32>
    %161 = arith.select %158, %156, %160 : vector<32x128xi1>, vector<32x128xf32>
    %c1_i32_77 = arith.constant 1 : i32
    %c1_i32_78 = arith.constant 1 : i32
    %c1_i32_79 = arith.constant 1 : i32
    %c0_i32_80 = arith.constant 0 : i32
    %c0_i32_81 = arith.constant 0 : i32
    %c0_i32_82 = arith.constant 0 : i32
    %162 = tpu.memref_slice %arg4[%c1_i32_77, %c0_i32_80, %c0_i32_81, %c0_i32_82] : memref<9x3x128x128xbf16, #tpu.memory_space<any>> -> memref<1x3x128x128xbf16, #tpu.memory_space<any>>
    %163 = tpu.memref_squeeze %162 : memref<1x3x128x128xbf16, #tpu.memory_space<any>> -> memref<3x128x128xbf16, #tpu.memory_space<any>>
    %c0_i32_83 = arith.constant 0 : i32
    %c0_i32_84 = arith.constant 0 : i32
    %c0_i32_85 = arith.constant 0 : i32
    %164 = tpu.memref_slice %arg6[%c1_i32_78, %c0_i32_83, %c0_i32_84, %c0_i32_85] : memref<2x3x128x128xbf16, #tpu.memory_space<vmem>> -> memref<1x3x128x128xbf16, #tpu.memory_space<vmem>>
    %165 = tpu.memref_squeeze %164 : memref<1x3x128x128xbf16, #tpu.memory_space<vmem>> -> memref<3x128x128xbf16, #tpu.memory_space<vmem>>
    %166 = tpu.memref_slice %arg7[%c1_i32_79] : memref<2x!tpu.dma_semaphore, #tpu.memory_space<semaphore_mem>> -> memref<1x!tpu.dma_semaphore, #tpu.memory_space<semaphore_mem>>
    %167 = tpu.memref_squeeze %166 : memref<1x!tpu.dma_semaphore, #tpu.memory_space<semaphore_mem>> -> memref<!tpu.dma_semaphore, #tpu.memory_space<semaphore_mem>>
    tpu.wait_dma2 semaphore(%167 : memref<!tpu.dma_semaphore, #tpu.memory_space<semaphore_mem>>) src(%163 : memref<3x128x128xbf16, #tpu.memory_space<any>>) dst(%165 : memref<3x128x128xbf16, #tpu.memory_space<vmem>>)
    %c2_i32 = arith.constant 2 : i32
    %c0_i32_86 = arith.constant 0 : i32
    %c0_i32_87 = arith.constant 0 : i32
    %c0_i32_88 = arith.constant 0 : i32
    %c0_i32_89 = arith.constant 0 : i32
    %c0_i32_90 = arith.constant 0 : i32
    %168 = tpu.memref_slice %arg4[%c2_i32, %c0_i32_88, %c0_i32_89, %c0_i32_90] : memref<9x3x128x128xbf16, #tpu.memory_space<any>> -> memref<1x3x128x128xbf16, #tpu.memory_space<any>>
    %169 = tpu.memref_squeeze %168 : memref<1x3x128x128xbf16, #tpu.memory_space<any>> -> memref<3x128x128xbf16, #tpu.memory_space<any>>
    %c0_i32_91 = arith.constant 0 : i32
    %c0_i32_92 = arith.constant 0 : i32
    %c0_i32_93 = arith.constant 0 : i32
    %170 = tpu.memref_slice %arg6[%c0_i32_86, %c0_i32_91, %c0_i32_92, %c0_i32_93] : memref<2x3x128x128xbf16, #tpu.memory_space<vmem>> -> memref<1x3x128x128xbf16, #tpu.memory_space<vmem>>
    %171 = tpu.memref_squeeze %170 : memref<1x3x128x128xbf16, #tpu.memory_space<vmem>> -> memref<3x128x128xbf16, #tpu.memory_space<vmem>>
    %172 = tpu.memref_slice %arg7[%c0_i32_87] : memref<2x!tpu.dma_semaphore, #tpu.memory_space<semaphore_mem>> -> memref<1x!tpu.dma_semaphore, #tpu.memory_space<semaphore_mem>>
    %173 = tpu.memref_squeeze %172 : memref<1x!tpu.dma_semaphore, #tpu.memory_space<semaphore_mem>> -> memref<!tpu.dma_semaphore, #tpu.memory_space<semaphore_mem>>
    tpu.enqueue_dma source(%169 : memref<3x128x128xbf16, #tpu.memory_space<any>>) target(%171 : memref<3x128x128xbf16, #tpu.memory_space<vmem>>) target_semaphore(%173 : memref<!tpu.dma_semaphore, #tpu.memory_space<semaphore_mem>>)
    %174 = arith.truncf %161 : vector<32x128xf32> to vector<32x128xbf16>
    %c1_94 = arith.constant 1 : index
    %c1_95 = arith.constant 1 : index
    %c0_96 = arith.constant 0 : index
    %c0_97 = arith.constant 0 : index
    %175 = vector.load %arg6[%c1_94, %c1_95, %c0_96, %c0_97] : memref<2x3x128x128xbf16, #tpu.memory_space<vmem>>, vector<1x1x128x128xbf16>
    %176 = vector.shape_cast %175 : vector<1x1x128x128xbf16> to vector<128x128xbf16>
    %cst_98 = arith.constant dense<0.000000e+00> : vector<32x128xf32>
    %177 = tpu.matmul %174, %176, %cst_98 {dimension_numbers = #tpu.dot_dimension_numbers<[1], [0], [0], [1], [0, 0, 1, 1], [], []>} : vector<32x128xbf16>, vector<128x128xbf16>, vector<32x128xf32> -> vector<32x128xf32>
    %c2_i32_99 = arith.constant 2 : i32
    %178 = tpu.dynamic_rotate %161 by %c2_i32_99 dim 0 : vector<32x128xf32>, i32 -> vector<32x128xf32>
    %c-2_i32 = arith.constant -2 : i32
    %179 = vector.broadcast %c-2_i32 : i32 to vector<32x1xi32>
    %180 = arith.addi %22, %179 : vector<32x1xi32>
    %c0_i32_100 = arith.constant 0 : i32
    %181 = vector.broadcast %c0_i32_100 : i32 to vector<32x1xi32>
    %182 = arith.cmpi sge, %180, %181 : vector<32x1xi32>
    %c16_i32_101 = arith.constant 16 : i32
    %183 = vector.broadcast %c16_i32_101 : i32 to vector<32x1xi32>
    %184 = arith.cmpi slt, %180, %183 : vector<32x1xi32>
    %185 = arith.andi %182, %184 : vector<32x1xi1>
    %cst_102 = arith.constant 0.000000e+00 : f32
    %186 = vector.shape_cast %185 : vector<32x1xi1> to vector<32x1xi1>
    %187 = vector.broadcast %186 : vector<32x1xi1> to vector<32x128xi1>
    %188 = vector.broadcast %cst_102 : f32 to vector<32x128xf32>
    %189 = arith.select %187, %178, %188 : vector<32x128xi1>, vector<32x128xf32>
    %190 = arith.truncf %189 : vector<32x128xf32> to vector<32x128xbf16>
    %c1_103 = arith.constant 1 : index
    %c0_104 = arith.constant 0 : index
    %c0_105 = arith.constant 0 : index
    %c0_106 = arith.constant 0 : index
    %191 = vector.load %arg6[%c1_103, %c0_104, %c0_105, %c0_106] : memref<2x3x128x128xbf16, #tpu.memory_space<vmem>>, vector<1x1x128x128xbf16>
    %192 = vector.shape_cast %191 : vector<1x1x128x128xbf16> to vector<128x128xbf16>
    %cst_107 = arith.constant dense<0.000000e+00> : vector<32x128xf32>
    %193 = tpu.matmul %190, %192, %cst_107 {dimension_numbers = #tpu.dot_dimension_numbers<[1], [0], [0], [1], [0, 0, 1, 1], [], []>} : vector<32x128xbf16>, vector<128x128xbf16>, vector<32x128xf32> -> vector<32x128xf32>
    %194 = arith.addf %177, %193 : vector<32x128xf32>
    %c30_i32 = arith.constant 30 : i32
    %195 = tpu.dynamic_rotate %161 by %c30_i32 dim 0 : vector<32x128xf32>, i32 -> vector<32x128xf32>
    %c2_i32_108 = arith.constant 2 : i32
    %196 = vector.broadcast %c2_i32_108 : i32 to vector<32x1xi32>
    %197 = arith.addi %22, %196 : vector<32x1xi32>
    %c0_i32_109 = arith.constant 0 : i32
    %198 = vector.broadcast %c0_i32_109 : i32 to vector<32x1xi32>
    %199 = arith.cmpi sge, %197, %198 : vector<32x1xi32>
    %c16_i32_110 = arith.constant 16 : i32
    %200 = vector.broadcast %c16_i32_110 : i32 to vector<32x1xi32>
    %201 = arith.cmpi slt, %197, %200 : vector<32x1xi32>
    %202 = arith.andi %199, %201 : vector<32x1xi1>
    %cst_111 = arith.constant 0.000000e+00 : f32
    %203 = vector.shape_cast %202 : vector<32x1xi1> to vector<32x1xi1>
    %204 = vector.broadcast %203 : vector<32x1xi1> to vector<32x128xi1>
    %205 = vector.broadcast %cst_111 : f32 to vector<32x128xf32>
    %206 = arith.select %204, %195, %205 : vector<32x128xi1>, vector<32x128xf32>
    %207 = arith.truncf %206 : vector<32x128xf32> to vector<32x128xbf16>
    %c1_112 = arith.constant 1 : index
    %c2_113 = arith.constant 2 : index
    %c0_114 = arith.constant 0 : index
    %c0_115 = arith.constant 0 : index
    %208 = vector.load %arg6[%c1_112, %c2_113, %c0_114, %c0_115] : memref<2x3x128x128xbf16, #tpu.memory_space<vmem>>, vector<1x1x128x128xbf16>
    %209 = vector.shape_cast %208 : vector<1x1x128x128xbf16> to vector<128x128xbf16>
    %cst_116 = arith.constant dense<0.000000e+00> : vector<32x128xf32>
    %210 = tpu.matmul %207, %209, %cst_116 {dimension_numbers = #tpu.dot_dimension_numbers<[1], [0], [0], [1], [0, 0, 1, 1], [], []>} : vector<32x128xbf16>, vector<128x128xbf16>, vector<32x128xf32> -> vector<32x128xf32>
    %211 = arith.addf %194, %210 : vector<32x128xf32>
    %c1_117 = arith.constant 1 : index
    %c0_118 = arith.constant 0 : index
    %c0_119 = arith.constant 0 : index
    %212 = vector.load %arg2[%c1_117, %c0_118, %c0_119] : memref<8x3x128xf32, #tpu.memory_space<vmem>>, vector<1x3x128xf32>
    %213 = vector.shape_cast %212 : vector<1x3x128xf32> to vector<3x128xf32>
    %214 = vector.extract_strided_slice %213 {offsets = [0, 0], sizes = [1, 128], strides = [1, 1]} : vector<3x128xf32> to vector<1x128xf32>
    %215 = vector.extract_strided_slice %213 {offsets = [1, 0], sizes = [1, 128], strides = [1, 1]} : vector<3x128xf32> to vector<1x128xf32>
    %216 = vector.extract_strided_slice %213 {offsets = [2, 0], sizes = [1, 128], strides = [1, 1]} : vector<3x128xf32> to vector<1x128xf32>
    %cst_120 = arith.constant dense<0.000000e+00> : vector<128xf32>
    %217 = vector.multi_reduction <add>, %211, %cst_120 [0] : vector<32x128xf32> to vector<128xf32>
    %218 = vector.shape_cast %217 : vector<128xf32> to vector<1x128xf32>
    %219 = arith.mulf %211, %211 : vector<32x128xf32>
    %cst_121 = arith.constant dense<0.000000e+00> : vector<128xf32>
    %220 = vector.multi_reduction <add>, %219, %cst_121 [0] : vector<32x128xf32> to vector<128xf32>
    %221 = vector.shape_cast %220 : vector<128xf32> to vector<1x128xf32>
    %c8_i32_122 = arith.constant 8 : i32
    %222 = tpu.dynamic_rotate %218 by %c8_i32_122 dim 1 : vector<1x128xf32>, i32 -> vector<1x128xf32>
    %223 = arith.addf %218, %222 : vector<1x128xf32>
    %c8_i32_123 = arith.constant 8 : i32
    %224 = tpu.dynamic_rotate %221 by %c8_i32_123 dim 1 : vector<1x128xf32>, i32 -> vector<1x128xf32>
    %225 = arith.addf %221, %224 : vector<1x128xf32>
    %c16_i32_124 = arith.constant 16 : i32
    %226 = tpu.dynamic_rotate %223 by %c16_i32_124 dim 1 : vector<1x128xf32>, i32 -> vector<1x128xf32>
    %227 = arith.addf %223, %226 : vector<1x128xf32>
    %c16_i32_125 = arith.constant 16 : i32
    %228 = tpu.dynamic_rotate %225 by %c16_i32_125 dim 1 : vector<1x128xf32>, i32 -> vector<1x128xf32>
    %229 = arith.addf %225, %228 : vector<1x128xf32>
    %c32_i32_126 = arith.constant 32 : i32
    %230 = tpu.dynamic_rotate %227 by %c32_i32_126 dim 1 : vector<1x128xf32>, i32 -> vector<1x128xf32>
    %231 = arith.addf %227, %230 : vector<1x128xf32>
    %c32_i32_127 = arith.constant 32 : i32
    %232 = tpu.dynamic_rotate %229 by %c32_i32_127 dim 1 : vector<1x128xf32>, i32 -> vector<1x128xf32>
    %233 = arith.addf %229, %232 : vector<1x128xf32>
    %c64_i32_128 = arith.constant 64 : i32
    %234 = tpu.dynamic_rotate %231 by %c64_i32_128 dim 1 : vector<1x128xf32>, i32 -> vector<1x128xf32>
    %235 = arith.addf %231, %234 : vector<1x128xf32>
    %c64_i32_129 = arith.constant 64 : i32
    %236 = tpu.dynamic_rotate %233 by %c64_i32_129 dim 1 : vector<1x128xf32>, i32 -> vector<1x128xf32>
    %237 = arith.addf %233, %236 : vector<1x128xf32>
    %cst_130 = arith.constant 0.001953125 : f32
    %238 = vector.broadcast %cst_130 : f32 to vector<1x128xf32>
    %239 = arith.mulf %235, %238 : vector<1x128xf32>
    %cst_131 = arith.constant 0.001953125 : f32
    %240 = vector.broadcast %cst_131 : f32 to vector<1x128xf32>
    %241 = arith.mulf %237, %240 : vector<1x128xf32>
    %242 = arith.mulf %239, %239 : vector<1x128xf32>
    %243 = arith.subf %241, %242 : vector<1x128xf32>
    %cst_132 = arith.constant 0.000000e+00 : f32
    %244 = vector.broadcast %cst_132 : f32 to vector<1x128xf32>
    %245 = arith.maximumf %243, %244 : vector<1x128xf32>
    %cst_133 = arith.constant 9.99999974E-6 : f32
    %246 = vector.broadcast %cst_133 : f32 to vector<1x128xf32>
    %247 = arith.addf %245, %246 : vector<1x128xf32>
    %248 = math.rsqrt %247 : vector<1x128xf32>
    %249 = arith.mulf %215, %248 : vector<1x128xf32>
    %250 = arith.addf %214, %249 : vector<1x128xf32>
    %251 = arith.mulf %215, %248 : vector<1x128xf32>
    %252 = arith.mulf %251, %239 : vector<1x128xf32>
    %253 = arith.subf %216, %252 : vector<1x128xf32>
    %254 = vector.broadcast %250 : vector<1x128xf32> to vector<32x128xf32>
    %255 = arith.mulf %211, %254 : vector<32x128xf32>
    %256 = vector.broadcast %253 : vector<1x128xf32> to vector<32x128xf32>
    %257 = arith.addf %255, %256 : vector<32x128xf32>
    %cst_134 = arith.constant 0.000000e+00 : f32
    %258 = vector.broadcast %cst_134 : f32 to vector<32x128xf32>
    %259 = arith.cmpf oge, %257, %258 : vector<32x128xf32>
    %cst_135 = arith.constant 2.000000e-01 : f32
    %260 = vector.broadcast %cst_135 : f32 to vector<32x128xf32>
    %261 = arith.mulf %260, %257 : vector<32x128xf32>
    %262 = arith.select %259, %257, %261 : vector<32x128xi1>, vector<32x128xf32>
    %c2_i32_136 = arith.constant 2 : i32
    %c0_i32_137 = arith.constant 0 : i32
    %c0_i32_138 = arith.constant 0 : i32
    %c0_i32_139 = arith.constant 0 : i32
    %c0_i32_140 = arith.constant 0 : i32
    %c0_i32_141 = arith.constant 0 : i32
    %263 = tpu.memref_slice %arg4[%c2_i32_136, %c0_i32_139, %c0_i32_140, %c0_i32_141] : memref<9x3x128x128xbf16, #tpu.memory_space<any>> -> memref<1x3x128x128xbf16, #tpu.memory_space<any>>
    %264 = tpu.memref_squeeze %263 : memref<1x3x128x128xbf16, #tpu.memory_space<any>> -> memref<3x128x128xbf16, #tpu.memory_space<any>>
    %c0_i32_142 = arith.constant 0 : i32
    %c0_i32_143 = arith.constant 0 : i32
    %c0_i32_144 = arith.constant 0 : i32
    %265 = tpu.memref_slice %arg6[%c0_i32_137, %c0_i32_142, %c0_i32_143, %c0_i32_144] : memref<2x3x128x128xbf16, #tpu.memory_space<vmem>> -> memref<1x3x128x128xbf16, #tpu.memory_space<vmem>>
    %266 = tpu.memref_squeeze %265 : memref<1x3x128x128xbf16, #tpu.memory_space<vmem>> -> memref<3x128x128xbf16, #tpu.memory_space<vmem>>
    %267 = tpu.memref_slice %arg7[%c0_i32_138] : memref<2x!tpu.dma_semaphore, #tpu.memory_space<semaphore_mem>> -> memref<1x!tpu.dma_semaphore, #tpu.memory_space<semaphore_mem>>
    %268 = tpu.memref_squeeze %267 : memref<1x!tpu.dma_semaphore, #tpu.memory_space<semaphore_mem>> -> memref<!tpu.dma_semaphore, #tpu.memory_space<semaphore_mem>>
    tpu.wait_dma2 semaphore(%268 : memref<!tpu.dma_semaphore, #tpu.memory_space<semaphore_mem>>) src(%264 : memref<3x128x128xbf16, #tpu.memory_space<any>>) dst(%266 : memref<3x128x128xbf16, #tpu.memory_space<vmem>>)
    %c3_i32 = arith.constant 3 : i32
    %c1_i32_145 = arith.constant 1 : i32
    %c1_i32_146 = arith.constant 1 : i32
    %c0_i32_147 = arith.constant 0 : i32
    %c0_i32_148 = arith.constant 0 : i32
    %c0_i32_149 = arith.constant 0 : i32
    %269 = tpu.memref_slice %arg4[%c3_i32, %c0_i32_147, %c0_i32_148, %c0_i32_149] : memref<9x3x128x128xbf16, #tpu.memory_space<any>> -> memref<1x3x128x128xbf16, #tpu.memory_space<any>>
    %270 = tpu.memref_squeeze %269 : memref<1x3x128x128xbf16, #tpu.memory_space<any>> -> memref<3x128x128xbf16, #tpu.memory_space<any>>
    %c0_i32_150 = arith.constant 0 : i32
    %c0_i32_151 = arith.constant 0 : i32
    %c0_i32_152 = arith.constant 0 : i32
    %271 = tpu.memref_slice %arg6[%c1_i32_145, %c0_i32_150, %c0_i32_151, %c0_i32_152] : memref<2x3x128x128xbf16, #tpu.memory_space<vmem>> -> memref<1x3x128x128xbf16, #tpu.memory_space<vmem>>
    %272 = tpu.memref_squeeze %271 : memref<1x3x128x128xbf16, #tpu.memory_space<vmem>> -> memref<3x128x128xbf16, #tpu.memory_space<vmem>>
    %273 = tpu.memref_slice %arg7[%c1_i32_146] : memref<2x!tpu.dma_semaphore, #tpu.memory_space<semaphore_mem>> -> memref<1x!tpu.dma_semaphore, #tpu.memory_space<semaphore_mem>>
    %274 = tpu.memref_squeeze %273 : memref<1x!tpu.dma_semaphore, #tpu.memory_space<semaphore_mem>> -> memref<!tpu.dma_semaphore, #tpu.memory_space<semaphore_mem>>
    tpu.enqueue_dma source(%270 : memref<3x128x128xbf16, #tpu.memory_space<any>>) target(%272 : memref<3x128x128xbf16, #tpu.memory_space<vmem>>) target_semaphore(%274 : memref<!tpu.dma_semaphore, #tpu.memory_space<semaphore_mem>>)
    %275 = arith.truncf %262 : vector<32x128xf32> to vector<32x128xbf16>
    %c0_153 = arith.constant 0 : index
    %c1_154 = arith.constant 1 : index
    %c0_155 = arith.constant 0 : index
    %c0_156 = arith.constant 0 : index
    %276 = vector.load %arg6[%c0_153, %c1_154, %c0_155, %c0_156] : memref<2x3x128x128xbf16, #tpu.memory_space<vmem>>, vector<1x1x128x128xbf16>
    %277 = vector.shape_cast %276 : vector<1x1x128x128xbf16> to vector<128x128xbf16>
    %cst_157 = arith.constant dense<0.000000e+00> : vector<32x128xf32>
    %278 = tpu.matmul %275, %277, %cst_157 {dimension_numbers = #tpu.dot_dimension_numbers<[1], [0], [0], [1], [0, 0, 1, 1], [], []>} : vector<32x128xbf16>, vector<128x128xbf16>, vector<32x128xf32> -> vector<32x128xf32>
    %c3_i32_158 = arith.constant 3 : i32
    %279 = tpu.dynamic_rotate %262 by %c3_i32_158 dim 0 : vector<32x128xf32>, i32 -> vector<32x128xf32>
    %c-3_i32 = arith.constant -3 : i32
    %280 = vector.broadcast %c-3_i32 : i32 to vector<32x1xi32>
    %281 = arith.addi %22, %280 : vector<32x1xi32>
    %c0_i32_159 = arith.constant 0 : i32
    %282 = vector.broadcast %c0_i32_159 : i32 to vector<32x1xi32>
    %283 = arith.cmpi sge, %281, %282 : vector<32x1xi32>
    %c16_i32_160 = arith.constant 16 : i32
    %284 = vector.broadcast %c16_i32_160 : i32 to vector<32x1xi32>
    %285 = arith.cmpi slt, %281, %284 : vector<32x1xi32>
    %286 = arith.andi %283, %285 : vector<32x1xi1>
    %cst_161 = arith.constant 0.000000e+00 : f32
    %287 = vector.shape_cast %286 : vector<32x1xi1> to vector<32x1xi1>
    %288 = vector.broadcast %287 : vector<32x1xi1> to vector<32x128xi1>
    %289 = vector.broadcast %cst_161 : f32 to vector<32x128xf32>
    %290 = arith.select %288, %279, %289 : vector<32x128xi1>, vector<32x128xf32>
    %291 = arith.truncf %290 : vector<32x128xf32> to vector<32x128xbf16>
    %c0_162 = arith.constant 0 : index
    %c0_163 = arith.constant 0 : index
    %c0_164 = arith.constant 0 : index
    %c0_165 = arith.constant 0 : index
    %292 = vector.load %arg6[%c0_162, %c0_163, %c0_164, %c0_165] : memref<2x3x128x128xbf16, #tpu.memory_space<vmem>>, vector<1x1x128x128xbf16>
    %293 = vector.shape_cast %292 : vector<1x1x128x128xbf16> to vector<128x128xbf16>
    %cst_166 = arith.constant dense<0.000000e+00> : vector<32x128xf32>
    %294 = tpu.matmul %291, %293, %cst_166 {dimension_numbers = #tpu.dot_dimension_numbers<[1], [0], [0], [1], [0, 0, 1, 1], [], []>} : vector<32x128xbf16>, vector<128x128xbf16>, vector<32x128xf32> -> vector<32x128xf32>
    %295 = arith.addf %278, %294 : vector<32x128xf32>
    %c29_i32 = arith.constant 29 : i32
    %296 = tpu.dynamic_rotate %262 by %c29_i32 dim 0 : vector<32x128xf32>, i32 -> vector<32x128xf32>
    %c3_i32_167 = arith.constant 3 : i32
    %297 = vector.broadcast %c3_i32_167 : i32 to vector<32x1xi32>
    %298 = arith.addi %22, %297 : vector<32x1xi32>
    %c0_i32_168 = arith.constant 0 : i32
    %299 = vector.broadcast %c0_i32_168 : i32 to vector<32x1xi32>
    %300 = arith.cmpi sge, %298, %299 : vector<32x1xi32>
    %c16_i32_169 = arith.constant 16 : i32
    %301 = vector.broadcast %c16_i32_169 : i32 to vector<32x1xi32>
    %302 = arith.cmpi slt, %298, %301 : vector<32x1xi32>
    %303 = arith.andi %300, %302 : vector<32x1xi1>
    %cst_170 = arith.constant 0.000000e+00 : f32
    %304 = vector.shape_cast %303 : vector<32x1xi1> to vector<32x1xi1>
    %305 = vector.broadcast %304 : vector<32x1xi1> to vector<32x128xi1>
    %306 = vector.broadcast %cst_170 : f32 to vector<32x128xf32>
    %307 = arith.select %305, %296, %306 : vector<32x128xi1>, vector<32x128xf32>
    %308 = arith.truncf %307 : vector<32x128xf32> to vector<32x128xbf16>
    %c0_171 = arith.constant 0 : index
    %c2_172 = arith.constant 2 : index
    %c0_173 = arith.constant 0 : index
    %c0_174 = arith.constant 0 : index
    %309 = vector.load %arg6[%c0_171, %c2_172, %c0_173, %c0_174] : memref<2x3x128x128xbf16, #tpu.memory_space<vmem>>, vector<1x1x128x128xbf16>
    %310 = vector.shape_cast %309 : vector<1x1x128x128xbf16> to vector<128x128xbf16>
    %cst_175 = arith.constant dense<0.000000e+00> : vector<32x128xf32>
    %311 = tpu.matmul %308, %310, %cst_175 {dimension_numbers = #tpu.dot_dimension_numbers<[1], [0], [0], [1], [0, 0, 1, 1], [], []>} : vector<32x128xbf16>, vector<128x128xbf16>, vector<32x128xf32> -> vector<32x128xf32>
    %312 = arith.addf %295, %311 : vector<32x128xf32>
    %c2_176 = arith.constant 2 : index
    %c0_177 = arith.constant 0 : index
    %c0_178 = arith.constant 0 : index
    %313 = vector.load %arg2[%c2_176, %c0_177, %c0_178] : memref<8x3x128xf32, #tpu.memory_space<vmem>>, vector<1x3x128xf32>
    %314 = vector.shape_cast %313 : vector<1x3x128xf32> to vector<3x128xf32>
    %315 = vector.extract_strided_slice %314 {offsets = [0, 0], sizes = [1, 128], strides = [1, 1]} : vector<3x128xf32> to vector<1x128xf32>
    %316 = vector.extract_strided_slice %314 {offsets = [1, 0], sizes = [1, 128], strides = [1, 1]} : vector<3x128xf32> to vector<1x128xf32>
    %317 = vector.extract_strided_slice %314 {offsets = [2, 0], sizes = [1, 128], strides = [1, 1]} : vector<3x128xf32> to vector<1x128xf32>
    %cst_179 = arith.constant dense<0.000000e+00> : vector<128xf32>
    %318 = vector.multi_reduction <add>, %312, %cst_179 [0] : vector<32x128xf32> to vector<128xf32>
    %319 = vector.shape_cast %318 : vector<128xf32> to vector<1x128xf32>
    %320 = arith.mulf %312, %312 : vector<32x128xf32>
    %cst_180 = arith.constant dense<0.000000e+00> : vector<128xf32>
    %321 = vector.multi_reduction <add>, %320, %cst_180 [0] : vector<32x128xf32> to vector<128xf32>
    %322 = vector.shape_cast %321 : vector<128xf32> to vector<1x128xf32>
    %c8_i32_181 = arith.constant 8 : i32
    %323 = tpu.dynamic_rotate %319 by %c8_i32_181 dim 1 : vector<1x128xf32>, i32 -> vector<1x128xf32>
    %324 = arith.addf %319, %323 : vector<1x128xf32>
    %c8_i32_182 = arith.constant 8 : i32
    %325 = tpu.dynamic_rotate %322 by %c8_i32_182 dim 1 : vector<1x128xf32>, i32 -> vector<1x128xf32>
    %326 = arith.addf %322, %325 : vector<1x128xf32>
    %c16_i32_183 = arith.constant 16 : i32
    %327 = tpu.dynamic_rotate %324 by %c16_i32_183 dim 1 : vector<1x128xf32>, i32 -> vector<1x128xf32>
    %328 = arith.addf %324, %327 : vector<1x128xf32>
    %c16_i32_184 = arith.constant 16 : i32
    %329 = tpu.dynamic_rotate %326 by %c16_i32_184 dim 1 : vector<1x128xf32>, i32 -> vector<1x128xf32>
    %330 = arith.addf %326, %329 : vector<1x128xf32>
    %c32_i32_185 = arith.constant 32 : i32
    %331 = tpu.dynamic_rotate %328 by %c32_i32_185 dim 1 : vector<1x128xf32>, i32 -> vector<1x128xf32>
    %332 = arith.addf %328, %331 : vector<1x128xf32>
    %c32_i32_186 = arith.constant 32 : i32
    %333 = tpu.dynamic_rotate %330 by %c32_i32_186 dim 1 : vector<1x128xf32>, i32 -> vector<1x128xf32>
    %334 = arith.addf %330, %333 : vector<1x128xf32>
    %c64_i32_187 = arith.constant 64 : i32
    %335 = tpu.dynamic_rotate %332 by %c64_i32_187 dim 1 : vector<1x128xf32>, i32 -> vector<1x128xf32>
    %336 = arith.addf %332, %335 : vector<1x128xf32>
    %c64_i32_188 = arith.constant 64 : i32
    %337 = tpu.dynamic_rotate %334 by %c64_i32_188 dim 1 : vector<1x128xf32>, i32 -> vector<1x128xf32>
    %338 = arith.addf %334, %337 : vector<1x128xf32>
    %cst_189 = arith.constant 0.001953125 : f32
    %339 = vector.broadcast %cst_189 : f32 to vector<1x128xf32>
    %340 = arith.mulf %336, %339 : vector<1x128xf32>
    %cst_190 = arith.constant 0.001953125 : f32
    %341 = vector.broadcast %cst_190 : f32 to vector<1x128xf32>
    %342 = arith.mulf %338, %341 : vector<1x128xf32>
    %343 = arith.mulf %340, %340 : vector<1x128xf32>
    %344 = arith.subf %342, %343 : vector<1x128xf32>
    %cst_191 = arith.constant 0.000000e+00 : f32
    %345 = vector.broadcast %cst_191 : f32 to vector<1x128xf32>
    %346 = arith.maximumf %344, %345 : vector<1x128xf32>
    %cst_192 = arith.constant 9.99999974E-6 : f32
    %347 = vector.broadcast %cst_192 : f32 to vector<1x128xf32>
    %348 = arith.addf %346, %347 : vector<1x128xf32>
    %349 = math.rsqrt %348 : vector<1x128xf32>
    %350 = arith.mulf %316, %349 : vector<1x128xf32>
    %351 = arith.addf %315, %350 : vector<1x128xf32>
    %352 = arith.mulf %316, %349 : vector<1x128xf32>
    %353 = arith.mulf %352, %340 : vector<1x128xf32>
    %354 = arith.subf %317, %353 : vector<1x128xf32>
    %355 = vector.broadcast %351 : vector<1x128xf32> to vector<32x128xf32>
    %356 = arith.mulf %312, %355 : vector<32x128xf32>
    %357 = vector.broadcast %354 : vector<1x128xf32> to vector<32x128xf32>
    %358 = arith.addf %356, %357 : vector<32x128xf32>
    %359 = arith.addf %161, %358 : vector<32x128xf32>
    %cst_193 = arith.constant 0.000000e+00 : f32
    %360 = vector.broadcast %cst_193 : f32 to vector<32x128xf32>
    %361 = arith.cmpf oge, %359, %360 : vector<32x128xf32>
    %cst_194 = arith.constant 2.000000e-01 : f32
    %362 = vector.broadcast %cst_194 : f32 to vector<32x128xf32>
    %363 = arith.mulf %362, %359 : vector<32x128xf32>
    %364 = arith.select %361, %359, %363 : vector<32x128xi1>, vector<32x128xf32>
    %c3_i32_195 = arith.constant 3 : i32
    %c1_i32_196 = arith.constant 1 : i32
    %c1_i32_197 = arith.constant 1 : i32
    %c0_i32_198 = arith.constant 0 : i32
    %c0_i32_199 = arith.constant 0 : i32
    %c0_i32_200 = arith.constant 0 : i32
    %365 = tpu.memref_slice %arg4[%c3_i32_195, %c0_i32_198, %c0_i32_199, %c0_i32_200] : memref<9x3x128x128xbf16, #tpu.memory_space<any>> -> memref<1x3x128x128xbf16, #tpu.memory_space<any>>
    %366 = tpu.memref_squeeze %365 : memref<1x3x128x128xbf16, #tpu.memory_space<any>> -> memref<3x128x128xbf16, #tpu.memory_space<any>>
    %c0_i32_201 = arith.constant 0 : i32
    %c0_i32_202 = arith.constant 0 : i32
    %c0_i32_203 = arith.constant 0 : i32
    %367 = tpu.memref_slice %arg6[%c1_i32_196, %c0_i32_201, %c0_i32_202, %c0_i32_203] : memref<2x3x128x128xbf16, #tpu.memory_space<vmem>> -> memref<1x3x128x128xbf16, #tpu.memory_space<vmem>>
    %368 = tpu.memref_squeeze %367 : memref<1x3x128x128xbf16, #tpu.memory_space<vmem>> -> memref<3x128x128xbf16, #tpu.memory_space<vmem>>
    %369 = tpu.memref_slice %arg7[%c1_i32_197] : memref<2x!tpu.dma_semaphore, #tpu.memory_space<semaphore_mem>> -> memref<1x!tpu.dma_semaphore, #tpu.memory_space<semaphore_mem>>
    %370 = tpu.memref_squeeze %369 : memref<1x!tpu.dma_semaphore, #tpu.memory_space<semaphore_mem>> -> memref<!tpu.dma_semaphore, #tpu.memory_space<semaphore_mem>>
    tpu.wait_dma2 semaphore(%370 : memref<!tpu.dma_semaphore, #tpu.memory_space<semaphore_mem>>) src(%366 : memref<3x128x128xbf16, #tpu.memory_space<any>>) dst(%368 : memref<3x128x128xbf16, #tpu.memory_space<vmem>>)
    %c4_i32 = arith.constant 4 : i32
    %c0_i32_204 = arith.constant 0 : i32
    %c0_i32_205 = arith.constant 0 : i32
    %c0_i32_206 = arith.constant 0 : i32
    %c0_i32_207 = arith.constant 0 : i32
    %c0_i32_208 = arith.constant 0 : i32
    %371 = tpu.memref_slice %arg4[%c4_i32, %c0_i32_206, %c0_i32_207, %c0_i32_208] : memref<9x3x128x128xbf16, #tpu.memory_space<any>> -> memref<1x3x128x128xbf16, #tpu.memory_space<any>>
    %372 = tpu.memref_squeeze %371 : memref<1x3x128x128xbf16, #tpu.memory_space<any>> -> memref<3x128x128xbf16, #tpu.memory_space<any>>
    %c0_i32_209 = arith.constant 0 : i32
    %c0_i32_210 = arith.constant 0 : i32
    %c0_i32_211 = arith.constant 0 : i32
    %373 = tpu.memref_slice %arg6[%c0_i32_204, %c0_i32_209, %c0_i32_210, %c0_i32_211] : memref<2x3x128x128xbf16, #tpu.memory_space<vmem>> -> memref<1x3x128x128xbf16, #tpu.memory_space<vmem>>
    %374 = tpu.memref_squeeze %373 : memref<1x3x128x128xbf16, #tpu.memory_space<vmem>> -> memref<3x128x128xbf16, #tpu.memory_space<vmem>>
    %375 = tpu.memref_slice %arg7[%c0_i32_205] : memref<2x!tpu.dma_semaphore, #tpu.memory_space<semaphore_mem>> -> memref<1x!tpu.dma_semaphore, #tpu.memory_space<semaphore_mem>>
    %376 = tpu.memref_squeeze %375 : memref<1x!tpu.dma_semaphore, #tpu.memory_space<semaphore_mem>> -> memref<!tpu.dma_semaphore, #tpu.memory_space<semaphore_mem>>
    tpu.enqueue_dma source(%372 : memref<3x128x128xbf16, #tpu.memory_space<any>>) target(%374 : memref<3x128x128xbf16, #tpu.memory_space<vmem>>) target_semaphore(%376 : memref<!tpu.dma_semaphore, #tpu.memory_space<semaphore_mem>>)
    %377 = arith.truncf %364 : vector<32x128xf32> to vector<32x128xbf16>
    %c1_212 = arith.constant 1 : index
    %c1_213 = arith.constant 1 : index
    %c0_214 = arith.constant 0 : index
    %c0_215 = arith.constant 0 : index
    %378 = vector.load %arg6[%c1_212, %c1_213, %c0_214, %c0_215] : memref<2x3x128x128xbf16, #tpu.memory_space<vmem>>, vector<1x1x128x128xbf16>
    %379 = vector.shape_cast %378 : vector<1x1x128x128xbf16> to vector<128x128xbf16>
    %cst_216 = arith.constant dense<0.000000e+00> : vector<32x128xf32>
    %380 = tpu.matmul %377, %379, %cst_216 {dimension_numbers = #tpu.dot_dimension_numbers<[1], [0], [0], [1], [0, 0, 1, 1], [], []>} : vector<32x128xbf16>, vector<128x128xbf16>, vector<32x128xf32> -> vector<32x128xf32>
    %c4_i32_217 = arith.constant 4 : i32
    %381 = tpu.dynamic_rotate %364 by %c4_i32_217 dim 0 : vector<32x128xf32>, i32 -> vector<32x128xf32>
    %c-4_i32 = arith.constant -4 : i32
    %382 = vector.broadcast %c-4_i32 : i32 to vector<32x1xi32>
    %383 = arith.addi %22, %382 : vector<32x1xi32>
    %c0_i32_218 = arith.constant 0 : i32
    %384 = vector.broadcast %c0_i32_218 : i32 to vector<32x1xi32>
    %385 = arith.cmpi sge, %383, %384 : vector<32x1xi32>
    %c16_i32_219 = arith.constant 16 : i32
    %386 = vector.broadcast %c16_i32_219 : i32 to vector<32x1xi32>
    %387 = arith.cmpi slt, %383, %386 : vector<32x1xi32>
    %388 = arith.andi %385, %387 : vector<32x1xi1>
    %cst_220 = arith.constant 0.000000e+00 : f32
    %389 = vector.shape_cast %388 : vector<32x1xi1> to vector<32x1xi1>
    %390 = vector.broadcast %389 : vector<32x1xi1> to vector<32x128xi1>
    %391 = vector.broadcast %cst_220 : f32 to vector<32x128xf32>
    %392 = arith.select %390, %381, %391 : vector<32x128xi1>, vector<32x128xf32>
    %393 = arith.truncf %392 : vector<32x128xf32> to vector<32x128xbf16>
    %c1_221 = arith.constant 1 : index
    %c0_222 = arith.constant 0 : index
    %c0_223 = arith.constant 0 : index
    %c0_224 = arith.constant 0 : index
    %394 = vector.load %arg6[%c1_221, %c0_222, %c0_223, %c0_224] : memref<2x3x128x128xbf16, #tpu.memory_space<vmem>>, vector<1x1x128x128xbf16>
    %395 = vector.shape_cast %394 : vector<1x1x128x128xbf16> to vector<128x128xbf16>
    %cst_225 = arith.constant dense<0.000000e+00> : vector<32x128xf32>
    %396 = tpu.matmul %393, %395, %cst_225 {dimension_numbers = #tpu.dot_dimension_numbers<[1], [0], [0], [1], [0, 0, 1, 1], [], []>} : vector<32x128xbf16>, vector<128x128xbf16>, vector<32x128xf32> -> vector<32x128xf32>
    %397 = arith.addf %380, %396 : vector<32x128xf32>
    %c28_i32 = arith.constant 28 : i32
    %398 = tpu.dynamic_rotate %364 by %c28_i32 dim 0 : vector<32x128xf32>, i32 -> vector<32x128xf32>
    %c4_i32_226 = arith.constant 4 : i32
    %399 = vector.broadcast %c4_i32_226 : i32 to vector<32x1xi32>
    %400 = arith.addi %22, %399 : vector<32x1xi32>
    %c0_i32_227 = arith.constant 0 : i32
    %401 = vector.broadcast %c0_i32_227 : i32 to vector<32x1xi32>
    %402 = arith.cmpi sge, %400, %401 : vector<32x1xi32>
    %c16_i32_228 = arith.constant 16 : i32
    %403 = vector.broadcast %c16_i32_228 : i32 to vector<32x1xi32>
    %404 = arith.cmpi slt, %400, %403 : vector<32x1xi32>
    %405 = arith.andi %402, %404 : vector<32x1xi1>
    %cst_229 = arith.constant 0.000000e+00 : f32
    %406 = vector.shape_cast %405 : vector<32x1xi1> to vector<32x1xi1>
    %407 = vector.broadcast %406 : vector<32x1xi1> to vector<32x128xi1>
    %408 = vector.broadcast %cst_229 : f32 to vector<32x128xf32>
    %409 = arith.select %407, %398, %408 : vector<32x128xi1>, vector<32x128xf32>
    %410 = arith.truncf %409 : vector<32x128xf32> to vector<32x128xbf16>
    %c1_230 = arith.constant 1 : index
    %c2_231 = arith.constant 2 : index
    %c0_232 = arith.constant 0 : index
    %c0_233 = arith.constant 0 : index
    %411 = vector.load %arg6[%c1_230, %c2_231, %c0_232, %c0_233] : memref<2x3x128x128xbf16, #tpu.memory_space<vmem>>, vector<1x1x128x128xbf16>
    %412 = vector.shape_cast %411 : vector<1x1x128x128xbf16> to vector<128x128xbf16>
    %cst_234 = arith.constant dense<0.000000e+00> : vector<32x128xf32>
    %413 = tpu.matmul %410, %412, %cst_234 {dimension_numbers = #tpu.dot_dimension_numbers<[1], [0], [0], [1], [0, 0, 1, 1], [], []>} : vector<32x128xbf16>, vector<128x128xbf16>, vector<32x128xf32> -> vector<32x128xf32>
    %414 = arith.addf %397, %413 : vector<32x128xf32>
    %c3 = arith.constant 3 : index
    %c0_235 = arith.constant 0 : index
    %c0_236 = arith.constant 0 : index
    %415 = vector.load %arg2[%c3, %c0_235, %c0_236] : memref<8x3x128xf32, #tpu.memory_space<vmem>>, vector<1x3x128xf32>
    %416 = vector.shape_cast %415 : vector<1x3x128xf32> to vector<3x128xf32>
    %417 = vector.extract_strided_slice %416 {offsets = [0, 0], sizes = [1, 128], strides = [1, 1]} : vector<3x128xf32> to vector<1x128xf32>
    %418 = vector.extract_strided_slice %416 {offsets = [1, 0], sizes = [1, 128], strides = [1, 1]} : vector<3x128xf32> to vector<1x128xf32>
    %419 = vector.extract_strided_slice %416 {offsets = [2, 0], sizes = [1, 128], strides = [1, 1]} : vector<3x128xf32> to vector<1x128xf32>
    %cst_237 = arith.constant dense<0.000000e+00> : vector<128xf32>
    %420 = vector.multi_reduction <add>, %414, %cst_237 [0] : vector<32x128xf32> to vector<128xf32>
    %421 = vector.shape_cast %420 : vector<128xf32> to vector<1x128xf32>
    %422 = arith.mulf %414, %414 : vector<32x128xf32>
    %cst_238 = arith.constant dense<0.000000e+00> : vector<128xf32>
    %423 = vector.multi_reduction <add>, %422, %cst_238 [0] : vector<32x128xf32> to vector<128xf32>
    %424 = vector.shape_cast %423 : vector<128xf32> to vector<1x128xf32>
    %c8_i32_239 = arith.constant 8 : i32
    %425 = tpu.dynamic_rotate %421 by %c8_i32_239 dim 1 : vector<1x128xf32>, i32 -> vector<1x128xf32>
    %426 = arith.addf %421, %425 : vector<1x128xf32>
    %c8_i32_240 = arith.constant 8 : i32
    %427 = tpu.dynamic_rotate %424 by %c8_i32_240 dim 1 : vector<1x128xf32>, i32 -> vector<1x128xf32>
    %428 = arith.addf %424, %427 : vector<1x128xf32>
    %c16_i32_241 = arith.constant 16 : i32
    %429 = tpu.dynamic_rotate %426 by %c16_i32_241 dim 1 : vector<1x128xf32>, i32 -> vector<1x128xf32>
    %430 = arith.addf %426, %429 : vector<1x128xf32>
    %c16_i32_242 = arith.constant 16 : i32
    %431 = tpu.dynamic_rotate %428 by %c16_i32_242 dim 1 : vector<1x128xf32>, i32 -> vector<1x128xf32>
    %432 = arith.addf %428, %431 : vector<1x128xf32>
    %c32_i32_243 = arith.constant 32 : i32
    %433 = tpu.dynamic_rotate %430 by %c32_i32_243 dim 1 : vector<1x128xf32>, i32 -> vector<1x128xf32>
    %434 = arith.addf %430, %433 : vector<1x128xf32>
    %c32_i32_244 = arith.constant 32 : i32
    %435 = tpu.dynamic_rotate %432 by %c32_i32_244 dim 1 : vector<1x128xf32>, i32 -> vector<1x128xf32>
    %436 = arith.addf %432, %435 : vector<1x128xf32>
    %c64_i32_245 = arith.constant 64 : i32
    %437 = tpu.dynamic_rotate %434 by %c64_i32_245 dim 1 : vector<1x128xf32>, i32 -> vector<1x128xf32>
    %438 = arith.addf %434, %437 : vector<1x128xf32>
    %c64_i32_246 = arith.constant 64 : i32
    %439 = tpu.dynamic_rotate %436 by %c64_i32_246 dim 1 : vector<1x128xf32>, i32 -> vector<1x128xf32>
    %440 = arith.addf %436, %439 : vector<1x128xf32>
    %cst_247 = arith.constant 0.001953125 : f32
    %441 = vector.broadcast %cst_247 : f32 to vector<1x128xf32>
    %442 = arith.mulf %438, %441 : vector<1x128xf32>
    %cst_248 = arith.constant 0.001953125 : f32
    %443 = vector.broadcast %cst_248 : f32 to vector<1x128xf32>
    %444 = arith.mulf %440, %443 : vector<1x128xf32>
    %445 = arith.mulf %442, %442 : vector<1x128xf32>
    %446 = arith.subf %444, %445 : vector<1x128xf32>
    %cst_249 = arith.constant 0.000000e+00 : f32
    %447 = vector.broadcast %cst_249 : f32 to vector<1x128xf32>
    %448 = arith.maximumf %446, %447 : vector<1x128xf32>
    %cst_250 = arith.constant 9.99999974E-6 : f32
    %449 = vector.broadcast %cst_250 : f32 to vector<1x128xf32>
    %450 = arith.addf %448, %449 : vector<1x128xf32>
    %451 = math.rsqrt %450 : vector<1x128xf32>
    %452 = arith.mulf %418, %451 : vector<1x128xf32>
    %453 = arith.addf %417, %452 : vector<1x128xf32>
    %454 = arith.mulf %418, %451 : vector<1x128xf32>
    %455 = arith.mulf %454, %442 : vector<1x128xf32>
    %456 = arith.subf %419, %455 : vector<1x128xf32>
    %457 = vector.broadcast %453 : vector<1x128xf32> to vector<32x128xf32>
    %458 = arith.mulf %414, %457 : vector<32x128xf32>
    %459 = vector.broadcast %456 : vector<1x128xf32> to vector<32x128xf32>
    %460 = arith.addf %458, %459 : vector<32x128xf32>
    %cst_251 = arith.constant 0.000000e+00 : f32
    %461 = vector.broadcast %cst_251 : f32 to vector<32x128xf32>
    %462 = arith.cmpf oge, %460, %461 : vector<32x128xf32>
    %cst_252 = arith.constant 2.000000e-01 : f32
    %463 = vector.broadcast %cst_252 : f32 to vector<32x128xf32>
    %464 = arith.mulf %463, %460 : vector<32x128xf32>
    %465 = arith.select %462, %460, %464 : vector<32x128xi1>, vector<32x128xf32>
    %c4_i32_253 = arith.constant 4 : i32
    %c0_i32_254 = arith.constant 0 : i32
    %c0_i32_255 = arith.constant 0 : i32
    %c0_i32_256 = arith.constant 0 : i32
    %c0_i32_257 = arith.constant 0 : i32
    %c0_i32_258 = arith.constant 0 : i32
    %466 = tpu.memref_slice %arg4[%c4_i32_253, %c0_i32_256, %c0_i32_257, %c0_i32_258] : memref<9x3x128x128xbf16, #tpu.memory_space<any>> -> memref<1x3x128x128xbf16, #tpu.memory_space<any>>
    %467 = tpu.memref_squeeze %466 : memref<1x3x128x128xbf16, #tpu.memory_space<any>> -> memref<3x128x128xbf16, #tpu.memory_space<any>>
    %c0_i32_259 = arith.constant 0 : i32
    %c0_i32_260 = arith.constant 0 : i32
    %c0_i32_261 = arith.constant 0 : i32
    %468 = tpu.memref_slice %arg6[%c0_i32_254, %c0_i32_259, %c0_i32_260, %c0_i32_261] : memref<2x3x128x128xbf16, #tpu.memory_space<vmem>> -> memref<1x3x128x128xbf16, #tpu.memory_space<vmem>>
    %469 = tpu.memref_squeeze %468 : memref<1x3x128x128xbf16, #tpu.memory_space<vmem>> -> memref<3x128x128xbf16, #tpu.memory_space<vmem>>
    %470 = tpu.memref_slice %arg7[%c0_i32_255] : memref<2x!tpu.dma_semaphore, #tpu.memory_space<semaphore_mem>> -> memref<1x!tpu.dma_semaphore, #tpu.memory_space<semaphore_mem>>
    %471 = tpu.memref_squeeze %470 : memref<1x!tpu.dma_semaphore, #tpu.memory_space<semaphore_mem>> -> memref<!tpu.dma_semaphore, #tpu.memory_space<semaphore_mem>>
    tpu.wait_dma2 semaphore(%471 : memref<!tpu.dma_semaphore, #tpu.memory_space<semaphore_mem>>) src(%467 : memref<3x128x128xbf16, #tpu.memory_space<any>>) dst(%469 : memref<3x128x128xbf16, #tpu.memory_space<vmem>>)
    %c5_i32 = arith.constant 5 : i32
    %c1_i32_262 = arith.constant 1 : i32
    %c1_i32_263 = arith.constant 1 : i32
    %c0_i32_264 = arith.constant 0 : i32
    %c0_i32_265 = arith.constant 0 : i32
    %c0_i32_266 = arith.constant 0 : i32
    %472 = tpu.memref_slice %arg4[%c5_i32, %c0_i32_264, %c0_i32_265, %c0_i32_266] : memref<9x3x128x128xbf16, #tpu.memory_space<any>> -> memref<1x3x128x128xbf16, #tpu.memory_space<any>>
    %473 = tpu.memref_squeeze %472 : memref<1x3x128x128xbf16, #tpu.memory_space<any>> -> memref<3x128x128xbf16, #tpu.memory_space<any>>
    %c0_i32_267 = arith.constant 0 : i32
    %c0_i32_268 = arith.constant 0 : i32
    %c0_i32_269 = arith.constant 0 : i32
    %474 = tpu.memref_slice %arg6[%c1_i32_262, %c0_i32_267, %c0_i32_268, %c0_i32_269] : memref<2x3x128x128xbf16, #tpu.memory_space<vmem>> -> memref<1x3x128x128xbf16, #tpu.memory_space<vmem>>
    %475 = tpu.memref_squeeze %474 : memref<1x3x128x128xbf16, #tpu.memory_space<vmem>> -> memref<3x128x128xbf16, #tpu.memory_space<vmem>>
    %476 = tpu.memref_slice %arg7[%c1_i32_263] : memref<2x!tpu.dma_semaphore, #tpu.memory_space<semaphore_mem>> -> memref<1x!tpu.dma_semaphore, #tpu.memory_space<semaphore_mem>>
    %477 = tpu.memref_squeeze %476 : memref<1x!tpu.dma_semaphore, #tpu.memory_space<semaphore_mem>> -> memref<!tpu.dma_semaphore, #tpu.memory_space<semaphore_mem>>
    tpu.enqueue_dma source(%473 : memref<3x128x128xbf16, #tpu.memory_space<any>>) target(%475 : memref<3x128x128xbf16, #tpu.memory_space<vmem>>) target_semaphore(%477 : memref<!tpu.dma_semaphore, #tpu.memory_space<semaphore_mem>>)
    %478 = arith.truncf %465 : vector<32x128xf32> to vector<32x128xbf16>
    %c0_270 = arith.constant 0 : index
    %c1_271 = arith.constant 1 : index
    %c0_272 = arith.constant 0 : index
    %c0_273 = arith.constant 0 : index
    %479 = vector.load %arg6[%c0_270, %c1_271, %c0_272, %c0_273] : memref<2x3x128x128xbf16, #tpu.memory_space<vmem>>, vector<1x1x128x128xbf16>
    %480 = vector.shape_cast %479 : vector<1x1x128x128xbf16> to vector<128x128xbf16>
    %cst_274 = arith.constant dense<0.000000e+00> : vector<32x128xf32>
    %481 = tpu.matmul %478, %480, %cst_274 {dimension_numbers = #tpu.dot_dimension_numbers<[1], [0], [0], [1], [0, 0, 1, 1], [], []>} : vector<32x128xbf16>, vector<128x128xbf16>, vector<32x128xf32> -> vector<32x128xf32>
    %c5_i32_275 = arith.constant 5 : i32
    %482 = tpu.dynamic_rotate %465 by %c5_i32_275 dim 0 : vector<32x128xf32>, i32 -> vector<32x128xf32>
    %c-5_i32 = arith.constant -5 : i32
    %483 = vector.broadcast %c-5_i32 : i32 to vector<32x1xi32>
    %484 = arith.addi %22, %483 : vector<32x1xi32>
    %c0_i32_276 = arith.constant 0 : i32
    %485 = vector.broadcast %c0_i32_276 : i32 to vector<32x1xi32>
    %486 = arith.cmpi sge, %484, %485 : vector<32x1xi32>
    %c16_i32_277 = arith.constant 16 : i32
    %487 = vector.broadcast %c16_i32_277 : i32 to vector<32x1xi32>
    %488 = arith.cmpi slt, %484, %487 : vector<32x1xi32>
    %489 = arith.andi %486, %488 : vector<32x1xi1>
    %cst_278 = arith.constant 0.000000e+00 : f32
    %490 = vector.shape_cast %489 : vector<32x1xi1> to vector<32x1xi1>
    %491 = vector.broadcast %490 : vector<32x1xi1> to vector<32x128xi1>
    %492 = vector.broadcast %cst_278 : f32 to vector<32x128xf32>
    %493 = arith.select %491, %482, %492 : vector<32x128xi1>, vector<32x128xf32>
    %494 = arith.truncf %493 : vector<32x128xf32> to vector<32x128xbf16>
    %c0_279 = arith.constant 0 : index
    %c0_280 = arith.constant 0 : index
    %c0_281 = arith.constant 0 : index
    %c0_282 = arith.constant 0 : index
    %495 = vector.load %arg6[%c0_279, %c0_280, %c0_281, %c0_282] : memref<2x3x128x128xbf16, #tpu.memory_space<vmem>>, vector<1x1x128x128xbf16>
    %496 = vector.shape_cast %495 : vector<1x1x128x128xbf16> to vector<128x128xbf16>
    %cst_283 = arith.constant dense<0.000000e+00> : vector<32x128xf32>
    %497 = tpu.matmul %494, %496, %cst_283 {dimension_numbers = #tpu.dot_dimension_numbers<[1], [0], [0], [1], [0, 0, 1, 1], [], []>} : vector<32x128xbf16>, vector<128x128xbf16>, vector<32x128xf32> -> vector<32x128xf32>
    %498 = arith.addf %481, %497 : vector<32x128xf32>
    %c27_i32 = arith.constant 27 : i32
    %499 = tpu.dynamic_rotate %465 by %c27_i32 dim 0 : vector<32x128xf32>, i32 -> vector<32x128xf32>
    %c5_i32_284 = arith.constant 5 : i32
    %500 = vector.broadcast %c5_i32_284 : i32 to vector<32x1xi32>
    %501 = arith.addi %22, %500 : vector<32x1xi32>
    %c0_i32_285 = arith.constant 0 : i32
    %502 = vector.broadcast %c0_i32_285 : i32 to vector<32x1xi32>
    %503 = arith.cmpi sge, %501, %502 : vector<32x1xi32>
    %c16_i32_286 = arith.constant 16 : i32
    %504 = vector.broadcast %c16_i32_286 : i32 to vector<32x1xi32>
    %505 = arith.cmpi slt, %501, %504 : vector<32x1xi32>
    %506 = arith.andi %503, %505 : vector<32x1xi1>
    %cst_287 = arith.constant 0.000000e+00 : f32
    %507 = vector.shape_cast %506 : vector<32x1xi1> to vector<32x1xi1>
    %508 = vector.broadcast %507 : vector<32x1xi1> to vector<32x128xi1>
    %509 = vector.broadcast %cst_287 : f32 to vector<32x128xf32>
    %510 = arith.select %508, %499, %509 : vector<32x128xi1>, vector<32x128xf32>
    %511 = arith.truncf %510 : vector<32x128xf32> to vector<32x128xbf16>
    %c0_288 = arith.constant 0 : index
    %c2_289 = arith.constant 2 : index
    %c0_290 = arith.constant 0 : index
    %c0_291 = arith.constant 0 : index
    %512 = vector.load %arg6[%c0_288, %c2_289, %c0_290, %c0_291] : memref<2x3x128x128xbf16, #tpu.memory_space<vmem>>, vector<1x1x128x128xbf16>
    %513 = vector.shape_cast %512 : vector<1x1x128x128xbf16> to vector<128x128xbf16>
    %cst_292 = arith.constant dense<0.000000e+00> : vector<32x128xf32>
    %514 = tpu.matmul %511, %513, %cst_292 {dimension_numbers = #tpu.dot_dimension_numbers<[1], [0], [0], [1], [0, 0, 1, 1], [], []>} : vector<32x128xbf16>, vector<128x128xbf16>, vector<32x128xf32> -> vector<32x128xf32>
    %515 = arith.addf %498, %514 : vector<32x128xf32>
    %c4 = arith.constant 4 : index
    %c0_293 = arith.constant 0 : index
    %c0_294 = arith.constant 0 : index
    %516 = vector.load %arg2[%c4, %c0_293, %c0_294] : memref<8x3x128xf32, #tpu.memory_space<vmem>>, vector<1x3x128xf32>
    %517 = vector.shape_cast %516 : vector<1x3x128xf32> to vector<3x128xf32>
    %518 = vector.extract_strided_slice %517 {offsets = [0, 0], sizes = [1, 128], strides = [1, 1]} : vector<3x128xf32> to vector<1x128xf32>
    %519 = vector.extract_strided_slice %517 {offsets = [1, 0], sizes = [1, 128], strides = [1, 1]} : vector<3x128xf32> to vector<1x128xf32>
    %520 = vector.extract_strided_slice %517 {offsets = [2, 0], sizes = [1, 128], strides = [1, 1]} : vector<3x128xf32> to vector<1x128xf32>
    %cst_295 = arith.constant dense<0.000000e+00> : vector<128xf32>
    %521 = vector.multi_reduction <add>, %515, %cst_295 [0] : vector<32x128xf32> to vector<128xf32>
    %522 = vector.shape_cast %521 : vector<128xf32> to vector<1x128xf32>
    %523 = arith.mulf %515, %515 : vector<32x128xf32>
    %cst_296 = arith.constant dense<0.000000e+00> : vector<128xf32>
    %524 = vector.multi_reduction <add>, %523, %cst_296 [0] : vector<32x128xf32> to vector<128xf32>
    %525 = vector.shape_cast %524 : vector<128xf32> to vector<1x128xf32>
    %c8_i32_297 = arith.constant 8 : i32
    %526 = tpu.dynamic_rotate %522 by %c8_i32_297 dim 1 : vector<1x128xf32>, i32 -> vector<1x128xf32>
    %527 = arith.addf %522, %526 : vector<1x128xf32>
    %c8_i32_298 = arith.constant 8 : i32
    %528 = tpu.dynamic_rotate %525 by %c8_i32_298 dim 1 : vector<1x128xf32>, i32 -> vector<1x128xf32>
    %529 = arith.addf %525, %528 : vector<1x128xf32>
    %c16_i32_299 = arith.constant 16 : i32
    %530 = tpu.dynamic_rotate %527 by %c16_i32_299 dim 1 : vector<1x128xf32>, i32 -> vector<1x128xf32>
    %531 = arith.addf %527, %530 : vector<1x128xf32>
    %c16_i32_300 = arith.constant 16 : i32
    %532 = tpu.dynamic_rotate %529 by %c16_i32_300 dim 1 : vector<1x128xf32>, i32 -> vector<1x128xf32>
    %533 = arith.addf %529, %532 : vector<1x128xf32>
    %c32_i32_301 = arith.constant 32 : i32
    %534 = tpu.dynamic_rotate %531 by %c32_i32_301 dim 1 : vector<1x128xf32>, i32 -> vector<1x128xf32>
    %535 = arith.addf %531, %534 : vector<1x128xf32>
    %c32_i32_302 = arith.constant 32 : i32
    %536 = tpu.dynamic_rotate %533 by %c32_i32_302 dim 1 : vector<1x128xf32>, i32 -> vector<1x128xf32>
    %537 = arith.addf %533, %536 : vector<1x128xf32>
    %c64_i32_303 = arith.constant 64 : i32
    %538 = tpu.dynamic_rotate %535 by %c64_i32_303 dim 1 : vector<1x128xf32>, i32 -> vector<1x128xf32>
    %539 = arith.addf %535, %538 : vector<1x128xf32>
    %c64_i32_304 = arith.constant 64 : i32
    %540 = tpu.dynamic_rotate %537 by %c64_i32_304 dim 1 : vector<1x128xf32>, i32 -> vector<1x128xf32>
    %541 = arith.addf %537, %540 : vector<1x128xf32>
    %cst_305 = arith.constant 0.001953125 : f32
    %542 = vector.broadcast %cst_305 : f32 to vector<1x128xf32>
    %543 = arith.mulf %539, %542 : vector<1x128xf32>
    %cst_306 = arith.constant 0.001953125 : f32
    %544 = vector.broadcast %cst_306 : f32 to vector<1x128xf32>
    %545 = arith.mulf %541, %544 : vector<1x128xf32>
    %546 = arith.mulf %543, %543 : vector<1x128xf32>
    %547 = arith.subf %545, %546 : vector<1x128xf32>
    %cst_307 = arith.constant 0.000000e+00 : f32
    %548 = vector.broadcast %cst_307 : f32 to vector<1x128xf32>
    %549 = arith.maximumf %547, %548 : vector<1x128xf32>
    %cst_308 = arith.constant 9.99999974E-6 : f32
    %550 = vector.broadcast %cst_308 : f32 to vector<1x128xf32>
    %551 = arith.addf %549, %550 : vector<1x128xf32>
    %552 = math.rsqrt %551 : vector<1x128xf32>
    %553 = arith.mulf %519, %552 : vector<1x128xf32>
    %554 = arith.addf %518, %553 : vector<1x128xf32>
    %555 = arith.mulf %519, %552 : vector<1x128xf32>
    %556 = arith.mulf %555, %543 : vector<1x128xf32>
    %557 = arith.subf %520, %556 : vector<1x128xf32>
    %558 = vector.broadcast %554 : vector<1x128xf32> to vector<32x128xf32>
    %559 = arith.mulf %515, %558 : vector<32x128xf32>
    %560 = vector.broadcast %557 : vector<1x128xf32> to vector<32x128xf32>
    %561 = arith.addf %559, %560 : vector<32x128xf32>
    %562 = arith.addf %364, %561 : vector<32x128xf32>
    %cst_309 = arith.constant 0.000000e+00 : f32
    %563 = vector.broadcast %cst_309 : f32 to vector<32x128xf32>
    %564 = arith.cmpf oge, %562, %563 : vector<32x128xf32>
    %cst_310 = arith.constant 2.000000e-01 : f32
    %565 = vector.broadcast %cst_310 : f32 to vector<32x128xf32>
    %566 = arith.mulf %565, %562 : vector<32x128xf32>
    %567 = arith.select %564, %562, %566 : vector<32x128xi1>, vector<32x128xf32>
    %c5_i32_311 = arith.constant 5 : i32
    %c1_i32_312 = arith.constant 1 : i32
    %c1_i32_313 = arith.constant 1 : i32
    %c0_i32_314 = arith.constant 0 : i32
    %c0_i32_315 = arith.constant 0 : i32
    %c0_i32_316 = arith.constant 0 : i32
    %568 = tpu.memref_slice %arg4[%c5_i32_311, %c0_i32_314, %c0_i32_315, %c0_i32_316] : memref<9x3x128x128xbf16, #tpu.memory_space<any>> -> memref<1x3x128x128xbf16, #tpu.memory_space<any>>
    %569 = tpu.memref_squeeze %568 : memref<1x3x128x128xbf16, #tpu.memory_space<any>> -> memref<3x128x128xbf16, #tpu.memory_space<any>>
    %c0_i32_317 = arith.constant 0 : i32
    %c0_i32_318 = arith.constant 0 : i32
    %c0_i32_319 = arith.constant 0 : i32
    %570 = tpu.memref_slice %arg6[%c1_i32_312, %c0_i32_317, %c0_i32_318, %c0_i32_319] : memref<2x3x128x128xbf16, #tpu.memory_space<vmem>> -> memref<1x3x128x128xbf16, #tpu.memory_space<vmem>>
    %571 = tpu.memref_squeeze %570 : memref<1x3x128x128xbf16, #tpu.memory_space<vmem>> -> memref<3x128x128xbf16, #tpu.memory_space<vmem>>
    %572 = tpu.memref_slice %arg7[%c1_i32_313] : memref<2x!tpu.dma_semaphore, #tpu.memory_space<semaphore_mem>> -> memref<1x!tpu.dma_semaphore, #tpu.memory_space<semaphore_mem>>
    %573 = tpu.memref_squeeze %572 : memref<1x!tpu.dma_semaphore, #tpu.memory_space<semaphore_mem>> -> memref<!tpu.dma_semaphore, #tpu.memory_space<semaphore_mem>>
    tpu.wait_dma2 semaphore(%573 : memref<!tpu.dma_semaphore, #tpu.memory_space<semaphore_mem>>) src(%569 : memref<3x128x128xbf16, #tpu.memory_space<any>>) dst(%571 : memref<3x128x128xbf16, #tpu.memory_space<vmem>>)
    %c6_i32 = arith.constant 6 : i32
    %c0_i32_320 = arith.constant 0 : i32
    %c0_i32_321 = arith.constant 0 : i32
    %c0_i32_322 = arith.constant 0 : i32
    %c0_i32_323 = arith.constant 0 : i32
    %c0_i32_324 = arith.constant 0 : i32
    %574 = tpu.memref_slice %arg4[%c6_i32, %c0_i32_322, %c0_i32_323, %c0_i32_324] : memref<9x3x128x128xbf16, #tpu.memory_space<any>> -> memref<1x3x128x128xbf16, #tpu.memory_space<any>>
    %575 = tpu.memref_squeeze %574 : memref<1x3x128x128xbf16, #tpu.memory_space<any>> -> memref<3x128x128xbf16, #tpu.memory_space<any>>
    %c0_i32_325 = arith.constant 0 : i32
    %c0_i32_326 = arith.constant 0 : i32
    %c0_i32_327 = arith.constant 0 : i32
    %576 = tpu.memref_slice %arg6[%c0_i32_320, %c0_i32_325, %c0_i32_326, %c0_i32_327] : memref<2x3x128x128xbf16, #tpu.memory_space<vmem>> -> memref<1x3x128x128xbf16, #tpu.memory_space<vmem>>
    %577 = tpu.memref_squeeze %576 : memref<1x3x128x128xbf16, #tpu.memory_space<vmem>> -> memref<3x128x128xbf16, #tpu.memory_space<vmem>>
    %578 = tpu.memref_slice %arg7[%c0_i32_321] : memref<2x!tpu.dma_semaphore, #tpu.memory_space<semaphore_mem>> -> memref<1x!tpu.dma_semaphore, #tpu.memory_space<semaphore_mem>>
    %579 = tpu.memref_squeeze %578 : memref<1x!tpu.dma_semaphore, #tpu.memory_space<semaphore_mem>> -> memref<!tpu.dma_semaphore, #tpu.memory_space<semaphore_mem>>
    tpu.enqueue_dma source(%575 : memref<3x128x128xbf16, #tpu.memory_space<any>>) target(%577 : memref<3x128x128xbf16, #tpu.memory_space<vmem>>) target_semaphore(%579 : memref<!tpu.dma_semaphore, #tpu.memory_space<semaphore_mem>>)
    %580 = arith.truncf %567 : vector<32x128xf32> to vector<32x128xbf16>
    %c1_328 = arith.constant 1 : index
    %c1_329 = arith.constant 1 : index
    %c0_330 = arith.constant 0 : index
    %c0_331 = arith.constant 0 : index
    %581 = vector.load %arg6[%c1_328, %c1_329, %c0_330, %c0_331] : memref<2x3x128x128xbf16, #tpu.memory_space<vmem>>, vector<1x1x128x128xbf16>
    %582 = vector.shape_cast %581 : vector<1x1x128x128xbf16> to vector<128x128xbf16>
    %cst_332 = arith.constant dense<0.000000e+00> : vector<32x128xf32>
    %583 = tpu.matmul %580, %582, %cst_332 {dimension_numbers = #tpu.dot_dimension_numbers<[1], [0], [0], [1], [0, 0, 1, 1], [], []>} : vector<32x128xbf16>, vector<128x128xbf16>, vector<32x128xf32> -> vector<32x128xf32>
    %c6_i32_333 = arith.constant 6 : i32
    %584 = tpu.dynamic_rotate %567 by %c6_i32_333 dim 0 : vector<32x128xf32>, i32 -> vector<32x128xf32>
    %c-6_i32 = arith.constant -6 : i32
    %585 = vector.broadcast %c-6_i32 : i32 to vector<32x1xi32>
    %586 = arith.addi %22, %585 : vector<32x1xi32>
    %c0_i32_334 = arith.constant 0 : i32
    %587 = vector.broadcast %c0_i32_334 : i32 to vector<32x1xi32>
    %588 = arith.cmpi sge, %586, %587 : vector<32x1xi32>
    %c16_i32_335 = arith.constant 16 : i32
    %589 = vector.broadcast %c16_i32_335 : i32 to vector<32x1xi32>
    %590 = arith.cmpi slt, %586, %589 : vector<32x1xi32>
    %591 = arith.andi %588, %590 : vector<32x1xi1>
    %cst_336 = arith.constant 0.000000e+00 : f32
    %592 = vector.shape_cast %591 : vector<32x1xi1> to vector<32x1xi1>
    %593 = vector.broadcast %592 : vector<32x1xi1> to vector<32x128xi1>
    %594 = vector.broadcast %cst_336 : f32 to vector<32x128xf32>
    %595 = arith.select %593, %584, %594 : vector<32x128xi1>, vector<32x128xf32>
    %596 = arith.truncf %595 : vector<32x128xf32> to vector<32x128xbf16>
    %c1_337 = arith.constant 1 : index
    %c0_338 = arith.constant 0 : index
    %c0_339 = arith.constant 0 : index
    %c0_340 = arith.constant 0 : index
    %597 = vector.load %arg6[%c1_337, %c0_338, %c0_339, %c0_340] : memref<2x3x128x128xbf16, #tpu.memory_space<vmem>>, vector<1x1x128x128xbf16>
    %598 = vector.shape_cast %597 : vector<1x1x128x128xbf16> to vector<128x128xbf16>
    %cst_341 = arith.constant dense<0.000000e+00> : vector<32x128xf32>
    %599 = tpu.matmul %596, %598, %cst_341 {dimension_numbers = #tpu.dot_dimension_numbers<[1], [0], [0], [1], [0, 0, 1, 1], [], []>} : vector<32x128xbf16>, vector<128x128xbf16>, vector<32x128xf32> -> vector<32x128xf32>
    %600 = arith.addf %583, %599 : vector<32x128xf32>
    %c26_i32 = arith.constant 26 : i32
    %601 = tpu.dynamic_rotate %567 by %c26_i32 dim 0 : vector<32x128xf32>, i32 -> vector<32x128xf32>
    %c6_i32_342 = arith.constant 6 : i32
    %602 = vector.broadcast %c6_i32_342 : i32 to vector<32x1xi32>
    %603 = arith.addi %22, %602 : vector<32x1xi32>
    %c0_i32_343 = arith.constant 0 : i32
    %604 = vector.broadcast %c0_i32_343 : i32 to vector<32x1xi32>
    %605 = arith.cmpi sge, %603, %604 : vector<32x1xi32>
    %c16_i32_344 = arith.constant 16 : i32
    %606 = vector.broadcast %c16_i32_344 : i32 to vector<32x1xi32>
    %607 = arith.cmpi slt, %603, %606 : vector<32x1xi32>
    %608 = arith.andi %605, %607 : vector<32x1xi1>
    %cst_345 = arith.constant 0.000000e+00 : f32
    %609 = vector.shape_cast %608 : vector<32x1xi1> to vector<32x1xi1>
    %610 = vector.broadcast %609 : vector<32x1xi1> to vector<32x128xi1>
    %611 = vector.broadcast %cst_345 : f32 to vector<32x128xf32>
    %612 = arith.select %610, %601, %611 : vector<32x128xi1>, vector<32x128xf32>
    %613 = arith.truncf %612 : vector<32x128xf32> to vector<32x128xbf16>
    %c1_346 = arith.constant 1 : index
    %c2_347 = arith.constant 2 : index
    %c0_348 = arith.constant 0 : index
    %c0_349 = arith.constant 0 : index
    %614 = vector.load %arg6[%c1_346, %c2_347, %c0_348, %c0_349] : memref<2x3x128x128xbf16, #tpu.memory_space<vmem>>, vector<1x1x128x128xbf16>
    %615 = vector.shape_cast %614 : vector<1x1x128x128xbf16> to vector<128x128xbf16>
    %cst_350 = arith.constant dense<0.000000e+00> : vector<32x128xf32>
    %616 = tpu.matmul %613, %615, %cst_350 {dimension_numbers = #tpu.dot_dimension_numbers<[1], [0], [0], [1], [0, 0, 1, 1], [], []>} : vector<32x128xbf16>, vector<128x128xbf16>, vector<32x128xf32> -> vector<32x128xf32>
    %617 = arith.addf %600, %616 : vector<32x128xf32>
    %c5 = arith.constant 5 : index
    %c0_351 = arith.constant 0 : index
    %c0_352 = arith.constant 0 : index
    %618 = vector.load %arg2[%c5, %c0_351, %c0_352] : memref<8x3x128xf32, #tpu.memory_space<vmem>>, vector<1x3x128xf32>
    %619 = vector.shape_cast %618 : vector<1x3x128xf32> to vector<3x128xf32>
    %620 = vector.extract_strided_slice %619 {offsets = [0, 0], sizes = [1, 128], strides = [1, 1]} : vector<3x128xf32> to vector<1x128xf32>
    %621 = vector.extract_strided_slice %619 {offsets = [1, 0], sizes = [1, 128], strides = [1, 1]} : vector<3x128xf32> to vector<1x128xf32>
    %622 = vector.extract_strided_slice %619 {offsets = [2, 0], sizes = [1, 128], strides = [1, 1]} : vector<3x128xf32> to vector<1x128xf32>
    %cst_353 = arith.constant dense<0.000000e+00> : vector<128xf32>
    %623 = vector.multi_reduction <add>, %617, %cst_353 [0] : vector<32x128xf32> to vector<128xf32>
    %624 = vector.shape_cast %623 : vector<128xf32> to vector<1x128xf32>
    %625 = arith.mulf %617, %617 : vector<32x128xf32>
    %cst_354 = arith.constant dense<0.000000e+00> : vector<128xf32>
    %626 = vector.multi_reduction <add>, %625, %cst_354 [0] : vector<32x128xf32> to vector<128xf32>
    %627 = vector.shape_cast %626 : vector<128xf32> to vector<1x128xf32>
    %c8_i32_355 = arith.constant 8 : i32
    %628 = tpu.dynamic_rotate %624 by %c8_i32_355 dim 1 : vector<1x128xf32>, i32 -> vector<1x128xf32>
    %629 = arith.addf %624, %628 : vector<1x128xf32>
    %c8_i32_356 = arith.constant 8 : i32
    %630 = tpu.dynamic_rotate %627 by %c8_i32_356 dim 1 : vector<1x128xf32>, i32 -> vector<1x128xf32>
    %631 = arith.addf %627, %630 : vector<1x128xf32>
    %c16_i32_357 = arith.constant 16 : i32
    %632 = tpu.dynamic_rotate %629 by %c16_i32_357 dim 1 : vector<1x128xf32>, i32 -> vector<1x128xf32>
    %633 = arith.addf %629, %632 : vector<1x128xf32>
    %c16_i32_358 = arith.constant 16 : i32
    %634 = tpu.dynamic_rotate %631 by %c16_i32_358 dim 1 : vector<1x128xf32>, i32 -> vector<1x128xf32>
    %635 = arith.addf %631, %634 : vector<1x128xf32>
    %c32_i32_359 = arith.constant 32 : i32
    %636 = tpu.dynamic_rotate %633 by %c32_i32_359 dim 1 : vector<1x128xf32>, i32 -> vector<1x128xf32>
    %637 = arith.addf %633, %636 : vector<1x128xf32>
    %c32_i32_360 = arith.constant 32 : i32
    %638 = tpu.dynamic_rotate %635 by %c32_i32_360 dim 1 : vector<1x128xf32>, i32 -> vector<1x128xf32>
    %639 = arith.addf %635, %638 : vector<1x128xf32>
    %c64_i32_361 = arith.constant 64 : i32
    %640 = tpu.dynamic_rotate %637 by %c64_i32_361 dim 1 : vector<1x128xf32>, i32 -> vector<1x128xf32>
    %641 = arith.addf %637, %640 : vector<1x128xf32>
    %c64_i32_362 = arith.constant 64 : i32
    %642 = tpu.dynamic_rotate %639 by %c64_i32_362 dim 1 : vector<1x128xf32>, i32 -> vector<1x128xf32>
    %643 = arith.addf %639, %642 : vector<1x128xf32>
    %cst_363 = arith.constant 0.001953125 : f32
    %644 = vector.broadcast %cst_363 : f32 to vector<1x128xf32>
    %645 = arith.mulf %641, %644 : vector<1x128xf32>
    %cst_364 = arith.constant 0.001953125 : f32
    %646 = vector.broadcast %cst_364 : f32 to vector<1x128xf32>
    %647 = arith.mulf %643, %646 : vector<1x128xf32>
    %648 = arith.mulf %645, %645 : vector<1x128xf32>
    %649 = arith.subf %647, %648 : vector<1x128xf32>
    %cst_365 = arith.constant 0.000000e+00 : f32
    %650 = vector.broadcast %cst_365 : f32 to vector<1x128xf32>
    %651 = arith.maximumf %649, %650 : vector<1x128xf32>
    %cst_366 = arith.constant 9.99999974E-6 : f32
    %652 = vector.broadcast %cst_366 : f32 to vector<1x128xf32>
    %653 = arith.addf %651, %652 : vector<1x128xf32>
    %654 = math.rsqrt %653 : vector<1x128xf32>
    %655 = arith.mulf %621, %654 : vector<1x128xf32>
    %656 = arith.addf %620, %655 : vector<1x128xf32>
    %657 = arith.mulf %621, %654 : vector<1x128xf32>
    %658 = arith.mulf %657, %645 : vector<1x128xf32>
    %659 = arith.subf %622, %658 : vector<1x128xf32>
    %660 = vector.broadcast %656 : vector<1x128xf32> to vector<32x128xf32>
    %661 = arith.mulf %617, %660 : vector<32x128xf32>
    %662 = vector.broadcast %659 : vector<1x128xf32> to vector<32x128xf32>
    %663 = arith.addf %661, %662 : vector<32x128xf32>
    %cst_367 = arith.constant 0.000000e+00 : f32
    %664 = vector.broadcast %cst_367 : f32 to vector<32x128xf32>
    %665 = arith.cmpf oge, %663, %664 : vector<32x128xf32>
    %cst_368 = arith.constant 2.000000e-01 : f32
    %666 = vector.broadcast %cst_368 : f32 to vector<32x128xf32>
    %667 = arith.mulf %666, %663 : vector<32x128xf32>
    %668 = arith.select %665, %663, %667 : vector<32x128xi1>, vector<32x128xf32>
    %c6_i32_369 = arith.constant 6 : i32
    %c0_i32_370 = arith.constant 0 : i32
    %c0_i32_371 = arith.constant 0 : i32
    %c0_i32_372 = arith.constant 0 : i32
    %c0_i32_373 = arith.constant 0 : i32
    %c0_i32_374 = arith.constant 0 : i32
    %669 = tpu.memref_slice %arg4[%c6_i32_369, %c0_i32_372, %c0_i32_373, %c0_i32_374] : memref<9x3x128x128xbf16, #tpu.memory_space<any>> -> memref<1x3x128x128xbf16, #tpu.memory_space<any>>
    %670 = tpu.memref_squeeze %669 : memref<1x3x128x128xbf16, #tpu.memory_space<any>> -> memref<3x128x128xbf16, #tpu.memory_space<any>>
    %c0_i32_375 = arith.constant 0 : i32
    %c0_i32_376 = arith.constant 0 : i32
    %c0_i32_377 = arith.constant 0 : i32
    %671 = tpu.memref_slice %arg6[%c0_i32_370, %c0_i32_375, %c0_i32_376, %c0_i32_377] : memref<2x3x128x128xbf16, #tpu.memory_space<vmem>> -> memref<1x3x128x128xbf16, #tpu.memory_space<vmem>>
    %672 = tpu.memref_squeeze %671 : memref<1x3x128x128xbf16, #tpu.memory_space<vmem>> -> memref<3x128x128xbf16, #tpu.memory_space<vmem>>
    %673 = tpu.memref_slice %arg7[%c0_i32_371] : memref<2x!tpu.dma_semaphore, #tpu.memory_space<semaphore_mem>> -> memref<1x!tpu.dma_semaphore, #tpu.memory_space<semaphore_mem>>
    %674 = tpu.memref_squeeze %673 : memref<1x!tpu.dma_semaphore, #tpu.memory_space<semaphore_mem>> -> memref<!tpu.dma_semaphore, #tpu.memory_space<semaphore_mem>>
    tpu.wait_dma2 semaphore(%674 : memref<!tpu.dma_semaphore, #tpu.memory_space<semaphore_mem>>) src(%670 : memref<3x128x128xbf16, #tpu.memory_space<any>>) dst(%672 : memref<3x128x128xbf16, #tpu.memory_space<vmem>>)
    %c7_i32 = arith.constant 7 : i32
    %c1_i32_378 = arith.constant 1 : i32
    %c1_i32_379 = arith.constant 1 : i32
    %c0_i32_380 = arith.constant 0 : i32
    %c0_i32_381 = arith.constant 0 : i32
    %c0_i32_382 = arith.constant 0 : i32
    %675 = tpu.memref_slice %arg4[%c7_i32, %c0_i32_380, %c0_i32_381, %c0_i32_382] : memref<9x3x128x128xbf16, #tpu.memory_space<any>> -> memref<1x3x128x128xbf16, #tpu.memory_space<any>>
    %676 = tpu.memref_squeeze %675 : memref<1x3x128x128xbf16, #tpu.memory_space<any>> -> memref<3x128x128xbf16, #tpu.memory_space<any>>
    %c0_i32_383 = arith.constant 0 : i32
    %c0_i32_384 = arith.constant 0 : i32
    %c0_i32_385 = arith.constant 0 : i32
    %677 = tpu.memref_slice %arg6[%c1_i32_378, %c0_i32_383, %c0_i32_384, %c0_i32_385] : memref<2x3x128x128xbf16, #tpu.memory_space<vmem>> -> memref<1x3x128x128xbf16, #tpu.memory_space<vmem>>
    %678 = tpu.memref_squeeze %677 : memref<1x3x128x128xbf16, #tpu.memory_space<vmem>> -> memref<3x128x128xbf16, #tpu.memory_space<vmem>>
    %679 = tpu.memref_slice %arg7[%c1_i32_379] : memref<2x!tpu.dma_semaphore, #tpu.memory_space<semaphore_mem>> -> memref<1x!tpu.dma_semaphore, #tpu.memory_space<semaphore_mem>>
    %680 = tpu.memref_squeeze %679 : memref<1x!tpu.dma_semaphore, #tpu.memory_space<semaphore_mem>> -> memref<!tpu.dma_semaphore, #tpu.memory_space<semaphore_mem>>
    tpu.enqueue_dma source(%676 : memref<3x128x128xbf16, #tpu.memory_space<any>>) target(%678 : memref<3x128x128xbf16, #tpu.memory_space<vmem>>) target_semaphore(%680 : memref<!tpu.dma_semaphore, #tpu.memory_space<semaphore_mem>>)
    %681 = arith.truncf %668 : vector<32x128xf32> to vector<32x128xbf16>
    %c0_386 = arith.constant 0 : index
    %c1_387 = arith.constant 1 : index
    %c0_388 = arith.constant 0 : index
    %c0_389 = arith.constant 0 : index
    %682 = vector.load %arg6[%c0_386, %c1_387, %c0_388, %c0_389] : memref<2x3x128x128xbf16, #tpu.memory_space<vmem>>, vector<1x1x128x128xbf16>
    %683 = vector.shape_cast %682 : vector<1x1x128x128xbf16> to vector<128x128xbf16>
    %cst_390 = arith.constant dense<0.000000e+00> : vector<32x128xf32>
    %684 = tpu.matmul %681, %683, %cst_390 {dimension_numbers = #tpu.dot_dimension_numbers<[1], [0], [0], [1], [0, 0, 1, 1], [], []>} : vector<32x128xbf16>, vector<128x128xbf16>, vector<32x128xf32> -> vector<32x128xf32>
    %c7_i32_391 = arith.constant 7 : i32
    %685 = tpu.dynamic_rotate %668 by %c7_i32_391 dim 0 : vector<32x128xf32>, i32 -> vector<32x128xf32>
    %c-7_i32 = arith.constant -7 : i32
    %686 = vector.broadcast %c-7_i32 : i32 to vector<32x1xi32>
    %687 = arith.addi %22, %686 : vector<32x1xi32>
    %c0_i32_392 = arith.constant 0 : i32
    %688 = vector.broadcast %c0_i32_392 : i32 to vector<32x1xi32>
    %689 = arith.cmpi sge, %687, %688 : vector<32x1xi32>
    %c16_i32_393 = arith.constant 16 : i32
    %690 = vector.broadcast %c16_i32_393 : i32 to vector<32x1xi32>
    %691 = arith.cmpi slt, %687, %690 : vector<32x1xi32>
    %692 = arith.andi %689, %691 : vector<32x1xi1>
    %cst_394 = arith.constant 0.000000e+00 : f32
    %693 = vector.shape_cast %692 : vector<32x1xi1> to vector<32x1xi1>
    %694 = vector.broadcast %693 : vector<32x1xi1> to vector<32x128xi1>
    %695 = vector.broadcast %cst_394 : f32 to vector<32x128xf32>
    %696 = arith.select %694, %685, %695 : vector<32x128xi1>, vector<32x128xf32>
    %697 = arith.truncf %696 : vector<32x128xf32> to vector<32x128xbf16>
    %c0_395 = arith.constant 0 : index
    %c0_396 = arith.constant 0 : index
    %c0_397 = arith.constant 0 : index
    %c0_398 = arith.constant 0 : index
    %698 = vector.load %arg6[%c0_395, %c0_396, %c0_397, %c0_398] : memref<2x3x128x128xbf16, #tpu.memory_space<vmem>>, vector<1x1x128x128xbf16>
    %699 = vector.shape_cast %698 : vector<1x1x128x128xbf16> to vector<128x128xbf16>
    %cst_399 = arith.constant dense<0.000000e+00> : vector<32x128xf32>
    %700 = tpu.matmul %697, %699, %cst_399 {dimension_numbers = #tpu.dot_dimension_numbers<[1], [0], [0], [1], [0, 0, 1, 1], [], []>} : vector<32x128xbf16>, vector<128x128xbf16>, vector<32x128xf32> -> vector<32x128xf32>
    %701 = arith.addf %684, %700 : vector<32x128xf32>
    %c25_i32 = arith.constant 25 : i32
    %702 = tpu.dynamic_rotate %668 by %c25_i32 dim 0 : vector<32x128xf32>, i32 -> vector<32x128xf32>
    %c7_i32_400 = arith.constant 7 : i32
    %703 = vector.broadcast %c7_i32_400 : i32 to vector<32x1xi32>
    %704 = arith.addi %22, %703 : vector<32x1xi32>
    %c0_i32_401 = arith.constant 0 : i32
    %705 = vector.broadcast %c0_i32_401 : i32 to vector<32x1xi32>
    %706 = arith.cmpi sge, %704, %705 : vector<32x1xi32>
    %c16_i32_402 = arith.constant 16 : i32
    %707 = vector.broadcast %c16_i32_402 : i32 to vector<32x1xi32>
    %708 = arith.cmpi slt, %704, %707 : vector<32x1xi32>
    %709 = arith.andi %706, %708 : vector<32x1xi1>
    %cst_403 = arith.constant 0.000000e+00 : f32
    %710 = vector.shape_cast %709 : vector<32x1xi1> to vector<32x1xi1>
    %711 = vector.broadcast %710 : vector<32x1xi1> to vector<32x128xi1>
    %712 = vector.broadcast %cst_403 : f32 to vector<32x128xf32>
    %713 = arith.select %711, %702, %712 : vector<32x128xi1>, vector<32x128xf32>
    %714 = arith.truncf %713 : vector<32x128xf32> to vector<32x128xbf16>
    %c0_404 = arith.constant 0 : index
    %c2_405 = arith.constant 2 : index
    %c0_406 = arith.constant 0 : index
    %c0_407 = arith.constant 0 : index
    %715 = vector.load %arg6[%c0_404, %c2_405, %c0_406, %c0_407] : memref<2x3x128x128xbf16, #tpu.memory_space<vmem>>, vector<1x1x128x128xbf16>
    %716 = vector.shape_cast %715 : vector<1x1x128x128xbf16> to vector<128x128xbf16>
    %cst_408 = arith.constant dense<0.000000e+00> : vector<32x128xf32>
    %717 = tpu.matmul %714, %716, %cst_408 {dimension_numbers = #tpu.dot_dimension_numbers<[1], [0], [0], [1], [0, 0, 1, 1], [], []>} : vector<32x128xbf16>, vector<128x128xbf16>, vector<32x128xf32> -> vector<32x128xf32>
    %718 = arith.addf %701, %717 : vector<32x128xf32>
    %c6 = arith.constant 6 : index
    %c0_409 = arith.constant 0 : index
    %c0_410 = arith.constant 0 : index
    %719 = vector.load %arg2[%c6, %c0_409, %c0_410] : memref<8x3x128xf32, #tpu.memory_space<vmem>>, vector<1x3x128xf32>
    %720 = vector.shape_cast %719 : vector<1x3x128xf32> to vector<3x128xf32>
    %721 = vector.extract_strided_slice %720 {offsets = [0, 0], sizes = [1, 128], strides = [1, 1]} : vector<3x128xf32> to vector<1x128xf32>
    %722 = vector.extract_strided_slice %720 {offsets = [1, 0], sizes = [1, 128], strides = [1, 1]} : vector<3x128xf32> to vector<1x128xf32>
    %723 = vector.extract_strided_slice %720 {offsets = [2, 0], sizes = [1, 128], strides = [1, 1]} : vector<3x128xf32> to vector<1x128xf32>
    %cst_411 = arith.constant dense<0.000000e+00> : vector<128xf32>
    %724 = vector.multi_reduction <add>, %718, %cst_411 [0] : vector<32x128xf32> to vector<128xf32>
    %725 = vector.shape_cast %724 : vector<128xf32> to vector<1x128xf32>
    %726 = arith.mulf %718, %718 : vector<32x128xf32>
    %cst_412 = arith.constant dense<0.000000e+00> : vector<128xf32>
    %727 = vector.multi_reduction <add>, %726, %cst_412 [0] : vector<32x128xf32> to vector<128xf32>
    %728 = vector.shape_cast %727 : vector<128xf32> to vector<1x128xf32>
    %c8_i32_413 = arith.constant 8 : i32
    %729 = tpu.dynamic_rotate %725 by %c8_i32_413 dim 1 : vector<1x128xf32>, i32 -> vector<1x128xf32>
    %730 = arith.addf %725, %729 : vector<1x128xf32>
    %c8_i32_414 = arith.constant 8 : i32
    %731 = tpu.dynamic_rotate %728 by %c8_i32_414 dim 1 : vector<1x128xf32>, i32 -> vector<1x128xf32>
    %732 = arith.addf %728, %731 : vector<1x128xf32>
    %c16_i32_415 = arith.constant 16 : i32
    %733 = tpu.dynamic_rotate %730 by %c16_i32_415 dim 1 : vector<1x128xf32>, i32 -> vector<1x128xf32>
    %734 = arith.addf %730, %733 : vector<1x128xf32>
    %c16_i32_416 = arith.constant 16 : i32
    %735 = tpu.dynamic_rotate %732 by %c16_i32_416 dim 1 : vector<1x128xf32>, i32 -> vector<1x128xf32>
    %736 = arith.addf %732, %735 : vector<1x128xf32>
    %c32_i32_417 = arith.constant 32 : i32
    %737 = tpu.dynamic_rotate %734 by %c32_i32_417 dim 1 : vector<1x128xf32>, i32 -> vector<1x128xf32>
    %738 = arith.addf %734, %737 : vector<1x128xf32>
    %c32_i32_418 = arith.constant 32 : i32
    %739 = tpu.dynamic_rotate %736 by %c32_i32_418 dim 1 : vector<1x128xf32>, i32 -> vector<1x128xf32>
    %740 = arith.addf %736, %739 : vector<1x128xf32>
    %c64_i32_419 = arith.constant 64 : i32
    %741 = tpu.dynamic_rotate %738 by %c64_i32_419 dim 1 : vector<1x128xf32>, i32 -> vector<1x128xf32>
    %742 = arith.addf %738, %741 : vector<1x128xf32>
    %c64_i32_420 = arith.constant 64 : i32
    %743 = tpu.dynamic_rotate %740 by %c64_i32_420 dim 1 : vector<1x128xf32>, i32 -> vector<1x128xf32>
    %744 = arith.addf %740, %743 : vector<1x128xf32>
    %cst_421 = arith.constant 0.001953125 : f32
    %745 = vector.broadcast %cst_421 : f32 to vector<1x128xf32>
    %746 = arith.mulf %742, %745 : vector<1x128xf32>
    %cst_422 = arith.constant 0.001953125 : f32
    %747 = vector.broadcast %cst_422 : f32 to vector<1x128xf32>
    %748 = arith.mulf %744, %747 : vector<1x128xf32>
    %749 = arith.mulf %746, %746 : vector<1x128xf32>
    %750 = arith.subf %748, %749 : vector<1x128xf32>
    %cst_423 = arith.constant 0.000000e+00 : f32
    %751 = vector.broadcast %cst_423 : f32 to vector<1x128xf32>
    %752 = arith.maximumf %750, %751 : vector<1x128xf32>
    %cst_424 = arith.constant 9.99999974E-6 : f32
    %753 = vector.broadcast %cst_424 : f32 to vector<1x128xf32>
    %754 = arith.addf %752, %753 : vector<1x128xf32>
    %755 = math.rsqrt %754 : vector<1x128xf32>
    %756 = arith.mulf %722, %755 : vector<1x128xf32>
    %757 = arith.addf %721, %756 : vector<1x128xf32>
    %758 = arith.mulf %722, %755 : vector<1x128xf32>
    %759 = arith.mulf %758, %746 : vector<1x128xf32>
    %760 = arith.subf %723, %759 : vector<1x128xf32>
    %761 = vector.broadcast %757 : vector<1x128xf32> to vector<32x128xf32>
    %762 = arith.mulf %718, %761 : vector<32x128xf32>
    %763 = vector.broadcast %760 : vector<1x128xf32> to vector<32x128xf32>
    %764 = arith.addf %762, %763 : vector<32x128xf32>
    %765 = arith.addf %567, %764 : vector<32x128xf32>
    %cst_425 = arith.constant 0.000000e+00 : f32
    %766 = vector.broadcast %cst_425 : f32 to vector<32x128xf32>
    %767 = arith.cmpf oge, %765, %766 : vector<32x128xf32>
    %cst_426 = arith.constant 2.000000e-01 : f32
    %768 = vector.broadcast %cst_426 : f32 to vector<32x128xf32>
    %769 = arith.mulf %768, %765 : vector<32x128xf32>
    %770 = arith.select %767, %765, %769 : vector<32x128xi1>, vector<32x128xf32>
    %c7_i32_427 = arith.constant 7 : i32
    %c1_i32_428 = arith.constant 1 : i32
    %c1_i32_429 = arith.constant 1 : i32
    %c0_i32_430 = arith.constant 0 : i32
    %c0_i32_431 = arith.constant 0 : i32
    %c0_i32_432 = arith.constant 0 : i32
    %771 = tpu.memref_slice %arg4[%c7_i32_427, %c0_i32_430, %c0_i32_431, %c0_i32_432] : memref<9x3x128x128xbf16, #tpu.memory_space<any>> -> memref<1x3x128x128xbf16, #tpu.memory_space<any>>
    %772 = tpu.memref_squeeze %771 : memref<1x3x128x128xbf16, #tpu.memory_space<any>> -> memref<3x128x128xbf16, #tpu.memory_space<any>>
    %c0_i32_433 = arith.constant 0 : i32
    %c0_i32_434 = arith.constant 0 : i32
    %c0_i32_435 = arith.constant 0 : i32
    %773 = tpu.memref_slice %arg6[%c1_i32_428, %c0_i32_433, %c0_i32_434, %c0_i32_435] : memref<2x3x128x128xbf16, #tpu.memory_space<vmem>> -> memref<1x3x128x128xbf16, #tpu.memory_space<vmem>>
    %774 = tpu.memref_squeeze %773 : memref<1x3x128x128xbf16, #tpu.memory_space<vmem>> -> memref<3x128x128xbf16, #tpu.memory_space<vmem>>
    %775 = tpu.memref_slice %arg7[%c1_i32_429] : memref<2x!tpu.dma_semaphore, #tpu.memory_space<semaphore_mem>> -> memref<1x!tpu.dma_semaphore, #tpu.memory_space<semaphore_mem>>
    %776 = tpu.memref_squeeze %775 : memref<1x!tpu.dma_semaphore, #tpu.memory_space<semaphore_mem>> -> memref<!tpu.dma_semaphore, #tpu.memory_space<semaphore_mem>>
    tpu.wait_dma2 semaphore(%776 : memref<!tpu.dma_semaphore, #tpu.memory_space<semaphore_mem>>) src(%772 : memref<3x128x128xbf16, #tpu.memory_space<any>>) dst(%774 : memref<3x128x128xbf16, #tpu.memory_space<vmem>>)
    %c8_i32_436 = arith.constant 8 : i32
    %c0_i32_437 = arith.constant 0 : i32
    %c0_i32_438 = arith.constant 0 : i32
    %c0_i32_439 = arith.constant 0 : i32
    %c0_i32_440 = arith.constant 0 : i32
    %c0_i32_441 = arith.constant 0 : i32
    %777 = tpu.memref_slice %arg4[%c8_i32_436, %c0_i32_439, %c0_i32_440, %c0_i32_441] : memref<9x3x128x128xbf16, #tpu.memory_space<any>> -> memref<1x3x128x128xbf16, #tpu.memory_space<any>>
    %778 = tpu.memref_squeeze %777 : memref<1x3x128x128xbf16, #tpu.memory_space<any>> -> memref<3x128x128xbf16, #tpu.memory_space<any>>
    %c0_i32_442 = arith.constant 0 : i32
    %c0_i32_443 = arith.constant 0 : i32
    %c0_i32_444 = arith.constant 0 : i32
    %779 = tpu.memref_slice %arg6[%c0_i32_437, %c0_i32_442, %c0_i32_443, %c0_i32_444] : memref<2x3x128x128xbf16, #tpu.memory_space<vmem>> -> memref<1x3x128x128xbf16, #tpu.memory_space<vmem>>
    %780 = tpu.memref_squeeze %779 : memref<1x3x128x128xbf16, #tpu.memory_space<vmem>> -> memref<3x128x128xbf16, #tpu.memory_space<vmem>>
    %781 = tpu.memref_slice %arg7[%c0_i32_438] : memref<2x!tpu.dma_semaphore, #tpu.memory_space<semaphore_mem>> -> memref<1x!tpu.dma_semaphore, #tpu.memory_space<semaphore_mem>>
    %782 = tpu.memref_squeeze %781 : memref<1x!tpu.dma_semaphore, #tpu.memory_space<semaphore_mem>> -> memref<!tpu.dma_semaphore, #tpu.memory_space<semaphore_mem>>
    tpu.enqueue_dma source(%778 : memref<3x128x128xbf16, #tpu.memory_space<any>>) target(%780 : memref<3x128x128xbf16, #tpu.memory_space<vmem>>) target_semaphore(%782 : memref<!tpu.dma_semaphore, #tpu.memory_space<semaphore_mem>>)
    %783 = arith.truncf %770 : vector<32x128xf32> to vector<32x128xbf16>
    %c1_445 = arith.constant 1 : index
    %c1_446 = arith.constant 1 : index
    %c0_447 = arith.constant 0 : index
    %c0_448 = arith.constant 0 : index
    %784 = vector.load %arg6[%c1_445, %c1_446, %c0_447, %c0_448] : memref<2x3x128x128xbf16, #tpu.memory_space<vmem>>, vector<1x1x128x128xbf16>
    %785 = vector.shape_cast %784 : vector<1x1x128x128xbf16> to vector<128x128xbf16>
    %cst_449 = arith.constant dense<0.000000e+00> : vector<32x128xf32>
    %786 = tpu.matmul %783, %785, %cst_449 {dimension_numbers = #tpu.dot_dimension_numbers<[1], [0], [0], [1], [0, 0, 1, 1], [], []>} : vector<32x128xbf16>, vector<128x128xbf16>, vector<32x128xf32> -> vector<32x128xf32>
    %c8_i32_450 = arith.constant 8 : i32
    %787 = tpu.dynamic_rotate %770 by %c8_i32_450 dim 0 : vector<32x128xf32>, i32 -> vector<32x128xf32>
    %c-8_i32 = arith.constant -8 : i32
    %788 = vector.broadcast %c-8_i32 : i32 to vector<32x1xi32>
    %789 = arith.addi %22, %788 : vector<32x1xi32>
    %c0_i32_451 = arith.constant 0 : i32
    %790 = vector.broadcast %c0_i32_451 : i32 to vector<32x1xi32>
    %791 = arith.cmpi sge, %789, %790 : vector<32x1xi32>
    %c16_i32_452 = arith.constant 16 : i32
    %792 = vector.broadcast %c16_i32_452 : i32 to vector<32x1xi32>
    %793 = arith.cmpi slt, %789, %792 : vector<32x1xi32>
    %794 = arith.andi %791, %793 : vector<32x1xi1>
    %cst_453 = arith.constant 0.000000e+00 : f32
    %795 = vector.shape_cast %794 : vector<32x1xi1> to vector<32x1xi1>
    %796 = vector.broadcast %795 : vector<32x1xi1> to vector<32x128xi1>
    %797 = vector.broadcast %cst_453 : f32 to vector<32x128xf32>
    %798 = arith.select %796, %787, %797 : vector<32x128xi1>, vector<32x128xf32>
    %799 = arith.truncf %798 : vector<32x128xf32> to vector<32x128xbf16>
    %c1_454 = arith.constant 1 : index
    %c0_455 = arith.constant 0 : index
    %c0_456 = arith.constant 0 : index
    %c0_457 = arith.constant 0 : index
    %800 = vector.load %arg6[%c1_454, %c0_455, %c0_456, %c0_457] : memref<2x3x128x128xbf16, #tpu.memory_space<vmem>>, vector<1x1x128x128xbf16>
    %801 = vector.shape_cast %800 : vector<1x1x128x128xbf16> to vector<128x128xbf16>
    %cst_458 = arith.constant dense<0.000000e+00> : vector<32x128xf32>
    %802 = tpu.matmul %799, %801, %cst_458 {dimension_numbers = #tpu.dot_dimension_numbers<[1], [0], [0], [1], [0, 0, 1, 1], [], []>} : vector<32x128xbf16>, vector<128x128xbf16>, vector<32x128xf32> -> vector<32x128xf32>
    %803 = arith.addf %786, %802 : vector<32x128xf32>
    %c24_i32 = arith.constant 24 : i32
    %804 = tpu.dynamic_rotate %770 by %c24_i32 dim 0 : vector<32x128xf32>, i32 -> vector<32x128xf32>
    %c8_i32_459 = arith.constant 8 : i32
    %805 = vector.broadcast %c8_i32_459 : i32 to vector<32x1xi32>
    %806 = arith.addi %22, %805 : vector<32x1xi32>
    %c0_i32_460 = arith.constant 0 : i32
    %807 = vector.broadcast %c0_i32_460 : i32 to vector<32x1xi32>
    %808 = arith.cmpi sge, %806, %807 : vector<32x1xi32>
    %c16_i32_461 = arith.constant 16 : i32
    %809 = vector.broadcast %c16_i32_461 : i32 to vector<32x1xi32>
    %810 = arith.cmpi slt, %806, %809 : vector<32x1xi32>
    %811 = arith.andi %808, %810 : vector<32x1xi1>
    %cst_462 = arith.constant 0.000000e+00 : f32
    %812 = vector.shape_cast %811 : vector<32x1xi1> to vector<32x1xi1>
    %813 = vector.broadcast %812 : vector<32x1xi1> to vector<32x128xi1>
    %814 = vector.broadcast %cst_462 : f32 to vector<32x128xf32>
    %815 = arith.select %813, %804, %814 : vector<32x128xi1>, vector<32x128xf32>
    %816 = arith.truncf %815 : vector<32x128xf32> to vector<32x128xbf16>
    %c1_463 = arith.constant 1 : index
    %c2_464 = arith.constant 2 : index
    %c0_465 = arith.constant 0 : index
    %c0_466 = arith.constant 0 : index
    %817 = vector.load %arg6[%c1_463, %c2_464, %c0_465, %c0_466] : memref<2x3x128x128xbf16, #tpu.memory_space<vmem>>, vector<1x1x128x128xbf16>
    %818 = vector.shape_cast %817 : vector<1x1x128x128xbf16> to vector<128x128xbf16>
    %cst_467 = arith.constant dense<0.000000e+00> : vector<32x128xf32>
    %819 = tpu.matmul %816, %818, %cst_467 {dimension_numbers = #tpu.dot_dimension_numbers<[1], [0], [0], [1], [0, 0, 1, 1], [], []>} : vector<32x128xbf16>, vector<128x128xbf16>, vector<32x128xf32> -> vector<32x128xf32>
    %820 = arith.addf %803, %819 : vector<32x128xf32>
    %c7 = arith.constant 7 : index
    %c0_468 = arith.constant 0 : index
    %c0_469 = arith.constant 0 : index
    %821 = vector.load %arg2[%c7, %c0_468, %c0_469] : memref<8x3x128xf32, #tpu.memory_space<vmem>>, vector<1x3x128xf32>
    %822 = vector.shape_cast %821 : vector<1x3x128xf32> to vector<3x128xf32>
    %823 = vector.extract_strided_slice %822 {offsets = [0, 0], sizes = [1, 128], strides = [1, 1]} : vector<3x128xf32> to vector<1x128xf32>
    %824 = vector.extract_strided_slice %822 {offsets = [1, 0], sizes = [1, 128], strides = [1, 1]} : vector<3x128xf32> to vector<1x128xf32>
    %825 = vector.extract_strided_slice %822 {offsets = [2, 0], sizes = [1, 128], strides = [1, 1]} : vector<3x128xf32> to vector<1x128xf32>
    %cst_470 = arith.constant dense<0.000000e+00> : vector<128xf32>
    %826 = vector.multi_reduction <add>, %820, %cst_470 [0] : vector<32x128xf32> to vector<128xf32>
    %827 = vector.shape_cast %826 : vector<128xf32> to vector<1x128xf32>
    %828 = arith.mulf %820, %820 : vector<32x128xf32>
    %cst_471 = arith.constant dense<0.000000e+00> : vector<128xf32>
    %829 = vector.multi_reduction <add>, %828, %cst_471 [0] : vector<32x128xf32> to vector<128xf32>
    %830 = vector.shape_cast %829 : vector<128xf32> to vector<1x128xf32>
    %c8_i32_472 = arith.constant 8 : i32
    %831 = tpu.dynamic_rotate %827 by %c8_i32_472 dim 1 : vector<1x128xf32>, i32 -> vector<1x128xf32>
    %832 = arith.addf %827, %831 : vector<1x128xf32>
    %c8_i32_473 = arith.constant 8 : i32
    %833 = tpu.dynamic_rotate %830 by %c8_i32_473 dim 1 : vector<1x128xf32>, i32 -> vector<1x128xf32>
    %834 = arith.addf %830, %833 : vector<1x128xf32>
    %c16_i32_474 = arith.constant 16 : i32
    %835 = tpu.dynamic_rotate %832 by %c16_i32_474 dim 1 : vector<1x128xf32>, i32 -> vector<1x128xf32>
    %836 = arith.addf %832, %835 : vector<1x128xf32>
    %c16_i32_475 = arith.constant 16 : i32
    %837 = tpu.dynamic_rotate %834 by %c16_i32_475 dim 1 : vector<1x128xf32>, i32 -> vector<1x128xf32>
    %838 = arith.addf %834, %837 : vector<1x128xf32>
    %c32_i32_476 = arith.constant 32 : i32
    %839 = tpu.dynamic_rotate %836 by %c32_i32_476 dim 1 : vector<1x128xf32>, i32 -> vector<1x128xf32>
    %840 = arith.addf %836, %839 : vector<1x128xf32>
    %c32_i32_477 = arith.constant 32 : i32
    %841 = tpu.dynamic_rotate %838 by %c32_i32_477 dim 1 : vector<1x128xf32>, i32 -> vector<1x128xf32>
    %842 = arith.addf %838, %841 : vector<1x128xf32>
    %c64_i32_478 = arith.constant 64 : i32
    %843 = tpu.dynamic_rotate %840 by %c64_i32_478 dim 1 : vector<1x128xf32>, i32 -> vector<1x128xf32>
    %844 = arith.addf %840, %843 : vector<1x128xf32>
    %c64_i32_479 = arith.constant 64 : i32
    %845 = tpu.dynamic_rotate %842 by %c64_i32_479 dim 1 : vector<1x128xf32>, i32 -> vector<1x128xf32>
    %846 = arith.addf %842, %845 : vector<1x128xf32>
    %cst_480 = arith.constant 0.001953125 : f32
    %847 = vector.broadcast %cst_480 : f32 to vector<1x128xf32>
    %848 = arith.mulf %844, %847 : vector<1x128xf32>
    %cst_481 = arith.constant 0.001953125 : f32
    %849 = vector.broadcast %cst_481 : f32 to vector<1x128xf32>
    %850 = arith.mulf %846, %849 : vector<1x128xf32>
    %851 = arith.mulf %848, %848 : vector<1x128xf32>
    %852 = arith.subf %850, %851 : vector<1x128xf32>
    %cst_482 = arith.constant 0.000000e+00 : f32
    %853 = vector.broadcast %cst_482 : f32 to vector<1x128xf32>
    %854 = arith.maximumf %852, %853 : vector<1x128xf32>
    %cst_483 = arith.constant 9.99999974E-6 : f32
    %855 = vector.broadcast %cst_483 : f32 to vector<1x128xf32>
    %856 = arith.addf %854, %855 : vector<1x128xf32>
    %857 = math.rsqrt %856 : vector<1x128xf32>
    %858 = arith.mulf %824, %857 : vector<1x128xf32>
    %859 = arith.addf %823, %858 : vector<1x128xf32>
    %860 = arith.mulf %824, %857 : vector<1x128xf32>
    %861 = arith.mulf %860, %848 : vector<1x128xf32>
    %862 = arith.subf %825, %861 : vector<1x128xf32>
    %863 = vector.broadcast %859 : vector<1x128xf32> to vector<32x128xf32>
    %864 = arith.mulf %820, %863 : vector<32x128xf32>
    %865 = vector.broadcast %862 : vector<1x128xf32> to vector<32x128xf32>
    %866 = arith.addf %864, %865 : vector<32x128xf32>
    %cst_484 = arith.constant 0.000000e+00 : f32
    %867 = vector.broadcast %cst_484 : f32 to vector<32x128xf32>
    %868 = arith.cmpf oge, %866, %867 : vector<32x128xf32>
    %cst_485 = arith.constant 2.000000e-01 : f32
    %869 = vector.broadcast %cst_485 : f32 to vector<32x128xf32>
    %870 = arith.mulf %869, %866 : vector<32x128xf32>
    %871 = arith.select %868, %866, %870 : vector<32x128xi1>, vector<32x128xf32>
    %c8_i32_486 = arith.constant 8 : i32
    %c0_i32_487 = arith.constant 0 : i32
    %c0_i32_488 = arith.constant 0 : i32
    %c0_i32_489 = arith.constant 0 : i32
    %c0_i32_490 = arith.constant 0 : i32
    %c0_i32_491 = arith.constant 0 : i32
    %872 = tpu.memref_slice %arg4[%c8_i32_486, %c0_i32_489, %c0_i32_490, %c0_i32_491] : memref<9x3x128x128xbf16, #tpu.memory_space<any>> -> memref<1x3x128x128xbf16, #tpu.memory_space<any>>
    %873 = tpu.memref_squeeze %872 : memref<1x3x128x128xbf16, #tpu.memory_space<any>> -> memref<3x128x128xbf16, #tpu.memory_space<any>>
    %c0_i32_492 = arith.constant 0 : i32
    %c0_i32_493 = arith.constant 0 : i32
    %c0_i32_494 = arith.constant 0 : i32
    %874 = tpu.memref_slice %arg6[%c0_i32_487, %c0_i32_492, %c0_i32_493, %c0_i32_494] : memref<2x3x128x128xbf16, #tpu.memory_space<vmem>> -> memref<1x3x128x128xbf16, #tpu.memory_space<vmem>>
    %875 = tpu.memref_squeeze %874 : memref<1x3x128x128xbf16, #tpu.memory_space<vmem>> -> memref<3x128x128xbf16, #tpu.memory_space<vmem>>
    %876 = tpu.memref_slice %arg7[%c0_i32_488] : memref<2x!tpu.dma_semaphore, #tpu.memory_space<semaphore_mem>> -> memref<1x!tpu.dma_semaphore, #tpu.memory_space<semaphore_mem>>
    %877 = tpu.memref_squeeze %876 : memref<1x!tpu.dma_semaphore, #tpu.memory_space<semaphore_mem>> -> memref<!tpu.dma_semaphore, #tpu.memory_space<semaphore_mem>>
    tpu.wait_dma2 semaphore(%877 : memref<!tpu.dma_semaphore, #tpu.memory_space<semaphore_mem>>) src(%873 : memref<3x128x128xbf16, #tpu.memory_space<any>>) dst(%875 : memref<3x128x128xbf16, #tpu.memory_space<vmem>>)
    %878 = arith.truncf %871 : vector<32x128xf32> to vector<32x128xbf16>
    %c0_495 = arith.constant 0 : index
    %c0_496 = arith.constant 0 : index
    %c0_497 = arith.constant 0 : index
    %c0_498 = arith.constant 0 : index
    %879 = vector.load %arg6[%c0_495, %c0_496, %c0_497, %c0_498] : memref<2x3x128x128xbf16, #tpu.memory_space<vmem>>, vector<1x1x128x128xbf16>
    %880 = vector.shape_cast %879 : vector<1x1x128x128xbf16> to vector<128x128xbf16>
    %cst_499 = arith.constant dense<0.000000e+00> : vector<32x128xf32>
    %881 = tpu.matmul %878, %880, %cst_499 {dimension_numbers = #tpu.dot_dimension_numbers<[1], [0], [0], [1], [0, 0, 1, 1], [], []>} : vector<32x128xbf16>, vector<128x128xbf16>, vector<32x128xf32> -> vector<32x128xf32>
    %882 = vector.broadcast %29 : vector<1x128xf32> to vector<32x128xf32>
    %883 = arith.addf %881, %882 : vector<32x128xf32>
    %c0_500 = arith.constant 0 : index
    %c0_501 = arith.constant 0 : index
    %884 = vector.load %arg5[%c0_500, %c0_501] : memref<32x128xf32, #tpu.memory_space<vmem>>, vector<32x128xf32>
    tpu.vector_store %arg5[%c0_500, %c0_501], %883 {strides = array<i32>} : memref<32x128xf32, #tpu.memory_space<vmem>>, vector<32x128xf32>,
    return
  }
  func.func @transform_0(%arg0: i32) -> (i32, i32) {
    %c0_i32 = arith.constant 0 : i32
    %c0_i32_0 = arith.constant 0 : i32
    %c0_i32_1 = arith.constant 0 : i32
    return %c0_i32, %c0_i32_0 : i32, i32
  }
  func.func @transform_1(%arg0: i32) -> (i32, i32, i32) {
    %c0_i32 = arith.constant 0 : i32
    %c0_i32_0 = arith.constant 0 : i32
    %c0_i32_1 = arith.constant 0 : i32
    %c0_i32_2 = arith.constant 0 : i32
    return %c0_i32, %c0_i32_0, %c0_i32_1 : i32, i32, i32
  }
  func.func @transform_2(%arg0: i32) -> (i32, i32) {
    %c0_i32 = arith.constant 0 : i32
    %c0_i32_0 = arith.constant 0 : i32
    %c0_i32_1 = arith.constant 0 : i32
    return %c0_i32, %c0_i32_0 : i32, i32
  }
  func.func @transform_4(%arg0: i32) -> (i32, i32) {
    %c0_i32 = arith.constant 0 : i32
    %c0_i32_0 = arith.constant 0 : i32
    %c0_i32_1 = arith.constant 0 : i32
    return %c0_i32, %c0_i32_0 : i32, i32
  }
}

</mosaic_0001>

<bundles_post_ra>
// kernel: tpu_custom_call.1
= control target key start
LH: loop header
LB: loop body
LE: loop exit
PB: predicated region body
PF: predicated region fallthrough
CT: control target
= control target key end

     0   :  { %s6070_s0 = inlined_call_operand.vmem [shape: f32[32,128], index: 0, kind: input, shape index: {}]   ;;  %s6071_s1 = inlined_call_operand.vmem [shape: f32[8,3,128], index: 1, kind: input, shape index: {}]   ;;  %s6072_s2 = inlined_call_operand.vmem [shape: f32[3,128], index: 2, kind: input, shape index: {}]   ;;  %s6073_s3 = inlined_call_operand.hbm [shape: bf16[9,3,128,128], index: 3, kind: input, shape index: {}]   ;;  %s6074_s4 = inlined_call_operand.hbm [shape: f32[32,128], index: 4, kind: output, shape index: {}]  }
   0x1   :  { %v5320_v0 = vld [vmem:[%s6070_s0] sm:$0xff]  ;;  %v5325_v1 = vld [vmem:[%s6070_s0 + $0x8] sm:$0xff]  ;;  %v5330_v2 = vld [vmem:[%s6070_s0 + $0x10] sm:$0xff] }
   0x2   :  { %v90_v3 = vadd.f32 %v5325_v1, %v5320_v0  ;;  %v103_v4 = vmul.f32 %v5320_v0, %v5320_v0  ;;  %v104_v5 = vmul.f32 %v5325_v1, %v5325_v1 }
   0x3   :  { %9 = vsyncpa [#allocation5], 0  ;;  %v5341_v6 = vld [vmem:[%s6070_s0 + $0x18] sm:$0xff]  ;;  %v105_v8 = vmul.f32 %v5330_v2, %v5330_v2  ;;  %s23_s24 = sshll.u32 %s6073_s3, 4  ;;  %s5281_s25 = smov [#allocation2]   ;;  %v29_v28 = vlaneseq  ;;  %s24_s24 = int_to_ptr.hbm [resolvable:$true] %s23_s24 }
   0x4   :  { %v91_v7 = vadd.f32 %v90_v3, %v5330_v2  ;;  %v107_v9 = vadd.f32 %v104_v5, %v103_v4  ;;  %v106_v11 = vmul.f32 %v5341_v6, %v5341_v6  ;;  %s25_s26 = sshll.u32 %s5281_s25, 4  ;;  %s5282_s7 = smov 0.0   ;;  %v5376_v45 = vld [vmem:[%s6072_s2] sm:$0x7]  ;;  %s5352_s26 = int_to_ptr.vmem [resolvable:$true] %s25_s26 }
   0x5   :  { %28 = dma.hbm_to_vmem [thread:$0]  %s24_s24, 3072, %s5352_s26, [#allocation3]  ;;  %v5357_v29 = vshrl.u32 %v29_v28, 7  ;;  %v5381_v52 = vand.u32 127, %v29_v28 }
   0x6   :  { %v92_v10 = vadd.f32 %v91_v7, %v5341_v6  ;;  %v108_v12 = vadd.f32 %v107_v9, %v105_v8 }
   0x7   :  { %v31_v30 = vadd.s32 8, %v5357_v29  ;;  %v32_v31 = vadd.s32 16, %v5357_v29  ;;  %v33_v32 = vadd.s32 24, %v5357_v29  ;;  %v5363_v33 = vand.u32 15, %v5357_v29 }
   0x8   :  { %93 = vadd.xlane.f32.xlu0 %v92_v10  ;;  %v109_v13 = vadd.f32 %v108_v12, %v106_v11  ;;  %vm84_vm3 = vcmp.lt.s32.totalorder %v5381_v52, 16 }
   0x9   :  { %v5367_v34 = vand.u32 15, %v31_v30  ;;  %v5369_v35 = vand.u32 15, %v32_v31  ;;  %v5371_v36 = vand.u32 15, %v33_v32 }
  0x10   :  { %110 = vadd.xlane.f32.xlu0 %v109_v13 }
  0x7b   :  { %v94_v14 = vpop.xlane.xlu0 %93 }
  0x7c   :  { %v95_v15 = vrot.slane %v94_v14, 4 }
  0x7e   :  { %v96_v16 = vadd.f32 %v95_v15, %v94_v14 }
  0x80   :  { %v97_v17 = vrot.slane %v96_v16, 2 }
  0x82   :  { %v98_v18 = vadd.f32 %v97_v17, %v96_v16 }
  0x83   :  { %v111_v19 = vpop.xlane.xlu0 %110 }
  0x84   :  { %v112_v20 = vrot.slane %v111_v19, 4  ;;  %v99_v21 = vrot.slane %v98_v18, 1 }
  0x86   :  { %v113_v22 = vadd.f32 %v112_v20, %v111_v19  ;;  %v100_v23 = vadd.f32 %v99_v21, %v98_v18 }
  0x88   :  { %v114_v24 = vrot.slane %v113_v22, 2  ;;  %4986 = vpush %v100_v23 }
  0x8a   :  { %v115_v25 = vadd.f32 %v114_v24, %v113_v22 }
  0x8c   :  { %v116_v26 = vrot.slane %v115_v25, 1 }
  0x8e   :  { %v117_v27 = vadd.f32 %v116_v26, %v115_v25 }
  0x90   :  { %4988 = vpush %v117_v27 }
  0xb9   :  { %s4987_s27 = spop %4986 }
  0xba   :  { %s5355_s28 = smul.f32 0.001953125, %s4987_s27 }
  0xbc   :  { %s120_s29 = smul.f32 %s5355_s28, %s5355_s28 }
  0xc1   :  { %s4989_s30 = spop %4988 }
  0xc2   :  { %s119_s5 = smul.f32 0.001953125, %s4989_s30 }
  0xc4   :  { %s121_s6 = ssub.f32 %s119_s5, %s120_s29 }
  0xc6   :  { %s122_s8 = smax.f32 %s5282_s7, %s121_s6 }
  0xc7   :  { %s123_s9 = sadd.f32 1e-05, %s122_s8 }
  0xc9   :  { %v124_v37 = vstv %s123_s9 }
  0xca   :  { %5003 = vrsqrt.f32 %v124_v37  ;;  %vm131_vm1 = vweird.f32 %v124_v37 }
  0xd0   :  { %v5004_v38 = vpop.eup %5003 }
  0xd1   :  { %v126_v39 = vmul.f32 %v5004_v38, %v124_v37  ;;  %vm132_vm0 = vweird.f32 %v5004_v38 }
  0xd2   :  { %vm133_vm2 = vmor %vm131_vm1, %vm132_vm0 }
  0xd3   :  { %v127_v40 = vmul.f32 %v5004_v38, %v126_v39 }
  0xd5   :  { %v128_v41 = vmul.f32 0.5, %v127_v40 }
  0xd7   :  { %v129_v42 = vsub.f32 1.5, %v128_v41 }
  0xd9   :  { %v130_v43 = vmul.f32 %v5004_v38, %v129_v42 }
  0xdb   :  { %v134_v44 = vsel %vm133_vm2, %v5004_v38, %v130_v43 }
  0xdc   :  { %4990 = vpush %v134_v44 }
 0x10d   :  { %s4991_s12 = spop %4990 }
 0x10e   :  { %v136_v46 = vstv %s4991_s12  ;;  %s143_s13 = smul.f32 %s4991_s12, %s5355_s28 }
 0x10f   :  { %v137_v47 = vmul.f32 %v136_v46, %v5376_v45 }
 0x110   :  { %v144_v48 = vstv %s143_s13 }
 0x111   :  { %v145_v49 = vmul.f32 %v144_v48, %v5376_v45  ;;  %v138_v50 = vperm.slane %v137_v47, 0 }
 0x113   :  { %v147_v51 = vrot.slane %v145_v49, 7  ;;  %v139_v54 = vmul.f32 %v138_v50, %v5320_v0  ;;  %v140_v55 = vmul.f32 %v138_v50, %v5325_v1  ;;  %v141_v56 = vmul.f32 %v138_v50, %v5330_v2 }
 0x114   :  { %v142_v57 = vmul.f32 %v138_v50, %v5341_v6 }
 0x115   :  { %v149_v53 = vsub.f32 %v5376_v45, %v147_v51 }
 0x117   :  { %v150_v58 = vperm.slane %v149_v53, 1 }
 0x119   :  { %v5389_v59 = vadd.f32 %v150_v58, %v139_v54  ;;  %v5391_v60 = vadd.f32 %v150_v58, %v140_v55  ;;  %v5393_v61 = vadd.f32 %v150_v58, %v141_v56  ;;  %v5395_v62 = vadd.f32 %v150_v58, %v142_v57 }
 0x11b   :  { %v5400_v63 = vsel %vm84_vm3, %v5389_v59, 0.0  ;;  %v5405_v0 = vsel %vm84_vm3, %v5391_v60, 0.0  ;;  %v5410_v1 = vsel %vm84_vm3, %v5393_v61, 0.0  ;;  %v5415_v2 = vsel %vm84_vm3, %v5395_v62, 0.0 }
 0x11c   :  { %5261 = dma.done.wait [#allocation3], 3072 }
 0x11d   :  { %5262 = vsyncadd [#allocation3], 4294964224  ;;  %s166_s15 = scalar_lea.hbm %s6073_s3, 192  ;;  %s5283_s17 = smov [#allocation2 + $0xc0]   ;;  %v201_v23 = vrot.slane %v5400_v63, 7  ;;  %v202_v24 = vrot.slane %v5405_v0, 7  ;;  %v3950_v46 = vpack.c.bf16 %v5391_v60, %v5389_v59  ;;  %v3953_v58 = vpack.c.bf16 %v5395_v62, %v5393_v61 }
 0x11e   :  { %s176_s16 = sshll.u32 %s166_s15, 4  ;;  %s178_s18 = sshll.u32 %s5283_s17, 4  ;;  %v204_v25 = vrot.slane %v5415_v2, 7  ;;  %v210_v26 = vadd.s32 4294967295, %v5363_v33  ;;  %vm205_vm4 = vcmp.lt.s32.totalorder %v5357_v29, 1  ;;  %v390_v28 = vrot.slane %v5400_v63, 1  ;;  %vm5447_vm10 = vmpackc.low %vm84_vm3, %vm84_vm3  ;;  %s177_s16 = int_to_ptr.hbm [resolvable:$true] %s176_s16  ;;  %s5420_s18 = int_to_ptr.vmem [resolvable:$true] %s178_s18 }
 0x11f   :  { %181 = dma.hbm_to_vmem [thread:$0]  %s177_s16, 3072, %s5420_s18, [#allocation3 + $0x1]  ;;  %v391_v30 = vrot.slane %v5405_v0, 1  ;;  %v392_v31 = vrot.slane %v5410_v1, 1  ;;  %vm394_vm5 = vcmp.lt.s32.totalorder %v5357_v29, 7  ;;  %v400_v32 = vadd.s32 1, %v5367_v34 }
 0x120   :  { %v4793_v3 = vld [vmem:[#allocation2 + $0x38] sm:$0xff]  ;;  %v4792_v6 = vld [vmem:[#allocation2 + $0x30] sm:$0xff]  ;;  %v4791_v9 = vld [vmem:[#allocation2 + $0x28] sm:$0xff]  ;;  %v208_v39 = vsel %vm205_vm4, %v201_v23, %v202_v24  ;;  %v209_v40 = vsel %vm205_vm4, %v204_v25, %v201_v23  ;;  %vm214_vm6 = vcmp.ge.s32.totalorder %v210_v26, 0  ;;  %vm5284_vm8 = vmmov 1   ;;  %s5285_s19 = smov 8  }
 0x121   :  { %v4785_v4 = vld [vmem:[#allocation2 + $0x78] sm:$0xff]  ;;  %304 = vmatpush.bf16.msra.mxu0 %v4793_v3  ;;  %v4784_v7 = vld [vmem:[#allocation2 + $0x70] sm:$0xff]  ;;  %v4783_v10 = vld [vmem:[#allocation2 + $0x68] sm:$0xff]  ;;  %v396_v42 = vsel %vm394_vm5, %v391_v30, %v392_v31  ;;  %v397_v43 = vsel %vm394_vm5, %v390_v28, %v391_v30  ;;  %vm408_vm7 = vcmp.lt.s32.totalorder %v400_v32, 16  ;;  %v3912_v44 = vpack.c.bf16 %v208_v39, %v209_v40  ;;  %s5286_s20 = smov 16   ;;  %s5287_s21 = smov 32  }
 0x122   :  { %v4801_v5 = vld [vmem:[#allocation2 + $0xb8] sm:$0xff]  ;;  %371 = vmatpush.bf16.msra.mxu1 %v4785_v4  ;;  %v4800_v8 = vld [vmem:[#allocation2 + $0xb0] sm:$0xff]  ;;  %v4799_v11 = vld [vmem:[#allocation2 + $0xa8] sm:$0xff]  ;;  %v3988_v48 = vpack.c.bf16 %v396_v42, %v397_v43  ;;  %v203_v49 = vrot.slane %v5410_v1, 7  ;;  %v212_v50 = vadd.s32 4294967295, %v5369_v35  ;;  %v393_v51 = vrot.slane %v5415_v2, 1 }
 0x123   :  { %494 = vmatpush.bf16.msra.mxu2 %v4801_v5  ;;  %v4790_v12 = vld [vmem:[#allocation2 + $0x20] sm:$0xff]  ;;  %v4789_v15 = vld [vmem:[#allocation2 + $0x18] sm:$0xff]  ;;  %v4788_v18 = vld [vmem:[#allocation2 + $0x10] sm:$0xff]  ;;  %v402_v52 = vadd.s32 1, %v5371_v36  ;;  %s5288_s22 = smov 64  }
 0x124   :  { %v4782_v13 = vld [vmem:[#allocation2 + $0x60] sm:$0xff]  ;;  %v4781_v16 = vld [vmem:[#allocation2 + $0x58] sm:$0xff]  ;;  %v4780_v19 = vld [vmem:[#allocation2 + $0x50] sm:$0xff]  ;;  %v206_v53 = vsel %vm205_vm4, %v203_v49, %v204_v25  ;;  %v207_v54 = vsel %vm205_vm4, %v202_v24, %v203_v49  ;;  %vm216_vm12 = vcmp.ge.s32.totalorder %v212_v50, 0  ;;  %v395_v55 = vsel %vm394_vm5, %v392_v31, %v393_v51 }
 0x125   :  { %305 = vmatpush.bf16.msra.mxu0 %v4792_v6  ;;  %v4798_v14 = vld [vmem:[#allocation2 + $0xa0] sm:$0xff]  ;;  %v4797_v17 = vld [vmem:[#allocation2 + $0x98] sm:$0xff]  ;;  %v4796_v20 = vld [vmem:[#allocation2 + $0x90] sm:$0xff]  ;;  %v398_v56 = vsel %vm394_vm5, %v393_v51, %v390_v28  ;;  %vm410_vm13 = vcmp.lt.s32.totalorder %v402_v52, 16  ;;  %v3915_v57 = vpack.c.bf16 %v206_v53, %v207_v54 }
 0x126   :  { %372 = vmatpush.bf16.msra.mxu1 %v4784_v7  ;;  %v4787_v21 = vld [vmem:[#allocation2 + $0x8] sm:$0xff]  ;;  %v4786_v37 = vld [vmem:[#allocation2] sm:$0xff]  ;;  %vm3911_vm9 = vmpackc.low %vm5284_vm8, %vm214_vm6  ;;  %v3991_v59 = vpack.c.bf16 %v398_v56, %v395_v55 }
 0x127   :  { %495 = vmatpush.bf16.msra.mxu2 %v4800_v8  ;;  %v4779_v22 = vld [vmem:[#allocation2 + $0x48] sm:$0xff]  ;;  %v4778_v38 = vld [vmem:[#allocation2 + $0x40] sm:$0xff]  ;;  %vm3987_vm11 = vmpackc.low %vm408_vm7, %vm5284_vm8 }
 0x128   :  { %v4795_v27 = vld [vmem:[#allocation2 + $0x88] sm:$0xff]  ;;  %v4794_v41 = vld [vmem:[#allocation2 + $0x80] sm:$0xff]  ;;  %vm3914_vm14 = vmpackc.low %vm5284_vm8, %vm216_vm12 }
 0x129   :  { %306 = vmatpush.bf16.msra.mxu0 %v4791_v9  ;;  %vm3990_vm15 = vmpackc.low %vm410_vm13, %vm5284_vm8 }
 0x12a   :  { %373 = vmatpush.bf16.msra.mxu1 %v4783_v10 }
 0x12b   :  { %496 = vmatpush.bf16.msra.mxu2 %v4799_v11 }
 0x12d   :  { %307 = vmatpush.bf16.msra.mxu0 %v4790_v12 }
 0x12e   :  { %374 = vmatpush.bf16.msra.mxu1 %v4782_v13 }
 0x12f   :  { %497 = vmatpush.bf16.msra.mxu2 %v4798_v14 }
 0x131   :  { %308 = vmatpush.bf16.msra.mxu0 %v4789_v15 }
 0x132   :  { %375 = vmatpush.bf16.msra.mxu1 %v4781_v16 }
 0x133   :  { %498 = vmatpush.bf16.msra.mxu2 %v4797_v17 }
 0x135   :  { %309 = vmatpush.bf16.msra.mxu0 %v4788_v18 }
 0x136   :  { %376 = vmatpush.bf16.msra.mxu1 %v4780_v19 }
 0x137   :  { %499 = vmatpush.bf16.msra.mxu2 %v4796_v20 }
 0x139   :  { %310 = vmatpush.bf16.msra.mxu0 %v4787_v21 }
 0x13a   :  { %377 = vmatpush.bf16.msra.mxu1 %v4779_v22 }
 0x13b   :  { %500 = vmatpush.bf16.msra.mxu2 %v4795_v27 }
 0x13d   :  { %311 = vmatpush.bf16.msra.mxu0 %v4786_v37 }
 0x13e   :  { %378 = vmatpush.bf16.msra.mxu1 %v4778_v38 }
 0x13f   :  { %501 = vmatpush.bf16.msra.mxu2 %v4794_v41 }
 0x140   :  { %3913 = vmatmul.msk.bf16.vlgmr.msra.gmra.mxu0 %vm3911_vm9, %v3912_v44 }
 0x141   :  { %3951 = vmatmul.msk.bf16.vlgmr.msra.gmra.mxu1 %vm5447_vm10, %v3950_v46 }
 0x142   :  { %3989 = vmatmul.msk.bf16.vlgmr.msra.gmra.mxu2 %vm3987_vm11, %v3988_v48 }
 0x150   :  { %3916 = vmatmul.msk.bf16.gmra.mxu0 %vm3914_vm14, %v3915_v57 }
 0x151   :  { %3954 = vmatmul.msk.bf16.gmra.mxu1 %vm5447_vm10, %v3953_v58 }
 0x152   :  { %3992 = vmatmul.msk.bf16.gmra.mxu2 %vm3990_vm15, %v3991_v59 }
 0x1bd   :  { %v313_v60 = vpop.f32.mrf.mxu0 }
 0x1be   :  { %v380_v63 = vpop.f32.mrf.mxu1 }
 0x1bf   :  { %v381_v6 = vadd.f32 %v380_v63, %v313_v60 }
 0x1c5   :  { %v503_v0 = vpop.f32.mrf.mxu2  ;;  %v315_v1 = vpop.f32.mrf.mxu0 }
 0x1c6   :  { %v382_v2 = vpop.f32.mrf.mxu1  ;;  %v5474_v9 = vadd.f32 %v503_v0, %v381_v6 }
 0x1c7   :  { %v383_v61 = vadd.f32 %v382_v2, %v315_v1 }
 0x1c8   :  { %v527_v14 = vmul.f32 %v5474_v9, %v5474_v9 }
 0x1cd   :  { %v505_v3 = vpop.f32.mrf.mxu2  ;;  %v318_v4 = vpop.f32.mrf.mxu0 }
 0x1ce   :  { %v385_v5 = vpop.f32.mrf.mxu1  ;;  %v5472_v8 = vadd.f32 %v505_v3, %v383_v61 }
 0x1cf   :  { %v386_v62 = vadd.f32 %v385_v5, %v318_v4 }
 0x1d0   :  { %v528_v13 = vmul.f32 %v5472_v8, %v5472_v8  ;;  %v518_v15 = vadd.f32 %v5472_v8, %v5474_v9 }
 0x1d2   :  { %v531_v19 = vadd.f32 %v528_v13, %v527_v14 }
 0x1d5   :  { %v508_v7 = vpop.f32.mrf.mxu2  ;;  %v320_v11 = vpop.f32.mrf.mxu0 }
 0x1d6   :  { %v5476_v10 = vadd.f32 %v508_v7, %v386_v62  ;;  %v387_v12 = vpop.f32.mrf.mxu1 }
 0x1d7   :  { %v388_v17 = vadd.f32 %v387_v12, %v320_v11  ;;  %v517_v11 = vld [vmem:[%s6071_s1] sm:$0x7] }
 0x1d8   :  { %v529_v16 = vmul.f32 %v5476_v10, %v5476_v10  ;;  %v519_v20 = vadd.f32 %v518_v15, %v5476_v10 }
 0x1da   :  { %v532_v22 = vadd.f32 %v531_v19, %v529_v16 }
 0x1dd   :  { %v510_v18 = vpop.f32.mrf.mxu2 }
 0x1de   :  { %v5487_v21 = vadd.f32 %v510_v18, %v388_v17 }
 0x1e0   :  { %v520_v23 = vadd.f32 %v519_v20, %v5487_v21  ;;  %v530_v24 = vmul.f32 %v5487_v21, %v5487_v21 }
 0x1e2   :  { %v521_v25 = vrot.slane %v520_v23, 4  ;;  %v533_v26 = vadd.f32 %v532_v22, %v530_v24 }
 0x1e4   :  { %v534_v27 = vrot.slane %v533_v26, 4  ;;  %v522_v28 = vadd.f32 %v521_v25, %v520_v23 }
 0x1e6   :  { %v523_v30 = vrot.slane %v522_v28, 2  ;;  %v535_v31 = vadd.f32 %v534_v27, %v533_v26 }
 0x1e8   :  { %v524_v32 = vadd.f32 %v523_v30, %v522_v28  ;;  %v536_v37 = vrot.slane %v535_v31, 2 }
 0x1ea   :  { %v525_v38 = vrot.slane %v524_v32, 1  ;;  %v537_v40 = vadd.f32 %v536_v37, %v535_v31 }
 0x1ec   :  { %v526_v39 = vadd.f32 %v525_v38, %v524_v32  ;;  %v538_v41 = vrot.slane %v537_v40, 1 }
 0x1ee   :  { %540 = vrot.lane.b32.xlu0 %v526_v39, %s5285_s19  ;;  %v539_v42 = vadd.f32 %v538_v41, %v537_v40 }
 0x1f6   :  { %543 = vrot.lane.b32.xlu0 %v539_v42, %s5285_s19 }
 0x260   :  { %v541_v43 = vpop.permute.xlu0 %540 }
 0x261   :  { %v542_v44 = vadd.f32 %v541_v43, %v526_v39 }
 0x263   :  { %546 = vrot.lane.b32.xlu1 %v542_v44, %s5286_s20 }
 0x268   :  { %v544_v46 = vpop.permute.xlu0 %543 }
 0x269   :  { %v545_v47 = vadd.f32 %v544_v46, %v539_v42 }
 0x26b   :  { %549 = vrot.lane.b32.xlu1 %v545_v47, %s5286_s20 }
 0x2d5   :  { %v547_v48 = vpop.permute.xlu1 %546 }
 0x2d6   :  { %v548_v49 = vadd.f32 %v547_v48, %v542_v44 }
 0x2d8   :  { %552 = vrot.lane.b32.xlu2 %v548_v49, %s5287_s21 }
 0x2dd   :  { %v550_v50 = vpop.permute.xlu1 %549 }
 0x2de   :  { %v551_v51 = vadd.f32 %v550_v50, %v545_v47 }
 0x2e0   :  { %555 = vrot.lane.b32.xlu2 %v551_v51, %s5287_s21 }
 0x332   :  { %v553_v52 = vpop.permute.xlu2 %552 }
 0x333   :  { %v554_v53 = vadd.f32 %v553_v52, %v548_v49 }
 0x335   :  { %558 = vrot.lane.b32.xlu0 %v554_v53, %s5288_s22 }
 0x33a   :  { %v556_v54 = vpop.permute.xlu2 %555 }
 0x33b   :  { %v557_v55 = vadd.f32 %v556_v54, %v551_v51 }
 0x33d   :  { %561 = vrot.lane.b32.xlu1 %v557_v55, %s5288_s22 }
 0x3a7   :  { %v559_v56 = vpop.permute.xlu0 %558 }
 0x3a8   :  { %v560_v57 = vadd.f32 %v559_v56, %v554_v53 }
 0x3aa   :  { %v564_v58 = vmul.f32 0.001953125, %v560_v57 }
 0x3ac   :  { %v566_v63 = vmul.f32 %v564_v58, %v564_v58  ;;  %v589_v14 = vrot.slane %v564_v58, 7 }
 0x3af   :  { %v562_v59 = vpop.permute.xlu1 %561 }
 0x3b0   :  { %v563_v60 = vadd.f32 %v562_v59, %v557_v55 }
 0x3b2   :  { %v565_v0 = vmul.f32 0.001953125, %v563_v60 }
 0x3b4   :  { %v567_v1 = vsub.f32 %v565_v0, %v566_v63 }
 0x3b6   :  { %v568_v2 = vmax.f32 %v567_v1, 0.0 }
 0x3b8   :  { %v569_v3 = vadd.f32 1e-05, %v568_v2 }
 0x3ba   :  { %5005 = vrsqrt.f32 %v569_v3  ;;  %vm576_vm1 = vweird.f32 %v569_v3 }
 0x3c0   :  { %v5006_v4 = vpop.eup %5005 }
 0x3c1   :  { %v571_v5 = vmul.f32 %v5006_v4, %v569_v3  ;;  %vm577_vm0 = vweird.f32 %v5006_v4 }
 0x3c2   :  { %vm578_vm2 = vmor %vm576_vm1, %vm577_vm0 }
 0x3c3   :  { %v572_v6 = vmul.f32 %v5006_v4, %v571_v5 }
 0x3c5   :  { %v573_v61 = vmul.f32 0.5, %v572_v6 }
 0x3c7   :  { %v574_v62 = vsub.f32 1.5, %v573_v61 }
 0x3c9   :  { %v575_v7 = vmul.f32 %v5006_v4, %v574_v62 }
 0x3cb   :  { %v579_v12 = vsel %vm578_vm2, %v5006_v4, %v575_v7 }
 0x3cc   :  { %v581_v13 = vrot.slane %v579_v12, 7 }
 0x3ce   :  { %v583_v15 = vmul.f32 %v581_v13, %v517_v11 }
 0x3d0   :  { %v585_v16 = vrot.slane %v583_v15, 1  ;;  %v591_v17 = vmul.f32 %v589_v14, %v583_v15 }
 0x3d2   :  { %v587_v18 = vadd.f32 %v585_v16, %v517_v11  ;;  %v593_v19 = vrot.slane %v591_v17, 7 }
 0x3d4   :  { %v595_v20 = vsub.f32 %v517_v11, %v593_v19  ;;  %v596_v22 = vperm.slane %v587_v18, 0 }
 0x3d6   :  { %v597_v23 = vmul.f32 %v596_v22, %v5474_v9  ;;  %v598_v24 = vmul.f32 %v596_v22, %v5472_v8  ;;  %v599_v25 = vmul.f32 %v596_v22, %v5476_v10  ;;  %v600_v26 = vmul.f32 %v596_v22, %v5487_v21 }
 0x3d7   :  { %v601_v27 = vperm.slane %v595_v20, 2 }
 0x3d9   :  { %v602_v28 = vadd.f32 %v601_v27, %v597_v23  ;;  %v603_v30 = vadd.f32 %v601_v27, %v598_v24  ;;  %v604_v31 = vadd.f32 %v601_v27, %v599_v25  ;;  %v605_v32 = vadd.f32 %v601_v27, %v600_v26 }
 0x3db   :  { %vm606_vm3 = vcmp.ge.f32.partialorder %v602_v28, 0.0  ;;  %vm607_vm6 = vcmp.ge.f32.partialorder %v603_v30, 0.0  ;;  %vm608_vm7 = vcmp.ge.f32.partialorder %v604_v31, 0.0  ;;  %vm609_vm9 = vcmp.ge.f32.partialorder %v605_v32, 0.0 }
 0x3dc   :  { %v610_v37 = vmul.f32 0.2, %v602_v28  ;;  %v611_v38 = vmul.f32 0.2, %v603_v30  ;;  %v612_v39 = vmul.f32 0.2, %v604_v31 }
 0x3dd   :  { %v613_v40 = vmul.f32 0.2, %v605_v32 }
 0x3de   :  { %v5507_v9 = vsel %vm606_vm3, %v602_v28, %v610_v37  ;;  %v5509_v8 = vsel %vm607_vm6, %v603_v30, %v611_v38  ;;  %v5511_v10 = vsel %vm608_vm7, %v604_v31, %v612_v39 }
 0x3df   :  { %v5513_v21 = vsel %vm609_vm9, %v605_v32, %v613_v40 }
 0x3e0   :  { %5263 = dma.done.wait [#allocation3 + $0x1], 3072 }
 0x3e1   :  { %5264 = vsyncadd [#allocation3 + $0x1], 4294964224  ;;  %s620_s27 = scalar_lea.hbm %s6073_s3, 384  ;;  %v653_v0 = vrot.slane %v5507_v9, 6  ;;  %v654_v1 = vrot.slane %v5509_v8, 6  ;;  %v656_v2 = vrot.slane %v5513_v21, 6  ;;  %v634_v18 = vpack.c.bf16 %v5509_v8, %v5507_v9 }
 0x3e2   :  { %s628_s28 = sshll.u32 %s620_s27, 4  ;;  %v842_v3 = vrot.slane %v5507_v9, 2  ;;  %vm657_vm10 = vcmp.lt.s32.totalorder %v5357_v29, 2  ;;  %v662_v5 = vadd.s32 4294967294, %v5363_v33  ;;  %v843_v6 = vrot.slane %v5509_v8, 2  ;;  %s629_s28 = int_to_ptr.hbm [resolvable:$true] %s628_s28 }
 0x3e3   :  { %633 = dma.hbm_to_vmem [thread:$0]  %s629_s28, 3072, %s5352_s26, [#allocation3]  ;;  %v844_v61 = vrot.slane %v5511_v10, 2  ;;  %vm846_vm11 = vcmp.lt.s32.totalorder %v5357_v29, 6  ;;  %v852_v62 = vadd.s32 2, %v5367_v34  ;;  %v660_v12 = vsel %vm657_vm10, %v653_v0, %v654_v1 }
 0x3e4   :  { %v4817_v41 = vld [vmem:[#allocation2 + $0xf8] sm:$0xff]  ;;  %v4816_v44 = vld [vmem:[#allocation2 + $0xf0] sm:$0xff]  ;;  %v4815_v48 = vld [vmem:[#allocation2 + $0xe8] sm:$0xff]  ;;  %v661_v13 = vsel %vm657_vm10, %v656_v2, %v653_v0  ;;  %vm666_vm12 = vcmp.ge.s32.totalorder %v662_v5, 0  ;;  %v849_v16 = vsel %vm846_vm11, %v842_v3, %v843_v6  ;;  %v655_v20 = vrot.slane %v5511_v10, 6 }
 0x3e5   :  { %v4809_v42 = vld [vmem:[#allocation2 + $0x138] sm:$0xff]  ;;  %756 = vmatpush.bf16.msra.mxu3 %v4817_v41  ;;  %v4808_v46 = vld [vmem:[#allocation2 + $0x130] sm:$0xff]  ;;  %v4807_v49 = vld [vmem:[#allocation2 + $0x128] sm:$0xff]  ;;  %v848_v15 = vsel %vm846_vm11, %v843_v6, %v844_v61  ;;  %vm860_vm13 = vcmp.lt.s32.totalorder %v852_v62, 16  ;;  %v4026_v17 = vpack.c.bf16 %v660_v12, %v661_v13  ;;  %v664_v22 = vadd.s32 4294967294, %v5369_v35 }
 0x3e6   :  { %v4825_v43 = vld [vmem:[#allocation2 + $0x178] sm:$0xff]  ;;  %823 = vmatpush.bf16.msrb.mxu0 %v4809_v42  ;;  %v4824_v47 = vld [vmem:[#allocation2 + $0x170] sm:$0xff]  ;;  %v4823_v50 = vld [vmem:[#allocation2 + $0x168] sm:$0xff]  ;;  %v4096_v19 = vpack.c.bf16 %v848_v15, %v849_v16  ;;  %v845_v23 = vrot.slane %v5513_v21, 2  ;;  %v854_v24 = vadd.s32 2, %v5371_v36  ;;  %v658_v25 = vsel %vm657_vm10, %v655_v20, %v656_v2 }
 0x3e7   :  { %946 = vmatpush.bf16.msrb.mxu1 %v4825_v43  ;;  %v4814_v51 = vld [vmem:[#allocation2 + $0xe0] sm:$0xff]  ;;  %v4813_v54 = vld [vmem:[#allocation2 + $0xd8] sm:$0xff]  ;;  %v4812_v57 = vld [vmem:[#allocation2 + $0xd0] sm:$0xff]  ;;  %v659_v26 = vsel %vm657_vm10, %v654_v1, %v655_v20  ;;  %vm668_vm0 = vcmp.ge.s32.totalorder %v664_v22, 0  ;;  %v635_v31 = vpack.c.bf16 %v5513_v21, %v5511_v10 }
 0x3e8   :  { %v4806_v52 = vld [vmem:[#allocation2 + $0x120] sm:$0xff]  ;;  %v4805_v55 = vld [vmem:[#allocation2 + $0x118] sm:$0xff]  ;;  %v4804_v58 = vld [vmem:[#allocation2 + $0x110] sm:$0xff]  ;;  %v847_v27 = vsel %vm846_vm11, %v844_v61, %v845_v23  ;;  %v850_v28 = vsel %vm846_vm11, %v845_v23, %v842_v3  ;;  %vm862_vm1 = vcmp.lt.s32.totalorder %v854_v24, 16  ;;  %v4029_v30 = vpack.c.bf16 %v658_v25, %v659_v26 }
 0x3e9   :  { %757 = vmatpush.bf16.msra.mxu3 %v4816_v44  ;;  %v4822_v53 = vld [vmem:[#allocation2 + $0x160] sm:$0xff]  ;;  %v4821_v56 = vld [vmem:[#allocation2 + $0x158] sm:$0xff]  ;;  %v4820_v59 = vld [vmem:[#allocation2 + $0x150] sm:$0xff]  ;;  %v4099_v32 = vpack.c.bf16 %v850_v28, %v847_v27 }
 0x3ea   :  { %824 = vmatpush.bf16.msrb.mxu0 %v4808_v46  ;;  %v4811_v60 = vld [vmem:[#allocation2 + $0xc8] sm:$0xff]  ;;  %v4810_v7 = vld [vmem:[#allocation2 + $0xc0] sm:$0xff]  ;;  %vm4025_vm14 = vmpackc.low %vm5284_vm8, %vm666_vm12 }
 0x3eb   :  { %947 = vmatpush.bf16.msrb.mxu1 %v4824_v47  ;;  %v4803_v63 = vld [vmem:[#allocation2 + $0x108] sm:$0xff]  ;;  %v4802_v11 = vld [vmem:[#allocation2 + $0x100] sm:$0xff]  ;;  %vm4095_vm15 = vmpackc.low %vm860_vm13, %vm5284_vm8 }
 0x3ec   :  { %v4819_v4 = vld [vmem:[#allocation2 + $0x148] sm:$0xff]  ;;  %v4818_v14 = vld [vmem:[#allocation2 + $0x140] sm:$0xff]  ;;  %vm4028_vm2 = vmpackc.low %vm5284_vm8, %vm668_vm0 }
 0x3ed   :  { %758 = vmatpush.bf16.msra.mxu3 %v4815_v48  ;;  %vm4098_vm3 = vmpackc.low %vm862_vm1, %vm5284_vm8 }
 0x3ee   :  { %825 = vmatpush.bf16.msrb.mxu0 %v4807_v49 }
 0x3ef   :  { %948 = vmatpush.bf16.msrb.mxu1 %v4823_v50 }
 0x3f1   :  { %759 = vmatpush.bf16.msra.mxu3 %v4814_v51 }
 0x3f2   :  { %826 = vmatpush.bf16.msrb.mxu0 %v4806_v52 }
 0x3f3   :  { %949 = vmatpush.bf16.msrb.mxu1 %v4822_v53 }
 0x3f5   :  { %760 = vmatpush.bf16.msra.mxu3 %v4813_v54 }
 0x3f6   :  { %827 = vmatpush.bf16.msrb.mxu0 %v4805_v55 }
 0x3f7   :  { %950 = vmatpush.bf16.msrb.mxu1 %v4821_v56 }
 0x3f9   :  { %761 = vmatpush.bf16.msra.mxu3 %v4812_v57 }
 0x3fa   :  { %828 = vmatpush.bf16.msrb.mxu0 %v4804_v58 }
 0x3fb   :  { %951 = vmatpush.bf16.msrb.mxu1 %v4820_v59 }
 0x3fd   :  { %762 = vmatpush.bf16.msra.mxu3 %v4811_v60 }
 0x3fe   :  { %829 = vmatpush.bf16.msrb.mxu0 %v4803_v63 }
 0x3ff   :  { %952 = vmatpush.bf16.msrb.mxu1 %v4819_v4 }
 0x401   :  { %763 = vmatpush.bf16.msra.mxu3 %v4810_v7 }
 0x402   :  { %830 = vmatpush.bf16.msrb.mxu0 %v4802_v11 }
 0x403   :  { %953 = vmatpush.bf16.msrb.mxu1 %v4818_v14 }
 0x404   :  { %4027 = vmatmul.msk.bf16.vlgmr.msra.gmra.mxu3 %vm4025_vm14, %v4026_v17 }
 0x405   :  { %831 = vmatmul.bf16.vlgmr.msrb.gmra.mxu0 %v634_v18 }
 0x406   :  { %4097 = vmatmul.msk.bf16.vlgmr.msrb.gmra.mxu1 %vm4095_vm15, %v4096_v19 }
 0x414   :  { %4030 = vmatmul.msk.bf16.gmra.mxu3 %vm4028_vm2, %v4029_v30 }
 0x415   :  { %836 = vmatmul.bf16.gmra.mxu0 %v635_v31 }
 0x416   :  { %4100 = vmatmul.msk.bf16.gmra.mxu1 %vm4098_vm3, %v4099_v32 }
 0x482   :  { %v832_v37 = vpop.f32.mrf.mxu0 }
 0x483   :  { %v955_v38 = vpop.f32.mrf.mxu1 }
 0x487   :  { %v765_v39 = vpop.f32.mrf.mxu3 }
 0x488   :  { %v833_v48 = vadd.f32 %v832_v37, %v765_v39 }
 0x48a   :  { %v834_v40 = vpop.f32.mrf.mxu0  ;;  %v5559_v51 = vadd.f32 %v955_v38, %v833_v48 }
 0x48b   :  { %v957_v41 = vpop.f32.mrf.mxu1 }
 0x48c   :  { %v980_v56 = vmul.f32 %v5559_v51, %v5559_v51 }
 0x48f   :  { %v767_v42 = vpop.f32.mrf.mxu3 }
 0x490   :  { %v835_v44 = vadd.f32 %v834_v40, %v767_v42 }
 0x492   :  { %v837_v43 = vpop.f32.mrf.mxu0  ;;  %v5557_v50 = vadd.f32 %v957_v41, %v835_v44 }
 0x493   :  { %v960_v46 = vpop.f32.mrf.mxu1 }
 0x494   :  { %v981_v53 = vmul.f32 %v5557_v50, %v5557_v50  ;;  %v971_v57 = vadd.f32 %v5557_v50, %v5559_v51 }
 0x496   :  { %v984_v63 = vadd.f32 %v981_v53, %v980_v56 }
 0x497   :  { %v770_v47 = vpop.f32.mrf.mxu3 }
 0x498   :  { %v838_v49 = vadd.f32 %v837_v43, %v770_v47 }
 0x49a   :  { %v5561_v52 = vadd.f32 %v960_v46, %v838_v49  ;;  %v839_v54 = vpop.f32.mrf.mxu0 }
 0x49b   :  { %v962_v60 = vpop.f32.mrf.mxu1 }
 0x49c   :  { %v982_v58 = vmul.f32 %v5561_v52, %v5561_v52  ;;  %v972_v0 = vadd.f32 %v971_v57, %v5561_v52  ;;  %v4101_v57 = vld [vmem:[%s6071_s1 + $0x4] sm:$0x7] }
 0x49e   :  { %v985_v2 = vadd.f32 %v984_v63, %v982_v58 }
 0x49f   :  { %v772_v55 = vpop.f32.mrf.mxu3 }
 0x4a0   :  { %v840_v59 = vadd.f32 %v839_v54, %v772_v55 }
 0x4a2   :  { %v5572_v1 = vadd.f32 %v962_v60, %v840_v59 }
 0x4a4   :  { %v973_v3 = vadd.f32 %v972_v0, %v5572_v1  ;;  %v983_v4 = vmul.f32 %v5572_v1, %v5572_v1 }
 0x4a6   :  { %v974_v5 = vrot.slane %v973_v3, 4  ;;  %v986_v6 = vadd.f32 %v985_v2, %v983_v4 }
 0x4a8   :  { %v975_v61 = vadd.f32 %v974_v5, %v973_v3  ;;  %v987_v62 = vrot.slane %v986_v6, 4 }
 0x4aa   :  { %v976_v7 = vrot.slane %v975_v61, 2  ;;  %v988_v11 = vadd.f32 %v987_v62, %v986_v6 }
 0x4ac   :  { %v977_v12 = vadd.f32 %v976_v7, %v975_v61  ;;  %v989_v13 = vrot.slane %v988_v11, 2 }
 0x4ae   :  { %v978_v14 = vrot.slane %v977_v12, 1  ;;  %v990_v16 = vadd.f32 %v989_v13, %v988_v11 }
 0x4b0   :  { %v979_v15 = vadd.f32 %v978_v14, %v977_v12  ;;  %v991_v17 = vrot.slane %v990_v16, 1 }
 0x4b2   :  { %993 = vrot.lane.b32.xlu0 %v979_v15, %s5285_s19  ;;  %v992_v18 = vadd.f32 %v991_v17, %v990_v16 }
 0x4ba   :  { %996 = vrot.lane.b32.xlu0 %v992_v18, %s5285_s19 }
 0x524   :  { %v994_v19 = vpop.permute.xlu0 %993 }
 0x525   :  { %v995_v20 = vadd.f32 %v994_v19, %v979_v15 }
 0x527   :  { %999 = vrot.lane.b32.xlu1 %v995_v20, %s5286_s20 }
 0x52c   :  { %v997_v22 = vpop.permute.xlu0 %996 }
 0x52d   :  { %v998_v23 = vadd.f32 %v997_v22, %v992_v18 }
 0x52f   :  { %1002 = vrot.lane.b32.xlu1 %v998_v23, %s5286_s20 }
 0x599   :  { %v1000_v24 = vpop.permute.xlu1 %999 }
 0x59a   :  { %v1001_v25 = vadd.f32 %v1000_v24, %v995_v20 }
 0x59c   :  { %1005 = vrot.lane.b32.xlu2 %v1001_v25, %s5287_s21 }
 0x5a1   :  { %v1003_v26 = vpop.permute.xlu1 %1002 }
 0x5a2   :  { %v1004_v27 = vadd.f32 %v1003_v26, %v998_v23 }
 0x5a4   :  { %1008 = vrot.lane.b32.xlu2 %v1004_v27, %s5287_s21 }
 0x5f6   :  { %v1006_v28 = vpop.permute.xlu2 %1005 }
 0x5f7   :  { %v1007_v30 = vadd.f32 %v1006_v28, %v1001_v25 }
 0x5f9   :  { %1011 = vrot.lane.b32.xlu0 %v1007_v30, %s5288_s22 }
 0x5fe   :  { %v1009_v31 = vpop.permute.xlu2 %1008 }
 0x5ff   :  { %v1010_v32 = vadd.f32 %v1009_v31, %v1004_v27 }
 0x601   :  { %1014 = vrot.lane.b32.xlu1 %v1010_v32, %s5288_s22 }
 0x66b   :  { %v1012_v37 = vpop.permute.xlu0 %1011 }
 0x66c   :  { %v1013_v38 = vadd.f32 %v1012_v37, %v1007_v30 }
 0x66e   :  { %v1017_v39 = vmul.f32 0.001953125, %v1013_v38 }
 0x670   :  { %v1019_v42 = vmul.f32 %v1017_v39, %v1017_v39  ;;  %v1042_v60 = vrot.slane %v1017_v39, 7 }
 0x673   :  { %v1015_v40 = vpop.permute.xlu1 %1014 }
 0x674   :  { %v1016_v41 = vadd.f32 %v1015_v40, %v1010_v32 }
 0x676   :  { %v1018_v43 = vmul.f32 0.001953125, %v1016_v41 }
 0x678   :  { %v1020_v44 = vsub.f32 %v1018_v43, %v1019_v42 }
 0x67a   :  { %v1021_v46 = vmax.f32 %v1020_v44, 0.0 }
 0x67c   :  { %v1022_v47 = vadd.f32 1e-05, %v1021_v46 }
 0x67e   :  { %5007 = vrsqrt.f32 %v1022_v47  ;;  %vm1029_vm7 = vweird.f32 %v1022_v47 }
 0x684   :  { %v5008_v48 = vpop.eup %5007 }
 0x685   :  { %v1024_v49 = vmul.f32 %v5008_v48, %v1022_v47  ;;  %vm1030_vm6 = vweird.f32 %v5008_v48 }
 0x686   :  { %vm1031_vm9 = vmor %vm1029_vm7, %vm1030_vm6 }
 0x687   :  { %v1025_v53 = vmul.f32 %v5008_v48, %v1024_v49 }
 0x689   :  { %v1026_v54 = vmul.f32 0.5, %v1025_v53 }
 0x68b   :  { %v1027_v55 = vsub.f32 1.5, %v1026_v54 }
 0x68d   :  { %v1028_v56 = vmul.f32 %v5008_v48, %v1027_v55 }
 0x68f   :  { %v1032_v58 = vsel %vm1031_vm9, %v5008_v48, %v1028_v56 }
 0x690   :  { %v1034_v59 = vrot.slane %v1032_v58, 7 }
 0x692   :  { %v1036_v63 = vmul.f32 %v4101_v57, %v1034_v59 }
 0x694   :  { %v1038_v0 = vrot.slane %v1036_v63, 1  ;;  %v1044_v2 = vmul.f32 %v1042_v60, %v1036_v63 }
 0x696   :  { %v1040_v3 = vadd.f32 %v4101_v57, %v1038_v0  ;;  %v1046_v4 = vrot.slane %v1044_v2, 7 }
 0x698   :  { %v1048_v5 = vsub.f32 %v4101_v57, %v1046_v4  ;;  %v1049_v6 = vperm.slane %v1040_v3, 0 }
 0x69a   :  { %v1050_v61 = vmul.f32 %v1049_v6, %v5559_v51  ;;  %v1051_v62 = vmul.f32 %v1049_v6, %v5557_v50  ;;  %v1052_v7 = vmul.f32 %v1049_v6, %v5561_v52  ;;  %v1053_v11 = vmul.f32 %v1049_v6, %v5572_v1 }
 0x69b   :  { %v1054_v12 = vperm.slane %v1048_v5, 2 }
 0x69d   :  { %v1055_v13 = vadd.f32 %v1054_v12, %v1050_v61  ;;  %v1056_v14 = vadd.f32 %v1054_v12, %v1051_v62  ;;  %v1057_v15 = vadd.f32 %v1054_v12, %v1052_v7  ;;  %v1058_v16 = vadd.f32 %v1054_v12, %v1053_v11 }
 0x69f   :  { %vm1059_vm12 = vcmp.ge.f32.partialorder %v1055_v13, 0.0  ;;  %vm1060_vm13 = vcmp.ge.f32.partialorder %v1056_v14, 0.0  ;;  %vm1061_vm14 = vcmp.ge.f32.partialorder %v1057_v15, 0.0  ;;  %vm1062_vm15 = vcmp.ge.f32.partialorder %v1058_v16, 0.0 }
 0x6a0   :  { %v1063_v17 = vmul.f32 0.2, %v1055_v13  ;;  %v1064_v18 = vmul.f32 0.2, %v1056_v14  ;;  %v1065_v19 = vmul.f32 0.2, %v1057_v15 }
 0x6a1   :  { %v1066_v20 = vmul.f32 0.2, %v1058_v16 }
 0x6a2   :  { %v5592_v51 = vsel %vm1059_vm12, %v1055_v13, %v1063_v17  ;;  %v5594_v50 = vsel %vm1060_vm13, %v1056_v14, %v1064_v18  ;;  %v5596_v52 = vsel %vm1061_vm14, %v1057_v15, %v1065_v19 }
 0x6a3   :  { %v5598_v1 = vsel %vm1062_vm15, %v1058_v16, %v1066_v20 }
 0x6a4   :  { %5265 = dma.done.wait [#allocation3], 3072 }
 0x6a5   :  { %5266 = vsyncadd [#allocation3], 4294964224  ;;  %s1073_s7 = scalar_lea.hbm %s6073_s3, 576  ;;  %v1105_v48 = vrot.slane %v5592_v51, 5  ;;  %v1106_v49 = vrot.slane %v5594_v50, 5  ;;  %v1108_v53 = vrot.slane %v5598_v1, 5  ;;  %v1087_v61 = vpack.c.bf16 %v5594_v50, %v5592_v51 }
 0x6a6   :  { %s1081_s8 = sshll.u32 %s1073_s7, 4  ;;  %v1294_v54 = vrot.slane %v5592_v51, 3  ;;  %vm1109_vm0 = vcmp.lt.s32.totalorder %v5357_v29, 3  ;;  %v1114_v56 = vadd.s32 4294967293, %v5363_v33  ;;  %v1295_v57 = vrot.slane %v5594_v50, 3  ;;  %s1082_s8 = int_to_ptr.hbm [resolvable:$true] %s1081_s8 }
 0x6a7   :  { %1086 = dma.hbm_to_vmem [thread:$0]  %s1082_s8, 3072, %s5420_s18, [#allocation3 + $0x1]  ;;  %v1296_v58 = vrot.slane %v5596_v52, 3  ;;  %vm1298_vm1 = vcmp.lt.s32.totalorder %v5357_v29, 5  ;;  %v1304_v59 = vadd.s32 3, %v5367_v34  ;;  %v1112_v0 = vsel %vm1109_vm0, %v1105_v48, %v1106_v49 }
 0x6a8   :  { %v4841_v22 = vld [vmem:[#allocation2 + $0x38] sm:$0xff]  ;;  %v4840_v25 = vld [vmem:[#allocation2 + $0x30] sm:$0xff]  ;;  %v4839_v28 = vld [vmem:[#allocation2 + $0x28] sm:$0xff]  ;;  %v1113_v2 = vsel %vm1109_vm0, %v1108_v53, %v1105_v48  ;;  %vm1118_vm2 = vcmp.ge.s32.totalorder %v1114_v56, 0  ;;  %v1301_v5 = vsel %vm1298_vm1, %v1294_v54, %v1295_v57  ;;  %v1107_v7 = vrot.slane %v5596_v52, 5 }
 0x6a9   :  { %v4833_v23 = vld [vmem:[#allocation2 + $0x78] sm:$0xff]  ;;  %1208 = vmatpush.bf16.msrb.mxu2 %v4841_v22  ;;  %v4832_v26 = vld [vmem:[#allocation2 + $0x70] sm:$0xff]  ;;  %v4831_v30 = vld [vmem:[#allocation2 + $0x68] sm:$0xff]  ;;  %v1300_v4 = vsel %vm1298_vm1, %v1295_v57, %v1296_v58  ;;  %vm1312_vm3 = vcmp.lt.s32.totalorder %v1304_v59, 16  ;;  %v4135_v6 = vpack.c.bf16 %v1112_v0, %v1113_v2  ;;  %v1116_v11 = vadd.s32 4294967293, %v5369_v35 }
 0x6aa   :  { %v4849_v24 = vld [vmem:[#allocation2 + $0xb8] sm:$0xff]  ;;  %1275 = vmatpush.bf16.msrb.mxu3 %v4833_v23  ;;  %v4848_v27 = vld [vmem:[#allocation2 + $0xb0] sm:$0xff]  ;;  %v4847_v31 = vld [vmem:[#allocation2 + $0xa8] sm:$0xff]  ;;  %v4205_v62 = vpack.c.bf16 %v1300_v4, %v1301_v5  ;;  %v1297_v12 = vrot.slane %v5598_v1, 3  ;;  %v1306_v13 = vadd.s32 3, %v5371_v36  ;;  %v1110_v14 = vsel %vm1109_vm0, %v1107_v7, %v1108_v53 }
 0x6ab   :  { %1397 = vmatpush.bf16.msra.mxu0 %v4849_v24  ;;  %v4838_v32 = vld [vmem:[#allocation2 + $0x20] sm:$0xff]  ;;  %v4837_v39 = vld [vmem:[#allocation2 + $0x18] sm:$0xff]  ;;  %v4836_v42 = vld [vmem:[#allocation2 + $0x10] sm:$0xff]  ;;  %v1111_v15 = vsel %vm1109_vm0, %v1106_v49, %v1107_v7  ;;  %vm1120_vm9 = vcmp.ge.s32.totalorder %v1116_v11, 0  ;;  %v1088_v19 = vpack.c.bf16 %v5598_v1, %v5596_v52 }
 0x6ac   :  { %v4830_v37 = vld [vmem:[#allocation2 + $0x60] sm:$0xff]  ;;  %v4829_v40 = vld [vmem:[#allocation2 + $0x58] sm:$0xff]  ;;  %v4828_v43 = vld [vmem:[#allocation2 + $0x50] sm:$0xff]  ;;  %v1299_v16 = vsel %vm1298_vm1, %v1296_v58, %v1297_v12  ;;  %v1302_v17 = vsel %vm1298_vm1, %v1297_v12, %v1294_v54  ;;  %vm1314_vm12 = vcmp.lt.s32.totalorder %v1306_v13, 16  ;;  %v4138_v18 = vpack.c.bf16 %v1110_v14, %v1111_v15 }
 0x6ad   :  { %1209 = vmatpush.bf16.msrb.mxu2 %v4840_v25  ;;  %v4846_v38 = vld [vmem:[#allocation2 + $0xa0] sm:$0xff]  ;;  %v4845_v41 = vld [vmem:[#allocation2 + $0x98] sm:$0xff]  ;;  %v4844_v44 = vld [vmem:[#allocation2 + $0x90] sm:$0xff]  ;;  %v4208_v20 = vpack.c.bf16 %v1302_v17, %v1299_v16 }
 0x6ae   :  { %1276 = vmatpush.bf16.msrb.mxu3 %v4832_v26  ;;  %v4835_v46 = vld [vmem:[#allocation2 + $0x8] sm:$0xff]  ;;  %v4834_v60 = vld [vmem:[#allocation2] sm:$0xff]  ;;  %vm4134_vm6 = vmpackc.low %vm5284_vm8, %vm1118_vm2 }
 0x6af   :  { %1398 = vmatpush.bf16.msra.mxu0 %v4848_v27  ;;  %v4827_v47 = vld [vmem:[#allocation2 + $0x48] sm:$0xff]  ;;  %v4826_v63 = vld [vmem:[#allocation2 + $0x40] sm:$0xff]  ;;  %vm4204_vm7 = vmpackc.low %vm1312_vm3, %vm5284_vm8 }
 0x6b0   :  { %v4843_v55 = vld [vmem:[#allocation2 + $0x88] sm:$0xff]  ;;  %v4842_v3 = vld [vmem:[#allocation2 + $0x80] sm:$0xff]  ;;  %vm4137_vm13 = vmpackc.low %vm5284_vm8, %vm1120_vm9 }
 0x6b1   :  { %1210 = vmatpush.bf16.msrb.mxu2 %v4839_v28  ;;  %vm4207_vm14 = vmpackc.low %vm1314_vm12, %vm5284_vm8 }
 0x6b2   :  { %1277 = vmatpush.bf16.msrb.mxu3 %v4831_v30 }
 0x6b3   :  { %1399 = vmatpush.bf16.msra.mxu0 %v4847_v31 }
 0x6b5   :  { %1211 = vmatpush.bf16.msrb.mxu2 %v4838_v32 }
 0x6b6   :  { %1278 = vmatpush.bf16.msrb.mxu3 %v4830_v37 }
 0x6b7   :  { %1400 = vmatpush.bf16.msra.mxu0 %v4846_v38 }
 0x6b9   :  { %1212 = vmatpush.bf16.msrb.mxu2 %v4837_v39 }
 0x6ba   :  { %1279 = vmatpush.bf16.msrb.mxu3 %v4829_v40 }
 0x6bb   :  { %1401 = vmatpush.bf16.msra.mxu0 %v4845_v41 }
 0x6bd   :  { %1213 = vmatpush.bf16.msrb.mxu2 %v4836_v42 }
 0x6be   :  { %1280 = vmatpush.bf16.msrb.mxu3 %v4828_v43 }
 0x6bf   :  { %1402 = vmatpush.bf16.msra.mxu0 %v4844_v44 }
 0x6c1   :  { %1214 = vmatpush.bf16.msrb.mxu2 %v4835_v46 }
 0x6c2   :  { %1281 = vmatpush.bf16.msrb.mxu3 %v4827_v47 }
 0x6c3   :  { %1403 = vmatpush.bf16.msra.mxu0 %v4843_v55 }
 0x6c5   :  { %1215 = vmatpush.bf16.msrb.mxu2 %v4834_v60 }
 0x6c6   :  { %1282 = vmatpush.bf16.msrb.mxu3 %v4826_v63 }
 0x6c7   :  { %1404 = vmatpush.bf16.msra.mxu0 %v4842_v3 }
 0x6c8   :  { %4136 = vmatmul.msk.bf16.vlgmr.msrb.gmra.mxu2 %vm4134_vm6, %v4135_v6 }
 0x6c9   :  { %1283 = vmatmul.bf16.vlgmr.msrb.gmra.mxu3 %v1087_v61 }
 0x6ca   :  { %4206 = vmatmul.msk.bf16.vlgmr.msra.gmra.mxu0 %vm4204_vm7, %v4205_v62 }
 0x6d8   :  { %4139 = vmatmul.msk.bf16.gmra.mxu2 %vm4137_vm13, %v4138_v18 }
 0x6d9   :  { %1288 = vmatmul.bf16.gmra.mxu3 %v1088_v19 }
 0x6da   :  { %4209 = vmatmul.msk.bf16.gmra.mxu0 %vm4207_vm14, %v4208_v20 }
 0x747   :  { %v1406_v51 = vpop.f32.mrf.mxu0 }
 0x74b   :  { %v1217_v50 = vpop.f32.mrf.mxu2 }
 0x74c   :  { %v1284_v22 = vpop.f32.mrf.mxu3 }
 0x74d   :  { %v1285_v31 = vadd.f32 %v1284_v22, %v1217_v50 }
 0x74f   :  { %v1408_v23 = vpop.f32.mrf.mxu0  ;;  %v5644_v32 = vadd.f32 %v1406_v51, %v1285_v31 }
 0x751   :  { %v1431_v41 = vmul.f32 %v5644_v32, %v5644_v32 }
 0x753   :  { %v1219_v24 = vpop.f32.mrf.mxu2 }
 0x754   :  { %v1286_v25 = vpop.f32.mrf.mxu3 }
 0x755   :  { %v1287_v26 = vadd.f32 %v1286_v25, %v1219_v24 }
 0x757   :  { %v1411_v27 = vpop.f32.mrf.mxu0  ;;  %v5642_v1 = vadd.f32 %v1408_v23, %v1287_v26 }
 0x759   :  { %v1432_v38 = vmul.f32 %v5642_v1, %v5642_v1  ;;  %v1422_v42 = vadd.f32 %v5642_v1, %v5644_v32 }
 0x75b   :  { %v1222_v28 = vpop.f32.mrf.mxu2  ;;  %v1435_v47 = vadd.f32 %v1432_v38, %v1431_v41 }
 0x75c   :  { %v1289_v30 = vpop.f32.mrf.mxu3 }
 0x75d   :  { %v1290_v52 = vadd.f32 %v1289_v30, %v1222_v28 }
 0x75f   :  { %v5646_v37 = vadd.f32 %v1411_v27, %v1290_v52  ;;  %v1413_v46 = vpop.f32.mrf.mxu0 }
 0x761   :  { %v1433_v43 = vmul.f32 %v5646_v37, %v5646_v37  ;;  %v1423_v48 = vadd.f32 %v1422_v42, %v5646_v37  ;;  %v4210_v42 = vld [vmem:[%s6071_s1 + $0x8] sm:$0x7] }
 0x763   :  { %v1224_v39 = vpop.f32.mrf.mxu2  ;;  %v1436_v53 = vadd.f32 %v1435_v47, %v1433_v43 }
 0x764   :  { %v1291_v40 = vpop.f32.mrf.mxu3 }
 0x765   :  { %v1292_v44 = vadd.f32 %v1291_v40, %v1224_v39 }
 0x767   :  { %v5657_v49 = vadd.f32 %v1413_v46, %v1292_v44 }
 0x769   :  { %v1424_v54 = vadd.f32 %v1423_v48, %v5657_v49  ;;  %v1434_v55 = vmul.f32 %v5657_v49, %v5657_v49 }
 0x76b   :  { %v1425_v56 = vrot.slane %v1424_v54, 4  ;;  %v1437_v57 = vadd.f32 %v1436_v53, %v1434_v55 }
 0x76d   :  { %v1426_v58 = vadd.f32 %v1425_v56, %v1424_v54  ;;  %v1438_v59 = vrot.slane %v1437_v57, 4 }
 0x76f   :  { %v1427_v60 = vrot.slane %v1426_v58, 2  ;;  %v1439_v63 = vadd.f32 %v1438_v59, %v1437_v57 }
 0x771   :  { %v1428_v0 = vadd.f32 %v1427_v60, %v1426_v58  ;;  %v1440_v2 = vrot.slane %v1439_v63, 2 }
 0x773   :  { %v1429_v3 = vrot.slane %v1428_v0, 1  ;;  %v1441_v5 = vadd.f32 %v1440_v2, %v1439_v63 }
 0x775   :  { %v1430_v4 = vadd.f32 %v1429_v3, %v1428_v0  ;;  %v1442_v6 = vrot.slane %v1441_v5, 1 }
 0x777   :  { %1444 = vrot.lane.b32.xlu0 %v1430_v4, %s5285_s19  ;;  %v1443_v61 = vadd.f32 %v1442_v6, %v1441_v5 }
 0x77f   :  { %1447 = vrot.lane.b32.xlu0 %v1443_v61, %s5285_s19 }
 0x7e9   :  { %v1445_v62 = vpop.permute.xlu0 %1444 }
 0x7ea   :  { %v1446_v7 = vadd.f32 %v1445_v62, %v1430_v4 }
 0x7ec   :  { %1450 = vrot.lane.b32.xlu1 %v1446_v7, %s5286_s20 }
 0x7f1   :  { %v1448_v11 = vpop.permute.xlu0 %1447 }
 0x7f2   :  { %v1449_v12 = vadd.f32 %v1448_v11, %v1443_v61 }
 0x7f4   :  { %1453 = vrot.lane.b32.xlu1 %v1449_v12, %s5286_s20 }
 0x85e   :  { %v1451_v13 = vpop.permute.xlu1 %1450 }
 0x85f   :  { %v1452_v14 = vadd.f32 %v1451_v13, %v1446_v7 }
 0x861   :  { %1456 = vrot.lane.b32.xlu2 %v1452_v14, %s5287_s21 }
 0x866   :  { %v1454_v15 = vpop.permute.xlu1 %1453 }
 0x867   :  { %v1455_v16 = vadd.f32 %v1454_v15, %v1449_v12 }
 0x869   :  { %1459 = vrot.lane.b32.xlu2 %v1455_v16, %s5287_s21 }
 0x8bb   :  { %v1457_v17 = vpop.permute.xlu2 %1456 }
 0x8bc   :  { %v1458_v18 = vadd.f32 %v1457_v17, %v1452_v14 }
 0x8be   :  { %1462 = vrot.lane.b32.xlu0 %v1458_v18, %s5288_s22 }
 0x8c3   :  { %v1460_v19 = vpop.permute.xlu2 %1459 }
 0x8c4   :  { %v1461_v20 = vadd.f32 %v1460_v19, %v1455_v16 }
 0x8c6   :  { %1465 = vrot.lane.b32.xlu1 %v1461_v20, %s5288_s22 }
 0x930   :  { %v1463_v51 = vpop.permute.xlu0 %1462 }
 0x931   :  { %v1464_v50 = vadd.f32 %v1463_v51, %v1458_v18 }
 0x933   :  { %v1468_v22 = vmul.f32 0.001953125, %v1464_v50 }
 0x935   :  { %v1470_v25 = vmul.f32 %v1468_v22, %v1468_v22  ;;  %v1493_v46 = vrot.slane %v1468_v22, 7 }
 0x938   :  { %v1466_v23 = vpop.permute.xlu1 %1465 }
 0x939   :  { %v1467_v24 = vadd.f32 %v1466_v23, %v1461_v20 }
 0x93b   :  { %v1469_v26 = vmul.f32 0.001953125, %v1467_v24 }
 0x93d   :  { %v1471_v27 = vsub.f32 %v1469_v26, %v1470_v25 }
 0x93f   :  { %v1472_v28 = vmax.f32 %v1471_v27, 0.0 }
 0x941   :  { %v1473_v30 = vadd.f32 1e-05, %v1472_v28 }
 0x943   :  { %5009 = vrsqrt.f32 %v1473_v30  ;;  %vm1480_vm2 = vweird.f32 %v1473_v30 }
 0x949   :  { %v5010_v31 = vpop.eup %5009 }
 0x94a   :  { %v1475_v52 = vmul.f32 %v5010_v31, %v1473_v30  ;;  %vm1481_vm15 = vweird.f32 %v5010_v31 }
 0x94b   :  { %vm1482_vm3 = vmor %vm1480_vm2, %vm1481_vm15 }
 0x94c   :  { %v1476_v38 = vmul.f32 %v5010_v31, %v1475_v52 }
 0x94e   :  { %v1477_v39 = vmul.f32 0.5, %v1476_v38 }
 0x950   :  { %v1478_v40 = vsub.f32 1.5, %v1477_v39 }
 0x952   :  { %v1479_v41 = vmul.f32 %v5010_v31, %v1478_v40 }
 0x954   :  { %v1483_v43 = vsel %vm1482_vm3, %v5010_v31, %v1479_v41 }
 0x955   :  { %v1485_v44 = vrot.slane %v1483_v43, 7 }
 0x957   :  { %v1487_v47 = vmul.f32 %v4210_v42, %v1485_v44 }
 0x959   :  { %v1489_v48 = vrot.slane %v1487_v47, 1  ;;  %v1495_v53 = vmul.f32 %v1493_v46, %v1487_v47 }
 0x95b   :  { %v1491_v54 = vadd.f32 %v4210_v42, %v1489_v48  ;;  %v1497_v55 = vrot.slane %v1495_v53, 7 }
 0x95d   :  { %v1499_v56 = vsub.f32 %v4210_v42, %v1497_v55  ;;  %v1500_v57 = vperm.slane %v1491_v54, 0 }
 0x95f   :  { %v1501_v58 = vmul.f32 %v1500_v57, %v5644_v32  ;;  %v1502_v59 = vmul.f32 %v1500_v57, %v5642_v1  ;;  %v1503_v60 = vmul.f32 %v1500_v57, %v5646_v37  ;;  %v1504_v63 = vmul.f32 %v1500_v57, %v5657_v49 }
 0x960   :  { %v1505_v0 = vperm.slane %v1499_v56, 2 }
 0x962   :  { %v1506_v2 = vadd.f32 %v1505_v0, %v1501_v58  ;;  %v1507_v3 = vadd.f32 %v1505_v0, %v1502_v59  ;;  %v1508_v4 = vadd.f32 %v1505_v0, %v1503_v60  ;;  %v1509_v5 = vadd.f32 %v1505_v0, %v1504_v63 }
 0x964   :  { %v1510_v6 = vadd.f32 %v1506_v2, %v5507_v9  ;;  %v1511_v61 = vadd.f32 %v1507_v3, %v5509_v8  ;;  %v1512_v62 = vadd.f32 %v1508_v4, %v5511_v10  ;;  %v1513_v7 = vadd.f32 %v1509_v5, %v5513_v21 }
 0x966   :  { %vm1514_vm6 = vcmp.ge.f32.partialorder %v1510_v6, 0.0  ;;  %vm1515_vm7 = vcmp.ge.f32.partialorder %v1511_v61, 0.0  ;;  %vm1516_vm9 = vcmp.ge.f32.partialorder %v1512_v62, 0.0  ;;  %vm1517_vm12 = vcmp.ge.f32.partialorder %v1513_v7, 0.0 }
 0x967   :  { %v1518_v1 = vmul.f32 0.2, %v1510_v6  ;;  %v1519_v32 = vmul.f32 0.2, %v1511_v61  ;;  %v1520_v37 = vmul.f32 0.2, %v1512_v62 }
 0x968   :  { %v1521_v49 = vmul.f32 0.2, %v1513_v7 }
 0x969   :  { %v5681_v11 = vsel %vm1514_vm6, %v1510_v6, %v1518_v1  ;;  %v5683_v12 = vsel %vm1515_vm7, %v1511_v61, %v1519_v32  ;;  %v5685_v13 = vsel %vm1516_vm9, %v1512_v62, %v1520_v37 }
 0x96a   :  { %v5687_v9 = vsel %vm1517_vm12, %v1513_v7, %v1521_v49 }
 0x96b   :  { %5267 = dma.done.wait [#allocation3 + $0x1], 3072 }
 0x96c   :  { %5268 = vsyncadd [#allocation3 + $0x1], 4294964224  ;;  %s1528_s13 = scalar_lea.hbm %s6073_s3, 768  ;;  %v1560_v31 = vrot.slane %v5681_v11, 4  ;;  %v1561_v52 = vrot.slane %v5683_v12, 4  ;;  %v1563_v38 = vrot.slane %v5687_v9, 4  ;;  %v1542_v55 = vpack.c.bf16 %v5683_v12, %v5681_v11 }
 0x96d   :  { %s1536_s2 = sshll.u32 %s1528_s13, 4  ;;  %vm1564_vm13 = vcmp.lt.s32.totalorder %v5357_v29, 4  ;;  %v1569_v40 = vadd.s32 4294967292, %v5363_v33  ;;  %v1562_v41 = vrot.slane %v5685_v13, 4  ;;  %v1750_v42 = vadd.s32 4, %v5367_v34  ;;  %s1537_s2 = int_to_ptr.hbm [resolvable:$true] %s1536_s2 }
 0x96e   :  { %1541 = dma.hbm_to_vmem [thread:$0]  %s1537_s2, 3072, %s5352_s26, [#allocation3]  ;;  %v1567_v46 = vsel %vm1564_vm13, %v1560_v31, %v1561_v52  ;;  %v1568_v47 = vsel %vm1564_vm13, %v1563_v38, %v1560_v31  ;;  %v1571_v57 = vadd.s32 4294967292, %v5369_v35  ;;  %v1752_v58 = vadd.s32 4, %v5371_v36 }
 0x96f   :  { %v4865_v8 = vld [vmem:[#allocation2 + $0xf8] sm:$0xff]  ;;  %v4864_v14 = vld [vmem:[#allocation2 + $0xf0] sm:$0xff]  ;;  %v4863_v17 = vld [vmem:[#allocation2 + $0xe8] sm:$0xff]  ;;  %vm1573_vm14 = vcmp.ge.s32.totalorder %v1569_v40, 0  ;;  %v1566_v53 = vsel %vm1564_vm13, %v1561_v52, %v1562_v41  ;;  %vm1758_vm15 = vcmp.lt.s32.totalorder %v1750_v42, 16  ;;  %v4244_v54 = vpack.c.bf16 %v1567_v46, %v1568_v47 }
 0x970   :  { %v4857_v10 = vld [vmem:[#allocation2 + $0x138] sm:$0xff]  ;;  %1663 = vmatpush.bf16.msra.mxu1 %v4865_v8  ;;  %v4856_v15 = vld [vmem:[#allocation2 + $0x130] sm:$0xff]  ;;  %v4855_v18 = vld [vmem:[#allocation2 + $0x128] sm:$0xff]  ;;  %v4314_v56 = vpack.c.bf16 %v1566_v53, %v1567_v46  ;;  %v1565_v59 = vsel %vm1564_vm13, %v1562_v41, %v1563_v38  ;;  %vm1575_vm6 = vcmp.ge.s32.totalorder %v1571_v57, 0  ;;  %vm1760_vm7 = vcmp.lt.s32.totalorder %v1752_v58, 16 }
 0x971   :  { %v4873_v21 = vld [vmem:[#allocation2 + $0x178] sm:$0xff]  ;;  %1730 = vmatpush.bf16.msra.mxu2 %v4857_v10  ;;  %v4872_v16 = vld [vmem:[#allocation2 + $0x170] sm:$0xff]  ;;  %v4871_v19 = vld [vmem:[#allocation2 + $0x168] sm:$0xff]  ;;  %v4247_v60 = vpack.c.bf16 %v1565_v59, %v1566_v53  ;;  %v1543_v63 = vpack.c.bf16 %v5687_v9, %v5685_v13  ;;  %v4317_v0 = vpack.c.bf16 %v1568_v47, %v1565_v59 }
 0x972   :  { %1843 = vmatpush.bf16.msra.mxu3 %v4873_v21  ;;  %v4862_v20 = vld [vmem:[#allocation2 + $0xe0] sm:$0xff]  ;;  %v4861_v22 = vld [vmem:[#allocation2 + $0xd8] sm:$0xff]  ;;  %v4860_v25 = vld [vmem:[#allocation2 + $0xd0] sm:$0xff] }
 0x973   :  { %v4854_v51 = vld [vmem:[#allocation2 + $0x120] sm:$0xff]  ;;  %v4853_v23 = vld [vmem:[#allocation2 + $0x118] sm:$0xff]  ;;  %v4852_v26 = vld [vmem:[#allocation2 + $0x110] sm:$0xff] }
 0x974   :  { %1664 = vmatpush.bf16.msra.mxu1 %v4864_v14  ;;  %v4870_v50 = vld [vmem:[#allocation2 + $0x160] sm:$0xff]  ;;  %v4869_v24 = vld [vmem:[#allocation2 + $0x158] sm:$0xff]  ;;  %v4868_v27 = vld [vmem:[#allocation2 + $0x150] sm:$0xff] }
 0x975   :  { %1731 = vmatpush.bf16.msra.mxu2 %v4856_v15  ;;  %v4859_v28 = vld [vmem:[#allocation2 + $0xc8] sm:$0xff]  ;;  %v4858_v43 = vld [vmem:[#allocation2 + $0xc0] sm:$0xff]  ;;  %vm4243_vm2 = vmpackc.low %vm5284_vm8, %vm1573_vm14 }
 0x976   :  { %1844 = vmatpush.bf16.msra.mxu3 %v4872_v16  ;;  %v4851_v30 = vld [vmem:[#allocation2 + $0x108] sm:$0xff]  ;;  %v4850_v44 = vld [vmem:[#allocation2 + $0x100] sm:$0xff]  ;;  %vm4313_vm3 = vmpackc.low %vm1758_vm15, %vm5284_vm8 }
 0x977   :  { %v4867_v39 = vld [vmem:[#allocation2 + $0x148] sm:$0xff]  ;;  %v4866_v48 = vld [vmem:[#allocation2 + $0x140] sm:$0xff]  ;;  %vm4246_vm9 = vmpackc.low %vm5284_vm8, %vm1575_vm6 }
 0x978   :  { %1665 = vmatpush.bf16.msra.mxu1 %v4863_v17  ;;  %vm4316_vm12 = vmpackc.low %vm1760_vm7, %vm5284_vm8 }
 0x979   :  { %1732 = vmatpush.bf16.msra.mxu2 %v4855_v18 }
 0x97a   :  { %1845 = vmatpush.bf16.msra.mxu3 %v4871_v19 }
 0x97c   :  { %1666 = vmatpush.bf16.msra.mxu1 %v4862_v20 }
 0x97d   :  { %1733 = vmatpush.bf16.msra.mxu2 %v4854_v51 }
 0x97e   :  { %1846 = vmatpush.bf16.msra.mxu3 %v4870_v50 }
 0x980   :  { %1667 = vmatpush.bf16.msra.mxu1 %v4861_v22 }
 0x981   :  { %1734 = vmatpush.bf16.msra.mxu2 %v4853_v23 }
 0x982   :  { %1847 = vmatpush.bf16.msra.mxu3 %v4869_v24 }
 0x984   :  { %1668 = vmatpush.bf16.msra.mxu1 %v4860_v25 }
 0x985   :  { %1735 = vmatpush.bf16.msra.mxu2 %v4852_v26 }
 0x986   :  { %1848 = vmatpush.bf16.msra.mxu3 %v4868_v27 }
 0x988   :  { %1669 = vmatpush.bf16.msra.mxu1 %v4859_v28 }
 0x989   :  { %1736 = vmatpush.bf16.msra.mxu2 %v4851_v30 }
 0x98a   :  { %1849 = vmatpush.bf16.msra.mxu3 %v4867_v39 }
 0x98c   :  { %1670 = vmatpush.bf16.msra.mxu1 %v4858_v43 }
 0x98d   :  { %1737 = vmatpush.bf16.msra.mxu2 %v4850_v44 }
 0x98e   :  { %1850 = vmatpush.bf16.msra.mxu3 %v4866_v48 }
 0x98f   :  { %4245 = vmatmul.msk.bf16.vlgmr.msra.gmra.mxu1 %vm4243_vm2, %v4244_v54 }
 0x990   :  { %1738 = vmatmul.bf16.vlgmr.msra.gmra.mxu2 %v1542_v55 }
 0x991   :  { %4315 = vmatmul.msk.bf16.vlgmr.msra.gmra.mxu3 %vm4313_vm3, %v4314_v56 }
 0x99f   :  { %4248 = vmatmul.msk.bf16.gmra.mxu1 %vm4246_vm9, %v4247_v60 }
 0x9a0   :  { %1743 = vmatmul.bf16.gmra.mxu2 %v1543_v63 }
 0x9a1   :  { %4318 = vmatmul.msk.bf16.gmra.mxu3 %vm4316_vm12, %v4317_v0 }
 0xa0c   :  { %v1672_v2 = vpop.f32.mrf.mxu1 }
 0xa13   :  { %v1739_v3 = vpop.f32.mrf.mxu2 }
 0xa14   :  { %v1852_v4 = vpop.f32.mrf.mxu3  ;;  %v1674_v5 = vpop.f32.mrf.mxu1  ;;  %v1740_v32 = vadd.f32 %v1739_v3, %v1672_v2 }
 0xa16   :  { %v5720_v10 = vadd.f32 %v1852_v4, %v1740_v32 }
 0xa18   :  { %v1877_v17 = vmul.f32 %v5720_v10, %v5720_v10 }
 0xa1b   :  { %v1741_v6 = vpop.f32.mrf.mxu2 }
 0xa1c   :  { %v1854_v61 = vpop.f32.mrf.mxu3  ;;  %v1677_v62 = vpop.f32.mrf.mxu1  ;;  %v1742_v7 = vadd.f32 %v1741_v6, %v1674_v5 }
 0xa1e   :  { %v5718_v8 = vadd.f32 %v1854_v61, %v1742_v7 }
 0xa20   :  { %v1878_v14 = vmul.f32 %v5718_v8, %v5718_v8  ;;  %v1868_v18 = vadd.f32 %v5718_v8, %v5720_v10 }
 0xa22   :  { %v1881_v50 = vadd.f32 %v1878_v14, %v1877_v17 }
 0xa23   :  { %v1744_v1 = vpop.f32.mrf.mxu2 }
 0xa24   :  { %v1745_v37 = vadd.f32 %v1744_v1, %v1677_v62  ;;  %v1857_v49 = vpop.f32.mrf.mxu3  ;;  %v1679_v15 = vpop.f32.mrf.mxu1 }
 0xa26   :  { %v5722_v21 = vadd.f32 %v1857_v49, %v1745_v37 }
 0xa28   :  { %v1879_v19 = vmul.f32 %v5722_v21, %v5722_v21  ;;  %v1869_v22 = vadd.f32 %v1868_v18, %v5722_v21  ;;  %v4319_v18 = vld [vmem:[%s6071_s1 + $0xc] sm:$0x7] }
 0xa2a   :  { %v1882_v24 = vadd.f32 %v1881_v50, %v1879_v19 }
 0xa2b   :  { %v1746_v16 = vpop.f32.mrf.mxu2 }
 0xa2c   :  { %v1747_v20 = vadd.f32 %v1746_v16, %v1679_v15  ;;  %v1859_v51 = vpop.f32.mrf.mxu3 }
 0xa2e   :  { %v5733_v23 = vadd.f32 %v1859_v51, %v1747_v20 }
 0xa30   :  { %v1870_v25 = vadd.f32 %v1869_v22, %v5733_v23  ;;  %v1880_v26 = vmul.f32 %v5733_v23, %v5733_v23 }
 0xa32   :  { %v1871_v27 = vrot.slane %v1870_v25, 4  ;;  %v1883_v28 = vadd.f32 %v1882_v24, %v1880_v26 }
 0xa34   :  { %v1872_v30 = vadd.f32 %v1871_v27, %v1870_v25  ;;  %v1884_v31 = vrot.slane %v1883_v28, 4 }
 0xa36   :  { %v1873_v52 = vrot.slane %v1872_v30, 2  ;;  %v1885_v38 = vadd.f32 %v1884_v31, %v1883_v28 }
 0xa38   :  { %v1874_v39 = vadd.f32 %v1873_v52, %v1872_v30  ;;  %v1886_v40 = vrot.slane %v1885_v38, 2 }
 0xa3a   :  { %v1875_v41 = vrot.slane %v1874_v39, 1  ;;  %v1887_v43 = vadd.f32 %v1886_v40, %v1885_v38 }
 0xa3c   :  { %v1876_v42 = vadd.f32 %v1875_v41, %v1874_v39  ;;  %v1888_v44 = vrot.slane %v1887_v43, 1 }
 0xa3e   :  { %1890 = vrot.lane.b32.xlu0 %v1876_v42, %s5285_s19  ;;  %v1889_v46 = vadd.f32 %v1888_v44, %v1887_v43 }
 0xa46   :  { %1893 = vrot.lane.b32.xlu0 %v1889_v46, %s5285_s19 }
 0xab0   :  { %v1891_v47 = vpop.permute.xlu0 %1890 }
 0xab1   :  { %v1892_v48 = vadd.f32 %v1891_v47, %v1876_v42 }
 0xab3   :  { %1896 = vrot.lane.b32.xlu1 %v1892_v48, %s5286_s20 }
 0xab8   :  { %v1894_v53 = vpop.permute.xlu0 %1893 }
 0xab9   :  { %v1895_v54 = vadd.f32 %v1894_v53, %v1889_v46 }
 0xabb   :  { %1899 = vrot.lane.b32.xlu1 %v1895_v54, %s5286_s20 }
 0xb25   :  { %v1897_v55 = vpop.permute.xlu1 %1896 }
 0xb26   :  { %v1898_v56 = vadd.f32 %v1897_v55, %v1892_v48 }
 0xb28   :  { %1902 = vrot.lane.b32.xlu2 %v1898_v56, %s5287_s21 }
 0xb2d   :  { %v1900_v57 = vpop.permute.xlu1 %1899 }
 0xb2e   :  { %v1901_v58 = vadd.f32 %v1900_v57, %v1895_v54 }
 0xb30   :  { %1905 = vrot.lane.b32.xlu2 %v1901_v58, %s5287_s21 }
 0xb82   :  { %v1903_v59 = vpop.permute.xlu2 %1902 }
 0xb83   :  { %v1904_v60 = vadd.f32 %v1903_v59, %v1898_v56 }
 0xb85   :  { %1908 = vrot.lane.b32.xlu0 %v1904_v60, %s5288_s22 }
 0xb8a   :  { %v1906_v63 = vpop.permute.xlu2 %1905 }
 0xb8b   :  { %v1907_v0 = vadd.f32 %v1906_v63, %v1901_v58 }
 0xb8d   :  { %1911 = vrot.lane.b32.xlu1 %v1907_v0, %s5288_s22 }
 0xbf7   :  { %v1909_v2 = vpop.permute.xlu0 %1908 }
 0xbf8   :  { %v1910_v3 = vadd.f32 %v1909_v2, %v1904_v60 }
 0xbfa   :  { %v1914_v4 = vmul.f32 0.001953125, %v1910_v3 }
 0xbfc   :  { %v1916_v61 = vmul.f32 %v1914_v4, %v1914_v4  ;;  %v1939_v51 = vrot.slane %v1914_v4, 7 }
 0xbff   :  { %v1912_v5 = vpop.permute.xlu1 %1911 }
 0xc00   :  { %v1913_v6 = vadd.f32 %v1912_v5, %v1907_v0 }
 0xc02   :  { %v1915_v62 = vmul.f32 0.001953125, %v1913_v6 }
 0xc04   :  { %v1917_v7 = vsub.f32 %v1915_v62, %v1916_v61 }
 0xc06   :  { %v1918_v1 = vmax.f32 %v1917_v7, 0.0 }
 0xc08   :  { %v1919_v32 = vadd.f32 1e-05, %v1918_v1 }
 0xc0a   :  { %5011 = vrsqrt.f32 %v1919_v32  ;;  %vm1926_vm14 = vweird.f32 %v1919_v32 }
 0xc10   :  { %v5012_v37 = vpop.eup %5011 }
 0xc11   :  { %v1921_v49 = vmul.f32 %v5012_v37, %v1919_v32  ;;  %vm1927_vm13 = vweird.f32 %v5012_v37 }
 0xc12   :  { %vm1928_vm15 = vmor %vm1926_vm14, %vm1927_vm13 }
 0xc13   :  { %v1922_v14 = vmul.f32 %v5012_v37, %v1921_v49 }
 0xc15   :  { %v1923_v15 = vmul.f32 0.5, %v1922_v14 }
 0xc17   :  { %v1924_v16 = vsub.f32 1.5, %v1923_v15 }
 0xc19   :  { %v1925_v17 = vmul.f32 %v5012_v37, %v1924_v16 }
 0xc1b   :  { %v1929_v19 = vsel %vm1928_vm15, %v5012_v37, %v1925_v17 }
 0xc1c   :  { %v1931_v20 = vrot.slane %v1929_v19, 7 }
 0xc1e   :  { %v1933_v50 = vmul.f32 %v4319_v18, %v1931_v20 }
 0xc20   :  { %v1935_v22 = vrot.slane %v1933_v50, 1  ;;  %v1941_v24 = vmul.f32 %v1939_v51, %v1933_v50 }
 0xc22   :  { %v1937_v25 = vadd.f32 %v4319_v18, %v1935_v22  ;;  %v1943_v26 = vrot.slane %v1941_v24, 7 }
 0xc24   :  { %v1945_v27 = vsub.f32 %v4319_v18, %v1943_v26  ;;  %v1946_v28 = vperm.slane %v1937_v25, 0 }
 0xc26   :  { %v1947_v30 = vmul.f32 %v1946_v28, %v5720_v10  ;;  %v1948_v31 = vmul.f32 %v1946_v28, %v5718_v8  ;;  %v1949_v52 = vmul.f32 %v1946_v28, %v5722_v21  ;;  %v1950_v38 = vmul.f32 %v1946_v28, %v5733_v23 }
 0xc27   :  { %v1951_v39 = vperm.slane %v1945_v27, 2 }
 0xc29   :  { %v1952_v40 = vadd.f32 %v1951_v39, %v1947_v30  ;;  %v1953_v41 = vadd.f32 %v1951_v39, %v1948_v31  ;;  %v1954_v42 = vadd.f32 %v1951_v39, %v1949_v52  ;;  %v1955_v43 = vadd.f32 %v1951_v39, %v1950_v38 }
 0xc2b   :  { %vm1956_vm2 = vcmp.ge.f32.partialorder %v1952_v40, 0.0  ;;  %vm1957_vm3 = vcmp.ge.f32.partialorder %v1953_v41, 0.0  ;;  %vm1958_vm6 = vcmp.ge.f32.partialorder %v1954_v42, 0.0  ;;  %vm1959_vm7 = vcmp.ge.f32.partialorder %v1955_v43, 0.0 }
 0xc2c   :  { %v1960_v44 = vmul.f32 0.2, %v1952_v40  ;;  %v1961_v46 = vmul.f32 0.2, %v1953_v41  ;;  %v1962_v47 = vmul.f32 0.2, %v1954_v42 }
 0xc2d   :  { %v1963_v48 = vmul.f32 0.2, %v1955_v43 }
 0xc2e   :  { %v5753_v10 = vsel %vm1956_vm2, %v1952_v40, %v1960_v44  ;;  %v5755_v8 = vsel %vm1957_vm3, %v1953_v41, %v1961_v46  ;;  %v5757_v21 = vsel %vm1958_vm6, %v1954_v42, %v1962_v47 }
 0xc2f   :  { %v5759_v23 = vsel %vm1959_vm7, %v1955_v43, %v1963_v48 }
 0xc30   :  { %5269 = dma.done.wait [#allocation3], 3072 }
 0xc31   :  { %5270 = vsyncadd [#allocation3], 4294964224  ;;  %s1970_s0 = scalar_lea.hbm %s6073_s3, 960  ;;  %v2002_v37 = vrot.slane %v5753_v10, 3  ;;  %v2003_v49 = vrot.slane %v5755_v8, 3  ;;  %v2005_v14 = vrot.slane %v5759_v23, 3  ;;  %v1984_v30 = vpack.c.bf16 %v5755_v8, %v5753_v10 }
 0xc32   :  { %s1978_s23 = sshll.u32 %s1970_s0, 4  ;;  %v2010_v16 = vadd.s32 4294967291, %v5363_v33  ;;  %v2190_v17 = vrot.slane %v5753_v10, 5  ;;  %v2191_v18 = vrot.slane %v5755_v8, 5  ;;  %v2192_v19 = vrot.slane %v5757_v21, 5  ;;  %s1979_s23 = int_to_ptr.hbm [resolvable:$true] %s1978_s23 }
 0xc33   :  { %1983 = dma.hbm_to_vmem [thread:$0]  %s1979_s23, 3072, %s5420_s18, [#allocation3 + $0x1]  ;;  %v2199_v20 = vadd.s32 5, %v5367_v34  ;;  %v2008_v22 = vsel %vm1298_vm1, %v2002_v37, %v2003_v49  ;;  %v2009_v24 = vsel %vm1298_vm1, %v2005_v14, %v2002_v37  ;;  %v2004_v52 = vrot.slane %v5757_v21, 3 }
 0xc34   :  { %v4889_v53 = vld [vmem:[#allocation2 + $0x38] sm:$0xff]  ;;  %v4888_v56 = vld [vmem:[#allocation2 + $0x30] sm:$0xff]  ;;  %v4887_v59 = vld [vmem:[#allocation2 + $0x28] sm:$0xff]  ;;  %vm2014_vm9 = vcmp.ge.s32.totalorder %v2010_v16, 0  ;;  %v2195_v26 = vsel %vm1109_vm0, %v2191_v18, %v2192_v19  ;;  %v2196_v27 = vsel %vm1109_vm0, %v2190_v17, %v2191_v18  ;;  %v4353_v28 = vpack.c.bf16 %v2008_v22, %v2009_v24 }
 0xc35   :  { %v4881_v54 = vld [vmem:[#allocation2 + $0x78] sm:$0xff]  ;;  %2104 = vmatpush.bf16.msrb.mxu0 %v4889_v53  ;;  %v4880_v57 = vld [vmem:[#allocation2 + $0x70] sm:$0xff]  ;;  %v4879_v60 = vld [vmem:[#allocation2 + $0x68] sm:$0xff]  ;;  %vm2207_vm12 = vcmp.lt.s32.totalorder %v2199_v20, 16  ;;  %v4423_v31 = vpack.c.bf16 %v2195_v26, %v2196_v27  ;;  %v2012_v38 = vadd.s32 4294967291, %v5369_v35  ;;  %v2193_v39 = vrot.slane %v5759_v23, 5 }
 0xc36   :  { %v4897_v55 = vld [vmem:[#allocation2 + $0xb8] sm:$0xff]  ;;  %2171 = vmatpush.bf16.msrb.mxu1 %v4881_v54  ;;  %v4896_v58 = vld [vmem:[#allocation2 + $0xb0] sm:$0xff]  ;;  %v4895_v63 = vld [vmem:[#allocation2 + $0xa8] sm:$0xff]  ;;  %v2201_v40 = vadd.s32 5, %v5371_v36  ;;  %v2006_v41 = vsel %vm1298_vm1, %v2004_v52, %v2005_v14  ;;  %v2007_v42 = vsel %vm1298_vm1, %v2003_v49, %v2004_v52  ;;  %v1985_v47 = vpack.c.bf16 %v5759_v23, %v5757_v21 }
 0xc37   :  { %2292 = vmatpush.bf16.msrb.mxu2 %v4897_v55  ;;  %v4886_v0 = vld [vmem:[#allocation2 + $0x20] sm:$0xff]  ;;  %v4885_v4 = vld [vmem:[#allocation2 + $0x18] sm:$0xff]  ;;  %v4884_v61 = vld [vmem:[#allocation2 + $0x10] sm:$0xff]  ;;  %vm2016_vm15 = vcmp.ge.s32.totalorder %v2012_v38, 0  ;;  %v2194_v43 = vsel %vm1109_vm0, %v2192_v19, %v2193_v39  ;;  %v2197_v44 = vsel %vm1109_vm0, %v2193_v39, %v2190_v17  ;;  %v4356_v46 = vpack.c.bf16 %v2006_v41, %v2007_v42 }
 0xc38   :  { %v4878_v2 = vld [vmem:[#allocation2 + $0x60] sm:$0xff]  ;;  %v4877_v5 = vld [vmem:[#allocation2 + $0x58] sm:$0xff]  ;;  %v4876_v62 = vld [vmem:[#allocation2 + $0x50] sm:$0xff]  ;;  %vm2209_vm2 = vcmp.lt.s32.totalorder %v2201_v40, 16  ;;  %v4426_v48 = vpack.c.bf16 %v2197_v44, %v2194_v43 }
 0xc39   :  { %2105 = vmatpush.bf16.msrb.mxu0 %v4888_v56  ;;  %v4894_v3 = vld [vmem:[#allocation2 + $0xa0] sm:$0xff]  ;;  %v4893_v6 = vld [vmem:[#allocation2 + $0x98] sm:$0xff]  ;;  %v4892_v7 = vld [vmem:[#allocation2 + $0x90] sm:$0xff] }
 0xc3a   :  { %2172 = vmatpush.bf16.msrb.mxu1 %v4880_v57  ;;  %v4883_v1 = vld [vmem:[#allocation2 + $0x8] sm:$0xff]  ;;  %v4882_v51 = vld [vmem:[#allocation2] sm:$0xff]  ;;  %vm4352_vm13 = vmpackc.low %vm5284_vm8, %vm2014_vm9 }
 0xc3b   :  { %2293 = vmatpush.bf16.msrb.mxu2 %v4896_v58  ;;  %v4875_v32 = vld [vmem:[#allocation2 + $0x48] sm:$0xff]  ;;  %v4874_v50 = vld [vmem:[#allocation2 + $0x40] sm:$0xff]  ;;  %vm4422_vm14 = vmpackc.low %vm2207_vm12, %vm5284_vm8 }
 0xc3c   :  { %v4891_v15 = vld [vmem:[#allocation2 + $0x88] sm:$0xff]  ;;  %v4890_v25 = vld [vmem:[#allocation2 + $0x80] sm:$0xff]  ;;  %vm4355_vm3 = vmpackc.low %vm5284_vm8, %vm2016_vm15 }
 0xc3d   :  { %2106 = vmatpush.bf16.msrb.mxu0 %v4887_v59  ;;  %vm4425_vm6 = vmpackc.low %vm2209_vm2, %vm5284_vm8 }
 0xc3e   :  { %2173 = vmatpush.bf16.msrb.mxu1 %v4879_v60 }
 0xc3f   :  { %2294 = vmatpush.bf16.msrb.mxu2 %v4895_v63 }
 0xc41   :  { %2107 = vmatpush.bf16.msrb.mxu0 %v4886_v0 }
 0xc42   :  { %2174 = vmatpush.bf16.msrb.mxu1 %v4878_v2 }
 0xc43   :  { %2295 = vmatpush.bf16.msrb.mxu2 %v4894_v3 }
 0xc45   :  { %2108 = vmatpush.bf16.msrb.mxu0 %v4885_v4 }
 0xc46   :  { %2175 = vmatpush.bf16.msrb.mxu1 %v4877_v5 }
 0xc47   :  { %2296 = vmatpush.bf16.msrb.mxu2 %v4893_v6 }
 0xc49   :  { %2109 = vmatpush.bf16.msrb.mxu0 %v4884_v61 }
 0xc4a   :  { %2176 = vmatpush.bf16.msrb.mxu1 %v4876_v62 }
 0xc4b   :  { %2297 = vmatpush.bf16.msrb.mxu2 %v4892_v7 }
 0xc4d   :  { %2110 = vmatpush.bf16.msrb.mxu0 %v4883_v1 }
 0xc4e   :  { %2177 = vmatpush.bf16.msrb.mxu1 %v4875_v32 }
 0xc4f   :  { %2298 = vmatpush.bf16.msrb.mxu2 %v4891_v15 }
 0xc51   :  { %2111 = vmatpush.bf16.msrb.mxu0 %v4882_v51 }
 0xc52   :  { %2178 = vmatpush.bf16.msrb.mxu1 %v4874_v50 }
 0xc53   :  { %2299 = vmatpush.bf16.msrb.mxu2 %v4890_v25 }
 0xc54   :  { %4354 = vmatmul.msk.bf16.vlgmr.msrb.gmra.mxu0 %vm4352_vm13, %v4353_v28 }
 0xc55   :  { %2179 = vmatmul.bf16.vlgmr.msrb.gmra.mxu1 %v1984_v30 }
 0xc56   :  { %4424 = vmatmul.msk.bf16.vlgmr.msrb.gmra.mxu2 %vm4422_vm14, %v4423_v31 }
 0xc64   :  { %4357 = vmatmul.msk.bf16.gmra.mxu0 %vm4355_vm3, %v4356_v46 }
 0xc65   :  { %2184 = vmatmul.bf16.gmra.mxu1 %v1985_v47 }
 0xc66   :  { %4427 = vmatmul.msk.bf16.gmra.mxu2 %vm4425_vm6, %v4426_v48 }
 0xcd1   :  { %v2113_v10 = vpop.f32.mrf.mxu0 }
 0xcd2   :  { %v2180_v8 = vpop.f32.mrf.mxu1 }
 0xcd3   :  { %v2181_v59 = vadd.f32 %v2180_v8, %v2113_v10 }
 0xcd9   :  { %v2301_v53 = vpop.f32.mrf.mxu2  ;;  %v2115_v54 = vpop.f32.mrf.mxu0 }
 0xcda   :  { %v2182_v55 = vpop.f32.mrf.mxu1  ;;  %v5803_v0 = vadd.f32 %v2301_v53, %v2181_v59 }
 0xcdb   :  { %v2183_v60 = vadd.f32 %v2182_v55, %v2115_v54 }
 0xcdc   :  { %v2326_v6 = vmul.f32 %v5803_v0, %v5803_v0 }
 0xce1   :  { %v2303_v56 = vpop.f32.mrf.mxu2  ;;  %v2118_v57 = vpop.f32.mrf.mxu0 }
 0xce2   :  { %v2185_v58 = vpop.f32.mrf.mxu1  ;;  %v5801_v23 = vadd.f32 %v2303_v56, %v2183_v60 }
 0xce3   :  { %v2186_v63 = vadd.f32 %v2185_v58, %v2118_v57 }
 0xce4   :  { %v2327_v5 = vmul.f32 %v5801_v23, %v5801_v23  ;;  %v2317_v61 = vadd.f32 %v5801_v23, %v5803_v0 }
 0xce6   :  { %v2330_v32 = vadd.f32 %v2327_v5, %v2326_v6 }
 0xce9   :  { %v2306_v21 = vpop.f32.mrf.mxu2  ;;  %v2120_v3 = vpop.f32.mrf.mxu0 }
 0xcea   :  { %v5805_v2 = vadd.f32 %v2306_v21, %v2186_v63  ;;  %v2187_v4 = vpop.f32.mrf.mxu1 }
 0xceb   :  { %v2188_v7 = vadd.f32 %v2187_v4, %v2120_v3 }
 0xcec   :  { %v2328_v62 = vmul.f32 %v5805_v2, %v5805_v2  ;;  %v2318_v37 = vadd.f32 %v2317_v61, %v5805_v2  ;;  %v4428_v61 = vld [vmem:[%s6071_s1 + $0x10] sm:$0x7] }
 0xcee   :  { %v2331_v14 = vadd.f32 %v2330_v32, %v2328_v62 }
 0xcf1   :  { %v2308_v1 = vpop.f32.mrf.mxu2 }
 0xcf2   :  { %v5816_v49 = vadd.f32 %v2308_v1, %v2188_v7 }
 0xcf4   :  { %v2319_v15 = vadd.f32 %v2318_v37, %v5816_v49  ;;  %v2329_v16 = vmul.f32 %v5816_v49, %v5816_v49 }
 0xcf6   :  { %v2320_v17 = vrot.slane %v2319_v15, 4  ;;  %v2332_v18 = vadd.f32 %v2331_v14, %v2329_v16 }
 0xcf8   :  { %v2321_v19 = vadd.f32 %v2320_v17, %v2319_v15  ;;  %v2333_v20 = vrot.slane %v2332_v18, 4 }
 0xcfa   :  { %v2322_v51 = vrot.slane %v2321_v19, 2  ;;  %v2334_v50 = vadd.f32 %v2333_v20, %v2332_v18 }
 0xcfc   :  { %v2323_v22 = vadd.f32 %v2322_v51, %v2321_v19  ;;  %v2335_v24 = vrot.slane %v2334_v50, 2 }
 0xcfe   :  { %v2324_v25 = vrot.slane %v2323_v22, 1  ;;  %v2336_v27 = vadd.f32 %v2335_v24, %v2334_v50 }
 0xd00   :  { %v2325_v26 = vadd.f32 %v2324_v25, %v2323_v22  ;;  %v2337_v28 = vrot.slane %v2336_v27, 1 }
 0xd02   :  { %2339 = vrot.lane.b32.xlu0 %v2325_v26, %s5285_s19  ;;  %v2338_v30 = vadd.f32 %v2337_v28, %v2336_v27 }
 0xd0a   :  { %2342 = vrot.lane.b32.xlu0 %v2338_v30, %s5285_s19 }
 0xd74   :  { %v2340_v31 = vpop.permute.xlu0 %2339 }
 0xd75   :  { %v2341_v52 = vadd.f32 %v2340_v31, %v2325_v26 }
 0xd77   :  { %2345 = vrot.lane.b32.xlu1 %v2341_v52, %s5286_s20 }
 0xd7c   :  { %v2343_v38 = vpop.permute.xlu0 %2342 }
 0xd7d   :  { %v2344_v39 = vadd.f32 %v2343_v38, %v2338_v30 }
 0xd7f   :  { %2348 = vrot.lane.b32.xlu1 %v2344_v39, %s5286_s20 }
 0xde9   :  { %v2346_v40 = vpop.permute.xlu1 %2345 }
 0xdea   :  { %v2347_v41 = vadd.f32 %v2346_v40, %v2341_v52 }
 0xdec   :  { %2351 = vrot.lane.b32.xlu2 %v2347_v41, %s5287_s21 }
 0xdf1   :  { %v2349_v42 = vpop.permute.xlu1 %2348 }
 0xdf2   :  { %v2350_v43 = vadd.f32 %v2349_v42, %v2344_v39 }
 0xdf4   :  { %2354 = vrot.lane.b32.xlu2 %v2350_v43, %s5287_s21 }
 0xe46   :  { %v2352_v44 = vpop.permute.xlu2 %2351 }
 0xe47   :  { %v2353_v46 = vadd.f32 %v2352_v44, %v2347_v41 }
 0xe49   :  { %2357 = vrot.lane.b32.xlu0 %v2353_v46, %s5288_s22 }
 0xe4e   :  { %v2355_v47 = vpop.permute.xlu2 %2354 }
 0xe4f   :  { %v2356_v48 = vadd.f32 %v2355_v47, %v2350_v43 }
 0xe51   :  { %2360 = vrot.lane.b32.xlu1 %v2356_v48, %s5288_s22 }
 0xebb   :  { %v2358_v10 = vpop.permute.xlu0 %2357 }
 0xebc   :  { %v2359_v8 = vadd.f32 %v2358_v10, %v2353_v46 }
 0xebe   :  { %v2363_v53 = vmul.f32 0.001953125, %v2359_v8 }
 0xec0   :  { %v2365_v56 = vmul.f32 %v2363_v53, %v2363_v53  ;;  %v2388_v1 = vrot.slane %v2363_v53, 7 }
 0xec3   :  { %v2361_v54 = vpop.permute.xlu1 %2360 }
 0xec4   :  { %v2362_v55 = vadd.f32 %v2361_v54, %v2356_v48 }
 0xec6   :  { %v2364_v57 = vmul.f32 0.001953125, %v2362_v55 }
 0xec8   :  { %v2366_v58 = vsub.f32 %v2364_v57, %v2365_v56 }
 0xeca   :  { %v2367_v59 = vmax.f32 %v2366_v58, 0.0 }
 0xecc   :  { %v2368_v60 = vadd.f32 1e-05, %v2367_v59 }
 0xece   :  { %5013 = vrsqrt.f32 %v2368_v60  ;;  %vm2375_vm1 = vweird.f32 %v2368_v60 }
 0xed4   :  { %v5014_v63 = vpop.eup %5013 }
 0xed5   :  { %v2370_v21 = vmul.f32 %v5014_v63, %v2368_v60  ;;  %vm2376_vm0 = vweird.f32 %v5014_v63 }
 0xed6   :  { %vm2377_vm7 = vmor %vm2375_vm1, %vm2376_vm0 }
 0xed7   :  { %v2371_v3 = vmul.f32 %v5014_v63, %v2370_v21 }
 0xed9   :  { %v2372_v4 = vmul.f32 0.5, %v2371_v3 }
 0xedb   :  { %v2373_v5 = vsub.f32 1.5, %v2372_v4 }
 0xedd   :  { %v2374_v6 = vmul.f32 %v5014_v63, %v2373_v5 }
 0xedf   :  { %v2378_v62 = vsel %vm2377_vm7, %v5014_v63, %v2374_v6 }
 0xee0   :  { %v2380_v7 = vrot.slane %v2378_v62, 7 }
 0xee2   :  { %v2382_v32 = vmul.f32 %v4428_v61, %v2380_v7 }
 0xee4   :  { %v2384_v37 = vrot.slane %v2382_v32, 1  ;;  %v2390_v14 = vmul.f32 %v2388_v1, %v2382_v32 }
 0xee6   :  { %v2386_v15 = vadd.f32 %v4428_v61, %v2384_v37  ;;  %v2392_v16 = vrot.slane %v2390_v14, 7 }
 0xee8   :  { %v2394_v17 = vsub.f32 %v4428_v61, %v2392_v16  ;;  %v2395_v18 = vperm.slane %v2386_v15, 0 }
 0xeea   :  { %v2396_v19 = vmul.f32 %v2395_v18, %v5803_v0  ;;  %v2397_v20 = vmul.f32 %v2395_v18, %v5801_v23  ;;  %v2398_v51 = vmul.f32 %v2395_v18, %v5805_v2  ;;  %v2399_v50 = vmul.f32 %v2395_v18, %v5816_v49 }
 0xeeb   :  { %v2400_v22 = vperm.slane %v2394_v17, 2 }
 0xeed   :  { %v2401_v24 = vadd.f32 %v2400_v22, %v2396_v19  ;;  %v2402_v25 = vadd.f32 %v2400_v22, %v2397_v20  ;;  %v2403_v26 = vadd.f32 %v2400_v22, %v2398_v51  ;;  %v2404_v27 = vadd.f32 %v2400_v22, %v2399_v50 }
 0xeef   :  { %v2405_v28 = vadd.f32 %v2401_v24, %v5681_v11  ;;  %v2406_v30 = vadd.f32 %v2402_v25, %v5683_v12  ;;  %v2407_v31 = vadd.f32 %v2403_v26, %v5685_v13  ;;  %v2408_v52 = vadd.f32 %v2404_v27, %v5687_v9 }
 0xef1   :  { %vm2409_vm9 = vcmp.ge.f32.partialorder %v2405_v28, 0.0  ;;  %vm2410_vm12 = vcmp.ge.f32.partialorder %v2406_v30, 0.0  ;;  %vm2411_vm13 = vcmp.ge.f32.partialorder %v2407_v31, 0.0  ;;  %vm2412_vm14 = vcmp.ge.f32.partialorder %v2408_v52, 0.0 }
 0xef2   :  { %v2413_v23 = vmul.f32 0.2, %v2405_v28  ;;  %v2414_v0 = vmul.f32 0.2, %v2406_v30  ;;  %v2415_v2 = vmul.f32 0.2, %v2407_v31 }
 0xef3   :  { %v2416_v49 = vmul.f32 0.2, %v2408_v52 }
 0xef4   :  { %v5840_v38 = vsel %vm2409_vm9, %v2405_v28, %v2413_v23  ;;  %v5842_v39 = vsel %vm2410_vm12, %v2406_v30, %v2414_v0  ;;  %v5844_v40 = vsel %vm2411_vm13, %v2407_v31, %v2415_v2 }
 0xef5   :  { %v5846_v11 = vsel %vm2412_vm14, %v2408_v52, %v2416_v49 }
 0xef6   :  { %5271 = dma.done.wait [#allocation3 + $0x1], 3072 }
 0xef7   :  { %5272 = vsyncadd [#allocation3 + $0x1], 4294964224  ;;  %s2423_s29 = scalar_lea.hbm %s6073_s3, 1152  ;;  %v2455_v63 = vrot.slane %v5840_v38, 2  ;;  %v2456_v21 = vrot.slane %v5842_v39, 2  ;;  %v2458_v3 = vrot.slane %v5846_v11, 2  ;;  %v2437_v19 = vpack.c.bf16 %v5842_v39, %v5840_v38 }
 0xef8   :  { %s2431_s30 = sshll.u32 %s2423_s29, 4  ;;  %v2463_v5 = vadd.s32 4294967290, %v5363_v33  ;;  %v2643_v6 = vrot.slane %v5840_v38, 6  ;;  %v2644_v61 = vrot.slane %v5842_v39, 6  ;;  %v2645_v62 = vrot.slane %v5844_v40, 6  ;;  %s2432_s30 = int_to_ptr.hbm [resolvable:$true] %s2431_s30 }
 0xef9   :  { %2436 = dma.hbm_to_vmem [thread:$0]  %s2432_s30, 3072, %s5352_s26, [#allocation3]  ;;  %v2652_v7 = vadd.s32 6, %v5367_v34  ;;  %v2461_v37 = vsel %vm846_vm11, %v2455_v63, %v2456_v21  ;;  %v2462_v14 = vsel %vm846_vm11, %v2458_v3, %v2455_v63  ;;  %v2457_v51 = vrot.slane %v5844_v40, 2 }
 0xefa   :  { %v4913_v12 = vld [vmem:[#allocation2 + $0xf8] sm:$0xff]  ;;  %v4912_v41 = vld [vmem:[#allocation2 + $0xf0] sm:$0xff]  ;;  %v4911_v44 = vld [vmem:[#allocation2 + $0xe8] sm:$0xff]  ;;  %vm2467_vm15 = vcmp.ge.s32.totalorder %v2463_v5, 0  ;;  %v2648_v16 = vsel %vm657_vm10, %v2644_v61, %v2645_v62  ;;  %v2649_v17 = vsel %vm657_vm10, %v2643_v6, %v2644_v61  ;;  %v4462_v18 = vpack.c.bf16 %v2461_v37, %v2462_v14 }
 0xefb   :  { %v4905_v13 = vld [vmem:[#allocation2 + $0x138] sm:$0xff]  ;;  %2557 = vmatpush.bf16.msrb.mxu3 %v4913_v12  ;;  %v4904_v42 = vld [vmem:[#allocation2 + $0x130] sm:$0xff]  ;;  %v4903_v46 = vld [vmem:[#allocation2 + $0x128] sm:$0xff]  ;;  %vm2660_vm2 = vcmp.lt.s32.totalorder %v2652_v7, 16  ;;  %v4532_v20 = vpack.c.bf16 %v2648_v16, %v2649_v17  ;;  %v2465_v50 = vadd.s32 4294967290, %v5369_v35  ;;  %v2646_v22 = vrot.slane %v5846_v11, 6 }
 0xefc   :  { %v4921_v9 = vld [vmem:[#allocation2 + $0x178] sm:$0xff]  ;;  %2624 = vmatpush.bf16.msra.mxu0 %v4905_v13  ;;  %v4920_v43 = vld [vmem:[#allocation2 + $0x170] sm:$0xff]  ;;  %v4919_v47 = vld [vmem:[#allocation2 + $0x168] sm:$0xff]  ;;  %v2654_v24 = vadd.s32 6, %v5371_v36  ;;  %v2459_v25 = vsel %vm846_vm11, %v2457_v51, %v2458_v3  ;;  %v2460_v26 = vsel %vm846_vm11, %v2456_v21, %v2457_v51  ;;  %v2438_v31 = vpack.c.bf16 %v5846_v11, %v5844_v40 }
 0xefd   :  { %2745 = vmatpush.bf16.msra.mxu1 %v4921_v9  ;;  %v4910_v48 = vld [vmem:[#allocation2 + $0xe0] sm:$0xff]  ;;  %v4909_v53 = vld [vmem:[#allocation2 + $0xd8] sm:$0xff]  ;;  %v4908_v56 = vld [vmem:[#allocation2 + $0xd0] sm:$0xff]  ;;  %vm2469_vm0 = vcmp.ge.s32.totalorder %v2465_v50, 0  ;;  %v2647_v27 = vsel %vm657_vm10, %v2645_v62, %v2646_v22  ;;  %v2650_v28 = vsel %vm657_vm10, %v2646_v22, %v2643_v6  ;;  %v4465_v30 = vpack.c.bf16 %v2459_v25, %v2460_v26 }
 0xefe   :  { %v4902_v10 = vld [vmem:[#allocation2 + $0x120] sm:$0xff]  ;;  %v4901_v54 = vld [vmem:[#allocation2 + $0x118] sm:$0xff]  ;;  %v4900_v57 = vld [vmem:[#allocation2 + $0x110] sm:$0xff]  ;;  %vm2662_vm1 = vcmp.lt.s32.totalorder %v2654_v24, 16  ;;  %v4535_v52 = vpack.c.bf16 %v2650_v28, %v2647_v27 }
 0xeff   :  { %2558 = vmatpush.bf16.msrb.mxu3 %v4912_v41  ;;  %v4918_v8 = vld [vmem:[#allocation2 + $0x160] sm:$0xff]  ;;  %v4917_v55 = vld [vmem:[#allocation2 + $0x158] sm:$0xff]  ;;  %v4916_v58 = vld [vmem:[#allocation2 + $0x150] sm:$0xff] }
 0xf00   :  { %2625 = vmatpush.bf16.msra.mxu0 %v4904_v42  ;;  %v4907_v59 = vld [vmem:[#allocation2 + $0xc8] sm:$0xff]  ;;  %v4906_v1 = vld [vmem:[#allocation2 + $0xc0] sm:$0xff]  ;;  %vm4461_vm3 = vmpackc.low %vm5284_vm8, %vm2467_vm15 }
 0xf01   :  { %2746 = vmatpush.bf16.msra.mxu1 %v4920_v43  ;;  %v4899_v60 = vld [vmem:[#allocation2 + $0x108] sm:$0xff]  ;;  %v4898_v32 = vld [vmem:[#allocation2 + $0x100] sm:$0xff]  ;;  %vm4531_vm6 = vmpackc.low %vm2660_vm2, %vm5284_vm8 }
 0xf02   :  { %v4915_v4 = vld [vmem:[#allocation2 + $0x148] sm:$0xff]  ;;  %v4914_v15 = vld [vmem:[#allocation2 + $0x140] sm:$0xff]  ;;  %vm4464_vm7 = vmpackc.low %vm5284_vm8, %vm2469_vm0 }
 0xf03   :  { %2559 = vmatpush.bf16.msrb.mxu3 %v4911_v44  ;;  %vm4534_vm9 = vmpackc.low %vm2662_vm1, %vm5284_vm8 }
 0xf04   :  { %2626 = vmatpush.bf16.msra.mxu0 %v4903_v46 }
 0xf05   :  { %2747 = vmatpush.bf16.msra.mxu1 %v4919_v47 }
 0xf07   :  { %2560 = vmatpush.bf16.msrb.mxu3 %v4910_v48 }
 0xf08   :  { %2627 = vmatpush.bf16.msra.mxu0 %v4902_v10 }
 0xf09   :  { %2748 = vmatpush.bf16.msra.mxu1 %v4918_v8 }
 0xf0b   :  { %2561 = vmatpush.bf16.msrb.mxu3 %v4909_v53 }
 0xf0c   :  { %2628 = vmatpush.bf16.msra.mxu0 %v4901_v54 }
 0xf0d   :  { %2749 = vmatpush.bf16.msra.mxu1 %v4917_v55 }
 0xf0f   :  { %2562 = vmatpush.bf16.msrb.mxu3 %v4908_v56 }
 0xf10   :  { %2629 = vmatpush.bf16.msra.mxu0 %v4900_v57 }
 0xf11   :  { %2750 = vmatpush.bf16.msra.mxu1 %v4916_v58 }
 0xf13   :  { %2563 = vmatpush.bf16.msrb.mxu3 %v4907_v59 }
 0xf14   :  { %2630 = vmatpush.bf16.msra.mxu0 %v4899_v60 }
 0xf15   :  { %2751 = vmatpush.bf16.msra.mxu1 %v4915_v4 }
 0xf17   :  { %2564 = vmatpush.bf16.msrb.mxu3 %v4906_v1 }
 0xf18   :  { %2631 = vmatpush.bf16.msra.mxu0 %v4898_v32 }
 0xf19   :  { %2752 = vmatpush.bf16.msra.mxu1 %v4914_v15 }
 0xf1a   :  { %4463 = vmatmul.msk.bf16.vlgmr.msrb.gmra.mxu3 %vm4461_vm3, %v4462_v18 }
 0xf1b   :  { %2632 = vmatmul.bf16.vlgmr.msra.gmra.mxu0 %v2437_v19 }
 0xf1c   :  { %4533 = vmatmul.msk.bf16.vlgmr.msra.gmra.mxu1 %vm4531_vm6, %v4532_v20 }
 0xf2a   :  { %4466 = vmatmul.msk.bf16.gmra.mxu3 %vm4464_vm7, %v4465_v30 }
 0xf2b   :  { %2637 = vmatmul.bf16.gmra.mxu0 %v2438_v31 }
 0xf2c   :  { %4536 = vmatmul.msk.bf16.gmra.mxu1 %vm4534_vm9, %v4535_v52 }
 0xf98   :  { %v2633_v23 = vpop.f32.mrf.mxu0 }
 0xf99   :  { %v2754_v0 = vpop.f32.mrf.mxu1 }
 0xf9d   :  { %v2566_v2 = vpop.f32.mrf.mxu3 }
 0xf9e   :  { %v2634_v44 = vadd.f32 %v2633_v23, %v2566_v2 }
 0xfa0   :  { %v2635_v49 = vpop.f32.mrf.mxu0  ;;  %v5890_v48 = vadd.f32 %v2754_v0, %v2634_v44 }
 0xfa1   :  { %v2756_v12 = vpop.f32.mrf.mxu1 }
 0xfa2   :  { %v2779_v55 = vmul.f32 %v5890_v48, %v5890_v48 }
 0xfa5   :  { %v2568_v13 = vpop.f32.mrf.mxu3 }
 0xfa6   :  { %v2636_v41 = vadd.f32 %v2635_v49, %v2568_v13 }
 0xfa8   :  { %v2638_v9 = vpop.f32.mrf.mxu0  ;;  %v5888_v47 = vadd.f32 %v2756_v12, %v2636_v41 }
 0xfa9   :  { %v2759_v42 = vpop.f32.mrf.mxu1 }
 0xfaa   :  { %v2780_v8 = vmul.f32 %v5888_v47, %v5888_v47  ;;  %v2770_v56 = vadd.f32 %v5888_v47, %v5890_v48 }
 0xfac   :  { %v2783_v60 = vadd.f32 %v2780_v8, %v2779_v55 }
 0xfad   :  { %v2571_v43 = vpop.f32.mrf.mxu3 }
 0xfae   :  { %v2639_v46 = vadd.f32 %v2638_v9, %v2571_v43 }
 0xfb0   :  { %v5892_v10 = vadd.f32 %v2759_v42, %v2639_v46  ;;  %v2640_v53 = vpop.f32.mrf.mxu0 }
 0xfb1   :  { %v2761_v59 = vpop.f32.mrf.mxu1 }
 0xfb2   :  { %v2781_v57 = vmul.f32 %v5892_v10, %v5892_v10  ;;  %v2771_v63 = vadd.f32 %v2770_v56, %v5892_v10  ;;  %v4537_v56 = vld [vmem:[%s6071_s1 + $0x14] sm:$0x7] }
 0xfb4   :  { %v2784_v3 = vadd.f32 %v2783_v60, %v2781_v57 }
 0xfb5   :  { %v2573_v54 = vpop.f32.mrf.mxu3 }
 0xfb6   :  { %v2641_v58 = vadd.f32 %v2640_v53, %v2573_v54 }
 0xfb8   :  { %v5903_v21 = vadd.f32 %v2761_v59, %v2641_v58 }
 0xfba   :  { %v2772_v4 = vadd.f32 %v2771_v63, %v5903_v21  ;;  %v2782_v5 = vmul.f32 %v5903_v21, %v5903_v21 }
 0xfbc   :  { %v2773_v6 = vrot.slane %v2772_v4, 4  ;;  %v2785_v61 = vadd.f32 %v2784_v3, %v2782_v5 }
 0xfbe   :  { %v2774_v62 = vadd.f32 %v2773_v6, %v2772_v4  ;;  %v2786_v7 = vrot.slane %v2785_v61, 4 }
 0xfc0   :  { %v2775_v1 = vrot.slane %v2774_v62, 2  ;;  %v2787_v32 = vadd.f32 %v2786_v7, %v2785_v61 }
 0xfc2   :  { %v2776_v37 = vadd.f32 %v2775_v1, %v2774_v62  ;;  %v2788_v14 = vrot.slane %v2787_v32, 2 }
 0xfc4   :  { %v2777_v15 = vrot.slane %v2776_v37, 1  ;;  %v2789_v17 = vadd.f32 %v2788_v14, %v2787_v32 }
 0xfc6   :  { %v2778_v16 = vadd.f32 %v2777_v15, %v2776_v37  ;;  %v2790_v18 = vrot.slane %v2789_v17, 1 }
 0xfc8   :  { %2792 = vrot.lane.b32.xlu0 %v2778_v16, %s5285_s19  ;;  %v2791_v19 = vadd.f32 %v2790_v18, %v2789_v17 }
 0xfd0   :  { %2795 = vrot.lane.b32.xlu0 %v2791_v19, %s5285_s19 }
0x103a   :  { %v2793_v20 = vpop.permute.xlu0 %2792 }
0x103b   :  { %v2794_v51 = vadd.f32 %v2793_v20, %v2778_v16 }
0x103d   :  { %2798 = vrot.lane.b32.xlu1 %v2794_v51, %s5286_s20 }
0x1042   :  { %v2796_v50 = vpop.permute.xlu0 %2795 }
0x1043   :  { %v2797_v22 = vadd.f32 %v2796_v50, %v2791_v19 }
0x1045   :  { %2801 = vrot.lane.b32.xlu1 %v2797_v22, %s5286_s20 }
0x10af   :  { %v2799_v24 = vpop.permute.xlu1 %2798 }
0x10b0   :  { %v2800_v25 = vadd.f32 %v2799_v24, %v2794_v51 }
0x10b2   :  { %2804 = vrot.lane.b32.xlu2 %v2800_v25, %s5287_s21 }
0x10b7   :  { %v2802_v26 = vpop.permute.xlu1 %2801 }
0x10b8   :  { %v2803_v27 = vadd.f32 %v2802_v26, %v2797_v22 }
0x10ba   :  { %2807 = vrot.lane.b32.xlu2 %v2803_v27, %s5287_s21 }
0x110c   :  { %v2805_v28 = vpop.permute.xlu2 %2804 }
0x110d   :  { %v2806_v30 = vadd.f32 %v2805_v28, %v2800_v25 }
0x110f   :  { %2810 = vrot.lane.b32.xlu0 %v2806_v30, %s5288_s22 }
0x1114   :  { %v2808_v31 = vpop.permute.xlu2 %2807 }
0x1115   :  { %v2809_v52 = vadd.f32 %v2808_v31, %v2803_v27 }
0x1117   :  { %2813 = vrot.lane.b32.xlu1 %v2809_v52, %s5288_s22 }
0x1181   :  { %v2811_v23 = vpop.permute.xlu0 %2810 }
0x1182   :  { %v2812_v0 = vadd.f32 %v2811_v23, %v2806_v30 }
0x1184   :  { %v2816_v2 = vmul.f32 0.001953125, %v2812_v0 }
0x1186   :  { %v2818_v13 = vmul.f32 %v2816_v2, %v2816_v2  ;;  %v2841_v59 = vrot.slane %v2816_v2, 7 }
0x1189   :  { %v2814_v49 = vpop.permute.xlu1 %2813 }
0x118a   :  { %v2815_v12 = vadd.f32 %v2814_v49, %v2809_v52 }
0x118c   :  { %v2817_v9 = vmul.f32 0.001953125, %v2815_v12 }
0x118e   :  { %v2819_v41 = vsub.f32 %v2817_v9, %v2818_v13 }
0x1190   :  { %v2820_v42 = vmax.f32 %v2819_v41, 0.0 }
0x1192   :  { %v2821_v43 = vadd.f32 1e-05, %v2820_v42 }
0x1194   :  { %5015 = vrsqrt.f32 %v2821_v43  ;;  %vm2828_vm11 = vweird.f32 %v2821_v43 }
0x119a   :  { %v5016_v44 = vpop.eup %5015 }
0x119b   :  { %v2823_v46 = vmul.f32 %v5016_v44, %v2821_v43  ;;  %vm2829_vm10 = vweird.f32 %v5016_v44 }
0x119c   :  { %vm2830_vm12 = vmor %vm2828_vm11, %vm2829_vm10 }
0x119d   :  { %v2824_v8 = vmul.f32 %v5016_v44, %v2823_v46 }
0x119f   :  { %v2825_v53 = vmul.f32 0.5, %v2824_v8 }
0x11a1   :  { %v2826_v54 = vsub.f32 1.5, %v2825_v53 }
0x11a3   :  { %v2827_v55 = vmul.f32 %v5016_v44, %v2826_v54 }
0x11a5   :  { %v2831_v57 = vsel %vm2830_vm12, %v5016_v44, %v2827_v55 }
0x11a6   :  { %v2833_v58 = vrot.slane %v2831_v57, 7 }
0x11a8   :  { %v2835_v60 = vmul.f32 %v4537_v56, %v2833_v58 }
0x11aa   :  { %v2837_v63 = vrot.slane %v2835_v60, 1  ;;  %v2843_v3 = vmul.f32 %v2841_v59, %v2835_v60 }
0x11ac   :  { %v2839_v4 = vadd.f32 %v4537_v56, %v2837_v63  ;;  %v2845_v5 = vrot.slane %v2843_v3, 7 }
0x11ae   :  { %v2847_v6 = vsub.f32 %v4537_v56, %v2845_v5  ;;  %v2848_v61 = vperm.slane %v2839_v4, 0 }
0x11b0   :  { %v2849_v62 = vmul.f32 %v2848_v61, %v5890_v48  ;;  %v2850_v7 = vmul.f32 %v2848_v61, %v5888_v47  ;;  %v2851_v1 = vmul.f32 %v2848_v61, %v5892_v10  ;;  %v2852_v32 = vmul.f32 %v2848_v61, %v5903_v21 }
0x11b1   :  { %v2853_v37 = vperm.slane %v2847_v6, 2 }
0x11b3   :  { %v2854_v14 = vadd.f32 %v2853_v37, %v2849_v62  ;;  %v2855_v15 = vadd.f32 %v2853_v37, %v2850_v7  ;;  %v2856_v16 = vadd.f32 %v2853_v37, %v2851_v1  ;;  %v2857_v17 = vadd.f32 %v2853_v37, %v2852_v32 }
0x11b5   :  { %vm2858_vm13 = vcmp.ge.f32.partialorder %v2854_v14, 0.0  ;;  %vm2859_vm14 = vcmp.ge.f32.partialorder %v2855_v15, 0.0  ;;  %vm2860_vm15 = vcmp.ge.f32.partialorder %v2856_v16, 0.0  ;;  %vm2861_vm2 = vcmp.ge.f32.partialorder %v2857_v17, 0.0 }
0x11b6   :  { %v2862_v18 = vmul.f32 0.2, %v2854_v14  ;;  %v2863_v19 = vmul.f32 0.2, %v2855_v15  ;;  %v2864_v20 = vmul.f32 0.2, %v2856_v16 }
0x11b7   :  { %v2865_v51 = vmul.f32 0.2, %v2857_v17 }
0x11b8   :  { %v5923_v48 = vsel %vm2858_vm13, %v2854_v14, %v2862_v18  ;;  %v5925_v47 = vsel %vm2859_vm14, %v2855_v15, %v2863_v19  ;;  %v5927_v10 = vsel %vm2860_vm15, %v2856_v16, %v2864_v20 }
0x11b9   :  { %v5929_v21 = vsel %vm2861_vm2, %v2857_v17, %v2865_v51 }
0x11ba   :  { %5273 = dma.done.wait [#allocation3], 3072 }
0x11bb   :  { %5274 = vsyncadd [#allocation3], 4294964224  ;;  %s2872_s9 = scalar_lea.hbm %s6073_s3, 1344  ;;  %v2904_v44 = vrot.slane %v5923_v48, 1  ;;  %v2905_v46 = vrot.slane %v5925_v47, 1  ;;  %v2907_v8 = vrot.slane %v5929_v21, 1  ;;  %v2886_v6 = vpack.c.bf16 %v5925_v47, %v5923_v48 }
0x11bc   :  { %s2880_s10 = sshll.u32 %s2872_s9, 4  ;;  %v2912_v54 = vadd.s32 4294967289, %v5363_v33  ;;  %v3092_v55 = vrot.slane %v5923_v48, 7  ;;  %v3093_v56 = vrot.slane %v5925_v47, 7  ;;  %v3094_v57 = vrot.slane %v5927_v10, 7  ;;  %s2881_s10 = int_to_ptr.hbm [resolvable:$true] %s2880_s10 }
0x11bd   :  { %2885 = dma.hbm_to_vmem [thread:$0]  %s2881_s10, 3072, %s5420_s18, [#allocation3 + $0x1]  ;;  %v3101_v58 = vadd.s32 7, %v5367_v34  ;;  %v2910_v63 = vsel %vm394_vm5, %v2904_v44, %v2905_v46  ;;  %v2911_v3 = vsel %vm394_vm5, %v2907_v8, %v2904_v44  ;;  %v2906_v62 = vrot.slane %v5927_v10, 1 }
0x11be   :  { %v4937_v50 = vld [vmem:[#allocation2 + $0x38] sm:$0xff]  ;;  %v4936_v25 = vld [vmem:[#allocation2 + $0x30] sm:$0xff]  ;;  %v4935_v28 = vld [vmem:[#allocation2 + $0x28] sm:$0xff]  ;;  %vm2916_vm3 = vcmp.ge.s32.totalorder %v2912_v54, 0  ;;  %v3097_v4 = vsel %vm205_vm4, %v3093_v56, %v3094_v57  ;;  %v3098_v5 = vsel %vm205_vm4, %v3092_v55, %v3093_v56  ;;  %v4571_v34 = vpack.c.bf16 %v2910_v63, %v2911_v3 }
0x11bf   :  { %v4929_v22 = vld [vmem:[#allocation2 + $0x78] sm:$0xff]  ;;  %3006 = vmatpush.bf16.msra.mxu2 %v4937_v50  ;;  %v4928_v26 = vld [vmem:[#allocation2 + $0x70] sm:$0xff]  ;;  %v4927_v30 = vld [vmem:[#allocation2 + $0x68] sm:$0xff]  ;;  %vm3109_vm6 = vcmp.lt.s32.totalorder %v3101_v58, 16  ;;  %v4641_v61 = vpack.c.bf16 %v3097_v4, %v3098_v5  ;;  %v2914_v7 = vadd.s32 4294967289, %v5369_v35  ;;  %v3095_v1 = vrot.slane %v5929_v21, 7 }
0x11c0   :  { %v4945_v24 = vld [vmem:[#allocation2 + $0xb8] sm:$0xff]  ;;  %3073 = vmatpush.bf16.msra.mxu3 %v4929_v22  ;;  %v4944_v27 = vld [vmem:[#allocation2 + $0xb0] sm:$0xff]  ;;  %v4943_v31 = vld [vmem:[#allocation2 + $0xa8] sm:$0xff]  ;;  %v3103_v32 = vadd.s32 7, %v5371_v36  ;;  %v2908_v37 = vsel %vm394_vm5, %v2906_v62, %v2907_v8  ;;  %v2909_v14 = vsel %vm394_vm5, %v2905_v46, %v2906_v62  ;;  %v2887_v35 = vpack.c.bf16 %v5929_v21, %v5927_v10 }
0x11c1   :  { %3194 = vmatpush.bf16.msrb.mxu0 %v4945_v24  ;;  %v4934_v52 = vld [vmem:[#allocation2 + $0x20] sm:$0xff]  ;;  %v4933_v2 = vld [vmem:[#allocation2 + $0x18] sm:$0xff]  ;;  %v4932_v13 = vld [vmem:[#allocation2 + $0x10] sm:$0xff]  ;;  %vm2918_vm7 = vcmp.ge.s32.totalorder %v2914_v7, 0  ;;  %v3096_v15 = vsel %vm205_vm4, %v3094_v57, %v3095_v1  ;;  %v3099_v16 = vsel %vm205_vm4, %v3095_v1, %v3092_v55  ;;  %v4574_v17 = vpack.c.bf16 %v2908_v37, %v2909_v14 }
0x11c2   :  { %v4926_v23 = vld [vmem:[#allocation2 + $0x60] sm:$0xff]  ;;  %v4925_v49 = vld [vmem:[#allocation2 + $0x58] sm:$0xff]  ;;  %v4924_v9 = vld [vmem:[#allocation2 + $0x50] sm:$0xff]  ;;  %vm3111_vm9 = vcmp.lt.s32.totalorder %v3103_v32, 16  ;;  %v4644_v36 = vpack.c.bf16 %v3099_v16, %v3096_v15 }
0x11c3   :  { %3007 = vmatpush.bf16.msra.mxu2 %v4936_v25  ;;  %v4942_v0 = vld [vmem:[#allocation2 + $0xa0] sm:$0xff]  ;;  %v4941_v12 = vld [vmem:[#allocation2 + $0x98] sm:$0xff]  ;;  %v4940_v41 = vld [vmem:[#allocation2 + $0x90] sm:$0xff] }
0x11c4   :  { %3074 = vmatpush.bf16.msra.mxu3 %v4928_v26  ;;  %v4931_v42 = vld [vmem:[#allocation2 + $0x8] sm:$0xff]  ;;  %v4930_v59 = vld [vmem:[#allocation2] sm:$0xff]  ;;  %vm4570_vm0 = vmpackc.low %vm5284_vm8, %vm2916_vm3 }
0x11c5   :  { %3195 = vmatpush.bf16.msrb.mxu0 %v4944_v27  ;;  %v4923_v43 = vld [vmem:[#allocation2 + $0x48] sm:$0xff]  ;;  %v4922_v60 = vld [vmem:[#allocation2 + $0x40] sm:$0xff]  ;;  %vm4640_vm1 = vmpackc.low %vm3109_vm6, %vm5284_vm8 }
0x11c6   :  { %v4939_v53 = vld [vmem:[#allocation2 + $0x88] sm:$0xff]  ;;  %v4938_v33 = vld [vmem:[#allocation2 + $0x80] sm:$0xff]  ;;  %vm4573_vm10 = vmpackc.low %vm5284_vm8, %vm2918_vm7 }
0x11c7   :  { %3008 = vmatpush.bf16.msra.mxu2 %v4935_v28  ;;  %vm4643_vm11 = vmpackc.low %vm3111_vm9, %vm5284_vm8 }
0x11c8   :  { %3075 = vmatpush.bf16.msra.mxu3 %v4927_v30 }
0x11c9   :  { %3196 = vmatpush.bf16.msrb.mxu0 %v4943_v31 }
0x11cb   :  { %3009 = vmatpush.bf16.msra.mxu2 %v4934_v52 }
0x11cc   :  { %3076 = vmatpush.bf16.msra.mxu3 %v4926_v23 }
0x11cd   :  { %3197 = vmatpush.bf16.msrb.mxu0 %v4942_v0 }
0x11cf   :  { %3010 = vmatpush.bf16.msra.mxu2 %v4933_v2 }
0x11d0   :  { %3077 = vmatpush.bf16.msra.mxu3 %v4925_v49 }
0x11d1   :  { %3198 = vmatpush.bf16.msrb.mxu0 %v4941_v12 }
0x11d3   :  { %3011 = vmatpush.bf16.msra.mxu2 %v4932_v13 }
0x11d4   :  { %3078 = vmatpush.bf16.msra.mxu3 %v4924_v9 }
0x11d5   :  { %3199 = vmatpush.bf16.msrb.mxu0 %v4940_v41 }
0x11d7   :  { %3012 = vmatpush.bf16.msra.mxu2 %v4931_v42 }
0x11d8   :  { %3079 = vmatpush.bf16.msra.mxu3 %v4923_v43 }
0x11d9   :  { %3200 = vmatpush.bf16.msrb.mxu0 %v4939_v53 }
0x11db   :  { %3013 = vmatpush.bf16.msra.mxu2 %v4930_v59 }
0x11dc   :  { %3080 = vmatpush.bf16.msra.mxu3 %v4922_v60 }
0x11dd   :  { %3201 = vmatpush.bf16.msrb.mxu0 %v4938_v33 }
0x11de   :  { %4572 = vmatmul.msk.bf16.vlgmr.msra.gmra.mxu2 %vm4570_vm0, %v4571_v34 }
0x11df   :  { %3081 = vmatmul.bf16.vlgmr.msra.gmra.mxu3 %v2886_v6 }
0x11e0   :  { %4642 = vmatmul.msk.bf16.vlgmr.msrb.gmra.mxu0 %vm4640_vm1, %v4641_v61 }
0x11ee   :  { %4575 = vmatmul.msk.bf16.gmra.mxu2 %vm4573_vm10, %v4574_v17 }
0x11ef   :  { %3086 = vmatmul.bf16.gmra.mxu3 %v2887_v35 }
0x11f0   :  { %4645 = vmatmul.msk.bf16.gmra.mxu0 %vm4643_vm11, %v4644_v36 }
0x125d   :  { %v3203_v18 = vpop.f32.mrf.mxu0 }
0x1261   :  { %v3015_v19 = vpop.f32.mrf.mxu2 }
0x1262   :  { %v3082_v20 = vpop.f32.mrf.mxu3 }
0x1263   :  { %v3083_v25 = vadd.f32 %v3082_v20, %v3015_v19 }
0x1265   :  { %v3205_v51 = vpop.f32.mrf.mxu0  ;;  %v5973_v26 = vadd.f32 %v3203_v18, %v3083_v25 }
0x1267   :  { %v3228_v52 = vmul.f32 %v5973_v26, %v5973_v26 }
0x1269   :  { %v3017_v48 = vpop.f32.mrf.mxu2 }
0x126a   :  { %v3084_v29 = vpop.f32.mrf.mxu3 }
0x126b   :  { %v3085_v47 = vadd.f32 %v3084_v29, %v3017_v48 }
0x126d   :  { %v3208_v50 = vpop.f32.mrf.mxu0  ;;  %v5971_v21 = vadd.f32 %v3205_v51, %v3085_v47 }
0x126f   :  { %v3229_v28 = vmul.f32 %v5971_v21, %v5971_v21  ;;  %v3219_v23 = vadd.f32 %v5971_v21, %v5973_v26 }
0x1271   :  { %v3020_v22 = vpop.f32.mrf.mxu2  ;;  %v3232_v12 = vadd.f32 %v3229_v28, %v3228_v52 }
0x1272   :  { %v3087_v24 = vpop.f32.mrf.mxu3 }
0x1273   :  { %v3088_v10 = vadd.f32 %v3087_v24, %v3020_v22 }
0x1275   :  { %v5975_v27 = vadd.f32 %v3208_v50, %v3088_v10  ;;  %v3210_v49 = vpop.f32.mrf.mxu0  ;;  %v4646_v10 = vld [vmem:[%s6071_s1 + $0x18] sm:$0x7] }
0x1277   :  { %v3230_v0 = vmul.f32 %v5975_v27, %v5975_v27  ;;  %v3220_v13 = vadd.f32 %v3219_v23, %v5975_v27 }
0x1279   :  { %v3022_v30 = vpop.f32.mrf.mxu2  ;;  %v3233_v41 = vadd.f32 %v3232_v12, %v3230_v0 }
0x127a   :  { %v3089_v31 = vpop.f32.mrf.mxu3 }
0x127b   :  { %v3090_v2 = vadd.f32 %v3089_v31, %v3022_v30 }
0x127d   :  { %v5986_v9 = vadd.f32 %v3210_v49, %v3090_v2 }
0x127f   :  { %v3221_v42 = vadd.f32 %v3220_v13, %v5986_v9  ;;  %v3231_v43 = vmul.f32 %v5986_v9, %v5986_v9 }
0x1281   :  { %v3222_v44 = vrot.slane %v3221_v42, 4  ;;  %v3234_v46 = vadd.f32 %v3233_v41, %v3231_v43 }
0x1283   :  { %v3223_v8 = vadd.f32 %v3222_v44, %v3221_v42  ;;  %v3235_v53 = vrot.slane %v3234_v46, 4 }
0x1285   :  { %v3224_v54 = vrot.slane %v3223_v8, 2  ;;  %v3236_v55 = vadd.f32 %v3235_v53, %v3234_v46 }
0x1287   :  { %v3225_v56 = vadd.f32 %v3224_v54, %v3223_v8  ;;  %v3237_v57 = vrot.slane %v3236_v55, 2 }
0x1289   :  { %v3226_v58 = vrot.slane %v3225_v56, 1  ;;  %v3238_v60 = vadd.f32 %v3237_v57, %v3236_v55 }
0x128b   :  { %v3227_v59 = vadd.f32 %v3226_v58, %v3225_v56  ;;  %v3239_v63 = vrot.slane %v3238_v60, 1 }
0x128d   :  { %3241 = vrot.lane.b32.xlu0 %v3227_v59, %s5285_s19  ;;  %v3240_v3 = vadd.f32 %v3239_v63, %v3238_v60 }
0x1295   :  { %3244 = vrot.lane.b32.xlu0 %v3240_v3, %s5285_s19 }
0x12ff   :  { %v3242_v33 = vpop.permute.xlu0 %3241 }
0x1300   :  { %v3243_v4 = vadd.f32 %v3242_v33, %v3227_v59 }
0x1302   :  { %3247 = vrot.lane.b32.xlu1 %v3243_v4, %s5286_s20 }
0x1307   :  { %v3245_v5 = vpop.permute.xlu0 %3244 }
0x1308   :  { %v3246_v34 = vadd.f32 %v3245_v5, %v3240_v3 }
0x130a   :  { %3250 = vrot.lane.b32.xlu1 %v3246_v34, %s5286_s20 }
0x1374   :  { %v3248_v6 = vpop.permute.xlu1 %3247 }
0x1375   :  { %v3249_v61 = vadd.f32 %v3248_v6, %v3243_v4 }
0x1377   :  { %3253 = vrot.lane.b32.xlu2 %v3249_v61, %s5287_s21 }
0x137c   :  { %v3251_v62 = vpop.permute.xlu1 %3250 }
0x137d   :  { %v3252_v7 = vadd.f32 %v3251_v62, %v3246_v34 }
0x137f   :  { %3256 = vrot.lane.b32.xlu2 %v3252_v7, %s5287_s21 }
0x13d1   :  { %v3254_v1 = vpop.permute.xlu2 %3253 }
0x13d2   :  { %v3255_v32 = vadd.f32 %v3254_v1, %v3249_v61 }
0x13d4   :  { %3259 = vrot.lane.b32.xlu0 %v3255_v32, %s5288_s22 }
0x13d9   :  { %v3257_v37 = vpop.permute.xlu2 %3256 }
0x13da   :  { %v3258_v14 = vadd.f32 %v3257_v37, %v3252_v7 }
0x13dc   :  { %3262 = vrot.lane.b32.xlu1 %v3258_v14, %s5288_s22 }
0x1446   :  { %v3260_v15 = vpop.permute.xlu0 %3259 }
0x1447   :  { %v3261_v16 = vadd.f32 %v3260_v15, %v3255_v32 }
0x1449   :  { %v3265_v17 = vmul.f32 0.001953125, %v3261_v16 }
0x144b   :  { %v3267_v18 = vmul.f32 %v3265_v17, %v3265_v17  ;;  %v3290_v31 = vrot.slane %v3265_v17, 7 }
0x144e   :  { %v3263_v35 = vpop.permute.xlu1 %3262 }
0x144f   :  { %v3264_v36 = vadd.f32 %v3263_v35, %v3258_v14 }
0x1451   :  { %v3266_v19 = vmul.f32 0.001953125, %v3264_v36 }
0x1453   :  { %v3268_v20 = vsub.f32 %v3266_v19, %v3267_v18 }
0x1455   :  { %v3269_v51 = vmax.f32 %v3268_v20, 0.0 }
0x1457   :  { %v3270_v48 = vadd.f32 1e-05, %v3269_v51 }
0x1459   :  { %5017 = vrsqrt.f32 %v3270_v48  ;;  %vm3277_vm5 = vweird.f32 %v3270_v48 }
0x145f   :  { %v5018_v29 = vpop.eup %5017 }
0x1460   :  { %v3272_v47 = vmul.f32 %v5018_v29, %v3270_v48  ;;  %vm3278_vm4 = vweird.f32 %v5018_v29 }
0x1461   :  { %vm3279_vm8 = vmor %vm3277_vm5, %vm3278_vm4 }
0x1462   :  { %v3273_v50 = vmul.f32 %v5018_v29, %v3272_v47 }
0x1464   :  { %v3274_v22 = vmul.f32 0.5, %v3273_v50 }
0x1466   :  { %v3275_v24 = vsub.f32 1.5, %v3274_v22 }
0x1468   :  { %v3276_v25 = vmul.f32 %v5018_v29, %v3275_v24 }
0x146a   :  { %v3280_v28 = vsel %vm3279_vm8, %v5018_v29, %v3276_v25 }
0x146b   :  { %v3282_v30 = vrot.slane %v3280_v28, 7 }
0x146d   :  { %v3284_v52 = vmul.f32 %v4646_v10, %v3282_v30 }
0x146f   :  { %v3286_v23 = vrot.slane %v3284_v52, 1  ;;  %v3292_v0 = vmul.f32 %v3290_v31, %v3284_v52 }
0x1471   :  { %v3288_v2 = vadd.f32 %v4646_v10, %v3286_v23  ;;  %v3294_v49 = vrot.slane %v3292_v0, 7 }
0x1473   :  { %v3296_v12 = vsub.f32 %v4646_v10, %v3294_v49  ;;  %v3297_v13 = vperm.slane %v3288_v2, 0 }
0x1475   :  { %v3298_v41 = vmul.f32 %v3297_v13, %v5973_v26  ;;  %v3299_v42 = vmul.f32 %v3297_v13, %v5971_v21  ;;  %v3300_v43 = vmul.f32 %v3297_v13, %v5975_v27  ;;  %v3301_v44 = vmul.f32 %v3297_v13, %v5986_v9 }
0x1476   :  { %v3302_v46 = vperm.slane %v3296_v12, 2 }
0x1478   :  { %v3303_v8 = vadd.f32 %v3302_v46, %v3298_v41  ;;  %v3304_v53 = vadd.f32 %v3302_v46, %v3299_v42  ;;  %v3305_v54 = vadd.f32 %v3302_v46, %v3300_v43  ;;  %v3306_v55 = vadd.f32 %v3302_v46, %v3301_v44 }
0x147a   :  { %v3307_v56 = vadd.f32 %v3303_v8, %v5840_v38  ;;  %v3308_v57 = vadd.f32 %v3304_v53, %v5842_v39  ;;  %v3309_v58 = vadd.f32 %v3305_v54, %v5844_v40  ;;  %v3310_v59 = vadd.f32 %v3306_v55, %v5846_v11 }
0x147c   :  { %vm3311_vm12 = vcmp.ge.f32.partialorder %v3307_v56, 0.0  ;;  %vm3312_vm13 = vcmp.ge.f32.partialorder %v3308_v57, 0.0  ;;  %vm3313_vm14 = vcmp.ge.f32.partialorder %v3309_v58, 0.0  ;;  %vm3314_vm15 = vcmp.ge.f32.partialorder %v3310_v59, 0.0 }
0x147d   :  { %v3315_v21 = vmul.f32 0.2, %v3307_v56  ;;  %v3316_v26 = vmul.f32 0.2, %v3308_v57  ;;  %v3317_v27 = vmul.f32 0.2, %v3309_v58 }
0x147e   :  { %v3318_v9 = vmul.f32 0.2, %v3310_v59 }
0x147f   :  { %v6010_v60 = vsel %vm3311_vm12, %v3307_v56, %v3315_v21  ;;  %v6012_v63 = vsel %vm3312_vm13, %v3308_v57, %v3316_v26  ;;  %v6014_v3 = vsel %vm3313_vm14, %v3309_v58, %v3317_v27 }
0x1480   :  { %v6016_v38 = vsel %vm3314_vm15, %v3310_v59, %v3318_v9 }
0x1481   :  { %5275 = dma.done.wait [#allocation3 + $0x1], 3072 }
0x1482   :  { %5276 = vsyncadd [#allocation3 + $0x1], 4294964224  ;;  %s3325_s2 = scalar_lea.hbm %s6073_s3, 1536  ;;  %v5289_v48 = vmov 0.0   ;;  %v3339_v47 = vpack.c.bf16 %v6012_v63, %v6010_v60  ;;  %v3565_v50 = vpack.c.bf16 0.0, %v6012_v63  ;;  %v3340_v24 = vpack.c.bf16 %v6016_v38, %v6014_v3 }
0x1483   :  { %s3333_s14 = sshll.u32 %s3325_s2, 4  ;;  %v3385_v29 = vpack.c.bf16 %v6010_v60, %v5289_v48  ;;  %v3386_v22 = vpack.c.bf16 %v6014_v3, %v5289_v48  ;;  %v3566_v25 = vpack.c.bf16 0.0, %v6016_v38  ;;  %s3334_s14 = int_to_ptr.hbm [resolvable:$true] %s3333_s14 }
0x1484   :  { %3338 = dma.hbm_to_vmem [thread:$0]  %s3334_s14, 3072, %s5352_s26, [#allocation3] }
0x1485   :  { %v4961_v39 = vld [vmem:[#allocation2 + $0xf8] sm:$0xff]  ;;  %v4960_v33 = vld [vmem:[#allocation2 + $0xf0] sm:$0xff]  ;;  %v4959_v34 = vld [vmem:[#allocation2 + $0xe8] sm:$0xff] }
0x1486   :  { %v4953_v40 = vld [vmem:[#allocation2 + $0x138] sm:$0xff]  ;;  %3451 = vmatpush.bf16.msrb.mxu1 %v4961_v39  ;;  %v4952_v4 = vld [vmem:[#allocation2 + $0x130] sm:$0xff]  ;;  %v4951_v6 = vld [vmem:[#allocation2 + $0x128] sm:$0xff] }
0x1487   :  { %v4969_v11 = vld [vmem:[#allocation2 + $0x178] sm:$0xff]  ;;  %3518 = vmatpush.bf16.msrb.mxu2 %v4953_v40  ;;  %v4968_v5 = vld [vmem:[#allocation2 + $0x170] sm:$0xff]  ;;  %v4967_v61 = vld [vmem:[#allocation2 + $0x168] sm:$0xff] }
0x1488   :  { %3631 = vmatpush.bf16.msrb.mxu3 %v4969_v11  ;;  %v4958_v62 = vld [vmem:[#allocation2 + $0xe0] sm:$0xff]  ;;  %v4957_v32 = vld [vmem:[#allocation2 + $0xd8] sm:$0xff]  ;;  %v4956_v15 = vld [vmem:[#allocation2 + $0xd0] sm:$0xff] }
0x1489   :  { %v4950_v7 = vld [vmem:[#allocation2 + $0x120] sm:$0xff]  ;;  %v4949_v37 = vld [vmem:[#allocation2 + $0x118] sm:$0xff]  ;;  %v4948_v16 = vld [vmem:[#allocation2 + $0x110] sm:$0xff] }
0x148a   :  { %3452 = vmatpush.bf16.msrb.mxu1 %v4960_v33  ;;  %v4966_v1 = vld [vmem:[#allocation2 + $0x160] sm:$0xff]  ;;  %v4965_v14 = vld [vmem:[#allocation2 + $0x158] sm:$0xff]  ;;  %v4964_v17 = vld [vmem:[#allocation2 + $0x150] sm:$0xff] }
0x148b   :  { %3519 = vmatpush.bf16.msrb.mxu2 %v4952_v4  ;;  %v4955_v35 = vld [vmem:[#allocation2 + $0xc8] sm:$0xff]  ;;  %v4954_v19 = vld [vmem:[#allocation2 + $0xc0] sm:$0xff] }
0x148c   :  { %3632 = vmatpush.bf16.msrb.mxu3 %v4968_v5  ;;  %v4947_v36 = vld [vmem:[#allocation2 + $0x108] sm:$0xff]  ;;  %v4946_v20 = vld [vmem:[#allocation2 + $0x100] sm:$0xff] }
0x148d   :  { %v4963_v18 = vld [vmem:[#allocation2 + $0x148] sm:$0xff]  ;;  %v4962_v51 = vld [vmem:[#allocation2 + $0x140] sm:$0xff] }
0x148e   :  { %3453 = vmatpush.bf16.msrb.mxu1 %v4959_v34 }
0x148f   :  { %3520 = vmatpush.bf16.msrb.mxu2 %v4951_v6 }
0x1490   :  { %3633 = vmatpush.bf16.msrb.mxu3 %v4967_v61 }
0x1492   :  { %3454 = vmatpush.bf16.msrb.mxu1 %v4958_v62 }
0x1493   :  { %3521 = vmatpush.bf16.msrb.mxu2 %v4950_v7 }
0x1494   :  { %3634 = vmatpush.bf16.msrb.mxu3 %v4966_v1 }
0x1496   :  { %3455 = vmatpush.bf16.msrb.mxu1 %v4957_v32 }
0x1497   :  { %3522 = vmatpush.bf16.msrb.mxu2 %v4949_v37 }
0x1498   :  { %3635 = vmatpush.bf16.msrb.mxu3 %v4965_v14 }
0x149a   :  { %3456 = vmatpush.bf16.msrb.mxu1 %v4956_v15 }
0x149b   :  { %3523 = vmatpush.bf16.msrb.mxu2 %v4948_v16 }
0x149c   :  { %3636 = vmatpush.bf16.msrb.mxu3 %v4964_v17 }
0x149e   :  { %3457 = vmatpush.bf16.msrb.mxu1 %v4955_v35 }
0x149f   :  { %3524 = vmatpush.bf16.msrb.mxu2 %v4947_v36 }
0x14a0   :  { %3637 = vmatpush.bf16.msrb.mxu3 %v4963_v18 }
0x14a2   :  { %3458 = vmatpush.bf16.msrb.mxu1 %v4954_v19 }
0x14a3   :  { %3525 = vmatpush.bf16.msrb.mxu2 %v4946_v20 }
0x14a4   :  { %3638 = vmatpush.bf16.msrb.mxu3 %v4962_v51 }
0x14a5   :  { %3459 = vmatmul.bf16.vlgmr.msrb.gmra.mxu1 %v3385_v29 }
0x14a6   :  { %3526 = vmatmul.bf16.vlgmr.msrb.gmra.mxu2 %v3339_v47 }
0x14a7   :  { %3639 = vmatmul.bf16.vlgmr.msrb.gmra.mxu3 %v3565_v50 }
0x14b5   :  { %3464 = vmatmul.bf16.gmra.mxu1 %v3386_v22 }
0x14b6   :  { %3531 = vmatmul.bf16.gmra.mxu2 %v3340_v24 }
0x14b7   :  { %3644 = vmatmul.bf16.gmra.mxu3 %v3566_v25 }
0x1522   :  { %v3460_v10 = vpop.f32.mrf.mxu1 }
0x1529   :  { %v3527_v28 = vpop.f32.mrf.mxu2 }
0x152a   :  { %v3640_v30 = vpop.f32.mrf.mxu3  ;;  %v3462_v31 = vpop.f32.mrf.mxu1  ;;  %v3528_v12 = vadd.f32 %v3527_v28, %v3460_v10 }
0x152c   :  { %v6032_v43 = vadd.f32 %v3640_v30, %v3528_v12 }
0x152e   :  { %v3665_v54 = vmul.f32 %v6032_v43, %v6032_v43 }
0x1531   :  { %v3529_v52 = vpop.f32.mrf.mxu2 }
0x1532   :  { %v3642_v23 = vpop.f32.mrf.mxu3  ;;  %v3465_v0 = vpop.f32.mrf.mxu1  ;;  %v3530_v2 = vadd.f32 %v3529_v52, %v3462_v31 }
0x1534   :  { %v6030_v42 = vadd.f32 %v3642_v23, %v3530_v2  ;;  %v4743_v2 = vld [vmem:[%s6071_s1 + $0x1c] sm:$0x7] }
0x1536   :  { %v3666_v46 = vmul.f32 %v6030_v42, %v6030_v42  ;;  %v3656_v55 = vadd.f32 %v6030_v42, %v6032_v43 }
0x1538   :  { %v3669_v59 = vadd.f32 %v3666_v46, %v3665_v54 }
0x1539   :  { %v3532_v49 = vpop.f32.mrf.mxu2 }
0x153a   :  { %v3533_v13 = vadd.f32 %v3532_v49, %v3465_v0  ;;  %v3645_v41 = vpop.f32.mrf.mxu3  ;;  %v3467_v8 = vpop.f32.mrf.mxu1 }
0x153c   :  { %v6034_v44 = vadd.f32 %v3645_v41, %v3533_v13 }
0x153e   :  { %v3667_v56 = vmul.f32 %v6034_v44, %v6034_v44  ;;  %v3657_v21 = vadd.f32 %v3656_v55, %v6034_v44 }
0x1540   :  { %v3670_v27 = vadd.f32 %v3669_v59, %v3667_v56 }
0x1541   :  { %v3534_v53 = vpop.f32.mrf.mxu2 }
0x1542   :  { %v3535_v57 = vadd.f32 %v3534_v53, %v3467_v8  ;;  %v3647_v58 = vpop.f32.mrf.mxu3 }
0x1544   :  { %v6045_v26 = vadd.f32 %v3647_v58, %v3535_v57 }
0x1546   :  { %v3658_v9 = vadd.f32 %v3657_v21, %v6045_v26  ;;  %v3668_v60 = vmul.f32 %v6045_v26, %v6045_v26 }
0x1548   :  { %v3659_v63 = vrot.slane %v3658_v9, 4  ;;  %v3671_v3 = vadd.f32 %v3670_v27, %v3668_v60 }
0x154a   :  { %v3660_v38 = vadd.f32 %v3659_v63, %v3658_v9  ;;  %v3672_v39 = vrot.slane %v3671_v3, 4 }
0x154c   :  { %v3661_v40 = vrot.slane %v3660_v38, 2  ;;  %v3673_v11 = vadd.f32 %v3672_v39, %v3671_v3 }
0x154e   :  { %v3662_v33 = vadd.f32 %v3661_v40, %v3660_v38  ;;  %v3674_v4 = vrot.slane %v3673_v11, 2 }
0x1550   :  { %v3663_v5 = vrot.slane %v3662_v33, 1  ;;  %v3675_v6 = vadd.f32 %v3674_v4, %v3673_v11 }
0x1552   :  { %v3664_v34 = vadd.f32 %v3663_v5, %v3662_v33  ;;  %v3676_v61 = vrot.slane %v3675_v6, 1 }
0x1554   :  { %3678 = vrot.lane.b32.xlu0 %v3664_v34, %s5285_s19  ;;  %v3677_v62 = vadd.f32 %v3676_v61, %v3675_v6 }
0x155c   :  { %3681 = vrot.lane.b32.xlu0 %v3677_v62, %s5285_s19 }
0x15c6   :  { %v3679_v7 = vpop.permute.xlu0 %3678 }
0x15c7   :  { %v3680_v1 = vadd.f32 %v3679_v7, %v3664_v34 }
0x15c9   :  { %3684 = vrot.lane.b32.xlu1 %v3680_v1, %s5286_s20 }
0x15ce   :  { %v3682_v32 = vpop.permute.xlu0 %3681 }
0x15cf   :  { %v3683_v37 = vadd.f32 %v3682_v32, %v3677_v62 }
0x15d1   :  { %3687 = vrot.lane.b32.xlu1 %v3683_v37, %s5286_s20 }
0x163b   :  { %v3685_v14 = vpop.permute.xlu1 %3684 }
0x163c   :  { %v3686_v15 = vadd.f32 %v3685_v14, %v3680_v1 }
0x163e   :  { %3690 = vrot.lane.b32.xlu2 %v3686_v15, %s5287_s21 }
0x1643   :  { %v3688_v16 = vpop.permute.xlu1 %3687 }
0x1644   :  { %v3689_v17 = vadd.f32 %v3688_v16, %v3683_v37 }
0x1646   :  { %3693 = vrot.lane.b32.xlu2 %v3689_v17, %s5287_s21 }
0x1698   :  { %v3691_v35 = vpop.permute.xlu2 %3690 }
0x1699   :  { %v3692_v36 = vadd.f32 %v3691_v35, %v3686_v15 }
0x169b   :  { %3696 = vrot.lane.b32.xlu0 %v3692_v36, %s5288_s22 }
0x16a0   :  { %v3694_v18 = vpop.permute.xlu2 %3693 }
0x16a1   :  { %v3695_v19 = vadd.f32 %v3694_v18, %v3689_v17 }
0x16a3   :  { %3699 = vrot.lane.b32.xlu1 %v3695_v19, %s5288_s22 }
0x170d   :  { %v3697_v20 = vpop.permute.xlu0 %3696 }
0x170e   :  { %v3698_v51 = vadd.f32 %v3697_v20, %v3692_v36 }
0x1710   :  { %v3702_v48 = vmul.f32 0.001953125, %v3698_v51 }
0x1712   :  { %v3704_v50 = vmul.f32 %v3702_v48, %v3702_v48  ;;  %v3727_v13 = vrot.slane %v3702_v48, 7 }
0x1715   :  { %v3700_v29 = vpop.permute.xlu1 %3699 }
0x1716   :  { %v3701_v47 = vadd.f32 %v3700_v29, %v3695_v19 }
0x1718   :  { %v3703_v22 = vmul.f32 0.001953125, %v3701_v47 }
0x171a   :  { %v3705_v24 = vsub.f32 %v3703_v22, %v3704_v50 }
0x171c   :  { %v3706_v25 = vmax.f32 %v3705_v24, 0.0 }
0x171e   :  { %v3707_v10 = vadd.f32 1e-05, %v3706_v25 }
0x1720   :  { %5019 = vrsqrt.f32 %v3707_v10  ;;  %vm3714_vm3 = vweird.f32 %v3707_v10 }
0x1726   :  { %v5020_v28 = vpop.eup %5019 }
0x1727   :  { %v3709_v30 = vmul.f32 %v5020_v28, %v3707_v10  ;;  %vm3715_vm2 = vweird.f32 %v5020_v28 }
0x1728   :  { %vm3716_vm6 = vmor %vm3714_vm3, %vm3715_vm2 }
0x1729   :  { %v3710_v31 = vmul.f32 %v5020_v28, %v3709_v30 }
0x172b   :  { %v3711_v52 = vmul.f32 0.5, %v3710_v31 }
0x172d   :  { %v3712_v23 = vsub.f32 1.5, %v3711_v52 }
0x172f   :  { %v3713_v0 = vmul.f32 %v5020_v28, %v3712_v23 }
0x1731   :  { %v3717_v49 = vsel %vm3716_vm6, %v5020_v28, %v3713_v0 }
0x1732   :  { %v3719_v12 = vrot.slane %v3717_v49, 7 }
0x1734   :  { %v3721_v41 = vmul.f32 %v4743_v2, %v3719_v12 }
0x1736   :  { %v3723_v46 = vrot.slane %v3721_v41, 1  ;;  %v3729_v8 = vmul.f32 %v3727_v13, %v3721_v41 }
0x1738   :  { %v3725_v53 = vadd.f32 %v4743_v2, %v3723_v46  ;;  %v3731_v54 = vrot.slane %v3729_v8, 7 }
0x173a   :  { %v3733_v55 = vsub.f32 %v4743_v2, %v3731_v54  ;;  %v3734_v56 = vperm.slane %v3725_v53, 0 }
0x173c   :  { %v3735_v57 = vmul.f32 %v3734_v56, %v6032_v43  ;;  %v3736_v58 = vmul.f32 %v3734_v56, %v6030_v42  ;;  %v3737_v59 = vmul.f32 %v3734_v56, %v6034_v44  ;;  %v3738_v21 = vmul.f32 %v3734_v56, %v6045_v26 }
0x173d   :  { %v3739_v27 = vperm.slane %v3733_v55, 2 }
0x173f   :  { %v3740_v9 = vadd.f32 %v3739_v27, %v3735_v57  ;;  %v3741_v60 = vadd.f32 %v3739_v27, %v3736_v58  ;;  %v3742_v63 = vadd.f32 %v3739_v27, %v3737_v59  ;;  %v3743_v3 = vadd.f32 %v3739_v27, %v3738_v21 }
0x1741   :  { %vm3744_vm0 = vcmp.ge.f32.partialorder %v3740_v9, 0.0  ;;  %vm3745_vm1 = vcmp.ge.f32.partialorder %v3741_v60, 0.0  ;;  %vm3746_vm7 = vcmp.ge.f32.partialorder %v3742_v63, 0.0  ;;  %vm3747_vm9 = vcmp.ge.f32.partialorder %v3743_v3, 0.0 }
0x1742   :  { %v3748_v38 = vmul.f32 0.2, %v3740_v9  ;;  %v3749_v39 = vmul.f32 0.2, %v3741_v60  ;;  %v3750_v40 = vmul.f32 0.2, %v3742_v63 }
0x1743   :  { %v3751_v11 = vmul.f32 0.2, %v3743_v3 }
0x1744   :  { %v3752_v43 = vsel %vm3744_vm0, %v3740_v9, %v3748_v38  ;;  %v3753_v33 = vsel %vm3745_vm1, %v3741_v60, %v3749_v39  ;;  %v3754_v42 = vsel %vm3746_vm7, %v3742_v63, %v3750_v40 }
0x1745   :  { %v3755_v4 = vsel %vm3747_vm9, %v3743_v3, %v3751_v11 }
0x1746   :  { %5277 = dma.done.wait [#allocation3], 3072 }
0x1747   :  { %5278 = vsyncadd [#allocation3], 4294964224  ;;  %v4977_v44 = vld [vmem:[#allocation2 + $0x38] sm:$0xff]  ;;  %v4976_v26 = vld [vmem:[#allocation2 + $0x30] sm:$0xff]  ;;  %v3758_v1 = vpack.c.bf16 %v3753_v33, %v3752_v43  ;;  %v3759_v32 = vpack.c.bf16 %v3755_v4, %v3754_v42  ;;  %v3776_v37 = vperm.slane %v5376_v45, 2  ;;  %s5290_s1 = smov [#allocation4]  }
0x1748   :  { %3825 = vmatpush.bf16.msra.mxu0 %v4977_v44  ;;  %4978 = vmatpush.bf16.msra.mxu1 %v4977_v44  ;;  %v4975_v5 = vld [vmem:[#allocation2 + $0x28] sm:$0xff]  ;;  %v4974_v34 = vld [vmem:[#allocation2 + $0x20] sm:$0xff]  ;;  %v4973_v6 = vld [vmem:[#allocation2 + $0x18] sm:$0xff]  ;;  %s3852_s20 = sshll.u32 %s5290_s1, 4  ;;  %s3854_s15 = sshll.u32 %s6074_s4, 4  ;;  %s3853_s20 = int_to_ptr.vmem [resolvable:$true] %s3852_s20  ;;  %s3855_s15 = int_to_ptr.hbm [resolvable:$true] %s3854_s15 }
0x1749   :  { %v4972_v61 = vld [vmem:[#allocation2 + $0x10] sm:$0xff]  ;;  %v4971_v62 = vld [vmem:[#allocation2 + $0x8] sm:$0xff]  ;;  %v4970_v7 = vld [vmem:[#allocation2] sm:$0xff]  ;;  %s5291_s16 = smov 128  }
0x174c   :  { %3826 = vmatpush.bf16.msra.mxu0 %v4976_v26  ;;  %4979 = vmatpush.bf16.msra.mxu1 %v4976_v26 }
0x1750   :  { %3827 = vmatpush.bf16.msra.mxu0 %v4975_v5  ;;  %4980 = vmatpush.bf16.msra.mxu1 %v4975_v5 }
0x1754   :  { %3828 = vmatpush.bf16.msra.mxu0 %v4974_v34  ;;  %4981 = vmatpush.bf16.msra.mxu1 %v4974_v34 }
0x1758   :  { %3829 = vmatpush.bf16.msra.mxu0 %v4973_v6  ;;  %4982 = vmatpush.bf16.msra.mxu1 %v4973_v6 }
0x175c   :  { %3830 = vmatpush.bf16.msra.mxu0 %v4972_v61  ;;  %4983 = vmatpush.bf16.msra.mxu1 %v4972_v61 }
0x1760   :  { %3831 = vmatpush.bf16.msra.mxu0 %v4971_v62  ;;  %4984 = vmatpush.bf16.msra.mxu1 %v4971_v62 }
0x1764   :  { %3832 = vmatpush.bf16.msra.mxu0 %v4970_v7  ;;  %4985 = vmatpush.bf16.msra.mxu1 %v4970_v7 }
0x1767   :  { %3833 = vmatmul.bf16.vlgmr.msra.gmra.mxu0 %v3758_v1  ;;  %3838 = vmatmul.bf16.vlgmr.msra.gmra.mxu1 %v3759_v32 }
0x17e4   :  { %v3834_v14 = vpop.f32.mrf.mxu0  ;;  %v3839_v15 = vpop.f32.mrf.mxu1 }
0x17e5   :  { %v3835_v16 = vadd.f32 %v3834_v14, %v3776_v37  ;;  %v3840_v17 = vadd.f32 %v3839_v15, %v3776_v37 }
0x17e7   :  { %3844 = vst [vmem:[#allocation4] sm:$0xff] %v3835_v16 }
0x17e8   :  { %3846 = vst [vmem:[#allocation4 + $0x10] sm:$0xff] %v3840_v17 }
0x17ec   :  { %v3836_v35 = vpop.f32.mrf.mxu0  ;;  %v3841_v36 = vpop.f32.mrf.mxu1 }
0x17ed   :  { %v3837_v18 = vadd.f32 %v3836_v35, %v3776_v37  ;;  %v3842_v19 = vadd.f32 %v3841_v36, %v3776_v37 }
0x17ef   :  { %3845 = vst [vmem:[#allocation4 + $0x8] sm:$0xff] %v3837_v18 }
0x17f0   :  { %3847 = vst [vmem:[#allocation4 + $0x18] sm:$0xff] %v3842_v19 }
0x17f1   :  { %3860 = dma.vmem_to_hbm [thread:$0]  %s3853_s20, 512, %s3855_s15, [#allocation5], %s5291_s16, %s5291_s16, %s5285_s19  }
0x17f2   :  { %5279 = dma.done.wait [#allocation5], 512  }
0x17f3   :  { %5280 = vsyncadd [#allocation5], 4294966784 }
0x17f4   :  { %3865 = vsyncpa [#allocation5], 1 }
0x17f5   :  { %3866 = vsyncmov [#allocation3] }
0x17f8   :  { %s3867_s17 = vpop.sfrf %3866 }
0x17f9   :  { %p4776_p0 = scmp.ne.s32.totalorder %s3867_s17, 0 }
0x17fb   :  { %3871 = shalt.err (%p4776_p0)  }
0x17fc   :  { %3873 = vsyncmov [#allocation3 + $0x1] }
0x17ff   :  { %s3874_s4 = vpop.sfrf %3873 }
0x1800   :  { %p4777_p1 = scmp.ne.s32.totalorder %s3874_s4, 0 }
0x1802   :  { %3878 = shalt.err (%p4777_p1)  }

</bundles_post_ra>
